<compile_context>
chip_gen: v7x
topology: tpu7x:2x2x1
jax: 0.10.0
libtpu: 0.0.40
codegen_flags: <defaults>
</compile_context>

<pallas_src>
import functools

import jax
import jax.numpy as jnp
from jax.experimental import pallas as pl
from jax.experimental.pallas import tpu as pltpu


CFG = dict(vocab=64, hidden=32, heads=4, layers=2, intermediate=64,
           max_pos=16, type_vocab=2, num_classes=2)
LANE_PAD = 128  # classifier output padded to a full 128-lane slab


# ----------------------------------------------------------------------------
# Fused whole-model Pallas kernel
# ----------------------------------------------------------------------------
def _bert_fused_kernel(emb_ref, mask_ref,
                       emb_ln_g_ref, emb_ln_b_ref,
                       qkv_w_ref, qkv_b_ref,
                       o_w_ref, o_b_ref,
                       ln1_g_ref, ln1_b_ref,
                       i_w_ref, i_b_ref,
                       f_w_ref, f_b_ref,
                       ln2_g_ref, ln2_b_ref,
                       cls_w_ref, cls_b_ref,
                       out_ref,
                       *, num_layers, batch, seq, heads, head_dim, eps):
    H = heads * head_dim
    M = batch * seq
    scale = 1.0 / (head_dim ** 0.5)

    def layernorm(x, g, b):
        mu = jnp.mean(x, axis=-1, keepdims=True)
        var = jnp.mean((x - mu) * (x - mu), axis=-1, keepdims=True)
        return (x - mu) * jax.lax.rsqrt(var + eps) * g + b

    def mxu(x, w):
        # bf16 operands feed the MXU fast path; accumulate in f32.
        return jnp.dot(x.astype(jnp.bfloat16), w.astype(jnp.bfloat16),
                       preferred_element_type=jnp.float32)

    mask = mask_ref[...].astype(jnp.float32)                       # [B, 1, S]

    # Embedding LayerNorm.
    x = layernorm(emb_ref[...].astype(jnp.float32),
                  emb_ln_g_ref[...], emb_ln_b_ref[...])            # [M, H]

    for l in range(num_layers):                                    # unrolled (L=2)
        # ---- fused Q|K|V projection ---------------------------------------
        qkv = mxu(x, qkv_w_ref[l]) + qkv_b_ref[l]                  # [M, 3H]
        ow_l = o_w_ref[l]                                          # [H, H]

        # ---- attention: batched over batch, heads unrolled; the per-head
        #      context is folded directly into the output projection --------
        attn_out = jnp.zeros((M, H), jnp.float32)
        for h in range(heads):
            lo = h * head_dim
            qh = qkv[:, lo:lo + head_dim].reshape(batch, seq, head_dim)
            kh = qkv[:, H + lo:H + lo + head_dim].reshape(batch, seq, head_dim)
            vh = qkv[:, 2 * H + lo:2 * H + lo + head_dim].reshape(batch, seq, head_dim)

            # contract over d directly (no explicit k.T / XLU transpose)
            s = jnp.einsum('bqd,bkd->bqk',
                           qh.astype(jnp.bfloat16), kh.astype(jnp.bfloat16),
                           preferred_element_type=jnp.float32)
            s = s * scale + mask                                   # [B, S, S]
            s = s - jnp.max(s, axis=-1, keepdims=True)
            p = jnp.exp(s)
            p = p * pl.reciprocal(jnp.sum(p, axis=-1, keepdims=True), approx=True)

            ch = jnp.einsum('bqk,bkd->bqd',
                            p.astype(jnp.bfloat16), vh.astype(jnp.bfloat16),
                            preferred_element_type=jnp.float32)    # [B, S, Dh]
            # ctx @ W_o == sum_h ctx_h @ W_o[rows of head h]
            attn_out = attn_out + mxu(ch.reshape(M, head_dim),
                                      ow_l[lo:lo + head_dim, :])
        attn_out = attn_out + o_b_ref[l]

        x = layernorm(attn_out + x, ln1_g_ref[l], ln1_b_ref[l])

        # ---- FFN: dense -> GELU -> dense, + residual + LayerNorm -----------
        inter = mxu(x, i_w_ref[l]) + i_b_ref[l]                    # [M, I] f32
        # TODO(synk): HF BERT uses erf-based GELU; tanh approximation kept for
        # Mosaic-safe lowering (math stays in f32 for v5e's f32-only VPU/EUP).
        inter = 0.5 * inter * (1.0 + jnp.tanh(
            0.7978845608028654 * (inter + 0.044715 * inter * inter * inter)))
        ffn_out = mxu(inter, f_w_ref[l]) + f_b_ref[l]
        x = layernorm(ffn_out + x, ln2_g_ref[l], ln2_b_ref[l])

    # ---- classifier head: lane-dense padded output (full 128-lane vst) -----
    out_ref[...] = (mxu(x, cls_w_ref[...]) + cls_b_ref[...]).astype(out_ref.dtype)


# ----------------------------------------------------------------------------
# Parameter construction / preparation (done once, outside the hot path)
# ----------------------------------------------------------------------------
def init_params(key):
    H, I = CFG["hidden"], CFG["intermediate"]
    std = 0.02
    ks = iter(jax.random.split(key, 8 + 16 * CFG["layers"]))

    def w(shape):
        return std * jax.random.normal(next(ks), shape, jnp.float32)

    p = {
        "word_emb": w((CFG["vocab"], H)),
        "pos_emb": w((CFG["max_pos"], H)),
        "type_emb": w((CFG["type_vocab"], H)),
        "emb_ln_g": jnp.ones((H,), jnp.float32),
        "emb_ln_b": jnp.zeros((H,), jnp.float32),
        "cls_w": w((H, CFG["num_classes"])),
        "cls_b": jnp.zeros((CFG["num_classes"],), jnp.float32),
        "layers": [],
    }
    for _ in range(CFG["layers"]):
        p["layers"].append({
            "q_w": w((H, H)), "q_b": jnp.zeros((H,), jnp.float32),
            "k_w": w((H, H)), "k_b": jnp.zeros((H,), jnp.float32),
            "v_w": w((H, H)), "v_b": jnp.zeros((H,), jnp.float32),
            "o_w": w((H, H)), "o_b": jnp.zeros((H,), jnp.float32),
            "ln1_g": jnp.ones((H,), jnp.float32), "ln1_b": jnp.zeros((H,), jnp.float32),
            "i_w": w((H, I)), "i_b": jnp.zeros((I,), jnp.float32),
            "f_w": w((I, H)), "f_b": jnp.zeros((H,), jnp.float32),
            "ln2_g": jnp.ones((H,), jnp.float32), "ln2_b": jnp.zeros((H,), jnp.float32),
        })
    return p


def prepare_fused_params(params):
    """Stack per-layer weights, fuse Q|K|V, pad the classifier to 128 lanes."""
    H, I = CFG["hidden"], CFG["intermediate"]
    nc = CFG["num_classes"]

    def stack(fn):
        return jnp.stack([fn(lp) for lp in params["layers"]], axis=0)

    fused = dict(
        word_emb=params["word_emb"],
        pos_emb=params["pos_emb"],
        type_emb=params["type_emb"],
        emb_ln_g=params["emb_ln_g"].reshape(1, H),
        emb_ln_b=params["emb_ln_b"].reshape(1, H),
        qkv_w=stack(lambda lp: jnp.concatenate(
            [lp["q_w"], lp["k_w"], lp["v_w"]], axis=1)),             # [L, H, 3H]
        qkv_b=stack(lambda lp: jnp.concatenate(
            [lp["q_b"], lp["k_b"], lp["v_b"]]).reshape(1, 3 * H)),   # [L, 1, 3H]
        o_w=stack(lambda lp: lp["o_w"]),                             # [L, H, H]
        o_b=stack(lambda lp: lp["o_b"].reshape(1, H)),
        ln1_g=stack(lambda lp: lp["ln1_g"].reshape(1, H)),
        ln1_b=stack(lambda lp: lp["ln1_b"].reshape(1, H)),
        i_w=stack(lambda lp: lp["i_w"]),                             # [L, H, I]
        i_b=stack(lambda lp: lp["i_b"].reshape(1, I)),
        f_w=stack(lambda lp: lp["f_w"]),                             # [L, I, H]
        f_b=stack(lambda lp: lp["f_b"].reshape(1, H)),
        ln2_g=stack(lambda lp: lp["ln2_g"].reshape(1, H)),
        ln2_b=stack(lambda lp: lp["ln2_b"].reshape(1, H)),
        cls_w=jnp.zeros((H, LANE_PAD), jnp.float32).at[:, :nc].set(params["cls_w"]),
        cls_b=jnp.zeros((1, LANE_PAD), jnp.float32).at[:, :nc].set(params["cls_b"]),
    )
    return fused


# ----------------------------------------------------------------------------
# Forward: embedding gather in XLA glue, everything else in ONE pallas_call
# ----------------------------------------------------------------------------
def headword_classifier_forward(fused, input_ids, attention_mask):
    B, S = input_ids.shape
    H, nH = CFG["hidden"], CFG["heads"]
    Dh = H // nH
    M = B * S

    # Token/position/type embedding gathers are data-dependent gathers; kept
    # in XLA glue. Everything downstream runs inside the fused kernel.
    we = fused["word_emb"][input_ids]                         # [B, S, H]
    pe = fused["pos_emb"][jnp.arange(S)][None, :, :]          # [1, S, H]
    te = fused["type_emb"][jnp.zeros((B, S), jnp.int32)]      # [B, S, H]
    emb = (we + pe + te).reshape(M, H).astype(jnp.float32)

    # BERT-style additive mask, built once: (1 - mask) * -10000, [B, 1, S].
    add_mask = ((1.0 - attention_mask.astype(jnp.float32)) * -10000.0).reshape(B, 1, S)

    kernel = functools.partial(
        _bert_fused_kernel, num_layers=CFG["layers"], batch=B, seq=S,
        heads=nH, head_dim=Dh, eps=1e-12)

    args = (
        emb, add_mask,
        fused["emb_ln_g"], fused["emb_ln_b"],
        fused["qkv_w"], fused["qkv_b"],
        fused["o_w"], fused["o_b"],
        fused["ln1_g"], fused["ln1_b"],
        fused["i_w"], fused["i_b"],
        fused["f_w"], fused["f_b"],
        fused["ln2_g"], fused["ln2_b"],
        fused["cls_w"], fused["cls_b"],
    )

    def full_block(a):
        n = a.ndim
        return pl.BlockSpec(a.shape, lambda i, n=n: (0,) * n)

    out_pad = pl.pallas_call(
        kernel,
        out_shape=jax.ShapeDtypeStruct((M, LANE_PAD), jnp.float32),
        grid=(1,),
        in_specs=[full_block(a) for a in args],
        out_specs=pl.BlockSpec((M, LANE_PAD), lambda i: (0, 0)),
        compiler_params=pltpu.CompilerParams(
            dimension_semantics=("arbitrary",)),
    )(*args)

    return out_pad[:, :CFG["num_classes"]].reshape(B, S, CFG["num_classes"])


# ----------------------------------------------------------------------------
if __name__ == "__main__":
    key = jax.random.PRNGKey(0)
    pkey, ikey = jax.random.split(key)

    params = init_params(pkey)
    fused = prepare_fused_params(params)

    B, S = 2, 8
    input_ids = jax.random.randint(ikey, (B, S), 0, CFG["vocab"], dtype=jnp.int32)
    attention_mask = jnp.array(
        [[1, 1, 1, 1, 1, 1, 1, 1],
         [1, 1, 1, 1, 1, 1, 0, 0]], dtype=jnp.int32)

    fwd = jax.jit(headword_classifier_forward)
    logits = fwd(fused, input_ids, attention_mask)
    logits = jax.block_until_ready(logits)
    assert logits.shape == (B, S, 2) and logits.dtype == jnp.float32
    print("KERNEL_OK")
</pallas_src>

<mosaic_0001>
module attributes {stable_mosaic.version = 11 : i64} {
  func.func @_bert_fused_kernel(%arg0: i32, %arg1: memref<16x32xf32, #tpu.memory_space<vmem>>, %arg2: memref<2x1x8xf32, #tpu.memory_space<vmem>>, %arg3: memref<1x32xf32, #tpu.memory_space<vmem>>, %arg4: memref<1x32xf32, #tpu.memory_space<vmem>>, %arg5: memref<2x32x96xf32, #tpu.memory_space<vmem>>, %arg6: memref<2x1x96xf32, #tpu.memory_space<vmem>>, %arg7: memref<2x32x32xf32, #tpu.memory_space<vmem>>, %arg8: memref<2x1x32xf32, #tpu.memory_space<vmem>>, %arg9: memref<2x1x32xf32, #tpu.memory_space<vmem>>, %arg10: memref<2x1x32xf32, #tpu.memory_space<vmem>>, %arg11: memref<2x32x64xf32, #tpu.memory_space<vmem>>, %arg12: memref<2x1x64xf32, #tpu.memory_space<vmem>>, %arg13: memref<2x64x32xf32, #tpu.memory_space<vmem>>, %arg14: memref<2x1x32xf32, #tpu.memory_space<vmem>>, %arg15: memref<2x1x32xf32, #tpu.memory_space<vmem>>, %arg16: memref<2x1x32xf32, #tpu.memory_space<vmem>>, %arg17: memref<32x128xf32, #tpu.memory_space<vmem>>, %arg18: memref<1x128xf32, #tpu.memory_space<vmem>>, %arg19: memref<16x128xf32, #tpu.memory_space<vmem>>) attributes {dimension_semantics = [#tpu.dimension_semantics<arbitrary>], iteration_bounds = array<i64: 1>, scalar_prefetch = 0 : i64, scratch_operands = 0 : i64, tpu.core_type = #tpu.core_type<tc>, window_params = [{pipeline_mode = #tpu.pipeline_mode<synchronous>, transform_indices = @transform_0, window_bounds = array<i64: 16, 32>}, {pipeline_mode = #tpu.pipeline_mode<synchronous>, transform_indices = @transform_1, window_bounds = array<i64: 2, 1, 8>}, {pipeline_mode = #tpu.pipeline_mode<synchronous>, transform_indices = @transform_2, window_bounds = array<i64: 1, 32>}, {pipeline_mode = #tpu.pipeline_mode<synchronous>, transform_indices = @transform_3, window_bounds = array<i64: 1, 32>}, {pipeline_mode = #tpu.pipeline_mode<synchronous>, transform_indices = @transform_4, window_bounds = array<i64: 2, 32, 96>}, {pipeline_mode = #tpu.pipeline_mode<synchronous>, transform_indices = @transform_5, window_bounds = array<i64: 2, 1, 96>}, {pipeline_mode = #tpu.pipeline_mode<synchronous>, transform_indices = @transform_6, window_bounds = array<i64: 2, 32, 32>}, {pipeline_mode = #tpu.pipeline_mode<synchronous>, transform_indices = @transform_7, window_bounds = array<i64: 2, 1, 32>}, {pipeline_mode = #tpu.pipeline_mode<synchronous>, transform_indices = @transform_8, window_bounds = array<i64: 2, 1, 32>}, {pipeline_mode = #tpu.pipeline_mode<synchronous>, transform_indices = @transform_9, window_bounds = array<i64: 2, 1, 32>}, {pipeline_mode = #tpu.pipeline_mode<synchronous>, transform_indices = @transform_10, window_bounds = array<i64: 2, 32, 64>}, {pipeline_mode = #tpu.pipeline_mode<synchronous>, transform_indices = @transform_11, window_bounds = array<i64: 2, 1, 64>}, {pipeline_mode = #tpu.pipeline_mode<synchronous>, transform_indices = @transform_12, window_bounds = array<i64: 2, 64, 32>}, {pipeline_mode = #tpu.pipeline_mode<synchronous>, transform_indices = @transform_13, window_bounds = array<i64: 2, 1, 32>}, {pipeline_mode = #tpu.pipeline_mode<synchronous>, transform_indices = @transform_14, window_bounds = array<i64: 2, 1, 32>}, {pipeline_mode = #tpu.pipeline_mode<synchronous>, transform_indices = @transform_15, window_bounds = array<i64: 2, 1, 32>}, {pipeline_mode = #tpu.pipeline_mode<synchronous>, transform_indices = @transform_16, window_bounds = array<i64: 32, 128>}, {pipeline_mode = #tpu.pipeline_mode<synchronous>, transform_indices = @transform_17, window_bounds = array<i64: 1, 128>}, {pipeline_mode = #tpu.pipeline_mode<synchronous>, transform_indices = @transform_18, window_bounds = array<i64: 16, 128>}]} {
    %c0 = arith.constant 0 : index
    %c0_0 = arith.constant 0 : index
    %c0_1 = arith.constant 0 : index
    %0 = vector.load %arg2[%c0, %c0_0, %c0_1] : memref<2x1x8xf32, #tpu.memory_space<vmem>>, vector<2x1x8xf32>
    %c0_2 = arith.constant 0 : index
    %c0_3 = arith.constant 0 : index
    %1 = vector.load %arg1[%c0_2, %c0_3] : memref<16x32xf32, #tpu.memory_space<vmem>>, vector<16x32xf32>
    %c0_4 = arith.constant 0 : index
    %c0_5 = arith.constant 0 : index
    %2 = vector.load %arg3[%c0_4, %c0_5] : memref<1x32xf32, #tpu.memory_space<vmem>>, vector<1x32xf32>
    %c0_6 = arith.constant 0 : index
    %c0_7 = arith.constant 0 : index
    %3 = vector.load %arg4[%c0_6, %c0_7] : memref<1x32xf32, #tpu.memory_space<vmem>>, vector<1x32xf32>
    %cst = arith.constant dense<0.000000e+00> : vector<16xf32>
    %4 = vector.multi_reduction <add>, %1, %cst [1] : vector<16x32xf32> to vector<16xf32>
    %5 = vector.shape_cast %4 : vector<16xf32> to vector<16x1xf32>
    %cst_8 = arith.constant 3.200000e+01 : f32
    %6 = vector.broadcast %cst_8 : f32 to vector<16x1xf32>
    %7 = arith.divf %5, %6 : vector<16x1xf32>
    %8 = vector.broadcast %7 : vector<16x1xf32> to vector<16x32xf32>
    %9 = arith.subf %1, %8 : vector<16x32xf32>
    %10 = vector.broadcast %7 : vector<16x1xf32> to vector<16x32xf32>
    %11 = arith.subf %1, %10 : vector<16x32xf32>
    %12 = arith.mulf %9, %11 : vector<16x32xf32>
    %cst_9 = arith.constant dense<0.000000e+00> : vector<16xf32>
    %13 = vector.multi_reduction <add>, %12, %cst_9 [1] : vector<16x32xf32> to vector<16xf32>
    %14 = vector.shape_cast %13 : vector<16xf32> to vector<16x1xf32>
    %cst_10 = arith.constant 3.200000e+01 : f32
    %15 = vector.broadcast %cst_10 : f32 to vector<16x1xf32>
    %16 = arith.divf %14, %15 : vector<16x1xf32>
    %17 = vector.broadcast %7 : vector<16x1xf32> to vector<16x32xf32>
    %18 = arith.subf %1, %17 : vector<16x32xf32>
    %cst_11 = arith.constant 9.99999996E-13 : f32
    %19 = vector.broadcast %cst_11 : f32 to vector<16x1xf32>
    %20 = arith.addf %16, %19 : vector<16x1xf32>
    %21 = math.rsqrt %20 : vector<16x1xf32>
    %22 = vector.broadcast %21 : vector<16x1xf32> to vector<16x32xf32>
    %23 = arith.mulf %18, %22 : vector<16x32xf32>
    %24 = vector.broadcast %2 : vector<1x32xf32> to vector<16x32xf32>
    %25 = arith.mulf %23, %24 : vector<16x32xf32>
    %26 = vector.broadcast %3 : vector<1x32xf32> to vector<16x32xf32>
    %27 = arith.addf %25, %26 : vector<16x32xf32>
    %c0_12 = arith.constant 0 : index
    %c0_13 = arith.constant 0 : index
    %c0_14 = arith.constant 0 : index
    %28 = vector.load %arg5[%c0_12, %c0_13, %c0_14] : memref<2x32x96xf32, #tpu.memory_space<vmem>>, vector<1x32x96xf32>
    %29 = vector.shape_cast %28 : vector<1x32x96xf32> to vector<32x96xf32>
    %30 = arith.truncf %27 : vector<16x32xf32> to vector<16x32xbf16>
    %31 = arith.truncf %29 : vector<32x96xf32> to vector<32x96xbf16>
    %cst_15 = arith.constant dense<0.000000e+00> : vector<16x96xf32>
    %32 = tpu.matmul %30, %31, %cst_15 {dimension_numbers = #tpu.dot_dimension_numbers<[1], [0], [0], [1], [0, 0, 1, 1], [], []>} : vector<16x32xbf16>, vector<32x96xbf16>, vector<16x96xf32> -> vector<16x96xf32>
    %c0_16 = arith.constant 0 : index
    %c0_17 = arith.constant 0 : index
    %c0_18 = arith.constant 0 : index
    %33 = vector.load %arg6[%c0_16, %c0_17, %c0_18] : memref<2x1x96xf32, #tpu.memory_space<vmem>>, vector<1x1x96xf32>
    %34 = vector.shape_cast %33 : vector<1x1x96xf32> to vector<1x96xf32>
    %35 = vector.broadcast %34 : vector<1x96xf32> to vector<16x96xf32>
    %36 = arith.addf %32, %35 : vector<16x96xf32>
    %c0_19 = arith.constant 0 : index
    %c0_20 = arith.constant 0 : index
    %c0_21 = arith.constant 0 : index
    %37 = vector.load %arg7[%c0_19, %c0_20, %c0_21] : memref<2x32x32xf32, #tpu.memory_space<vmem>>, vector<1x32x32xf32>
    %38 = vector.shape_cast %37 : vector<1x32x32xf32> to vector<32x32xf32>
    %cst_22 = arith.constant 0.000000e+00 : f32
    %39 = vector.broadcast %cst_22 : f32 to vector<16x32xf32>
    %40 = vector.extract_strided_slice %36 {offsets = [0, 0], sizes = [16, 8], strides = [1, 1]} : vector<16x96xf32> to vector<16x8xf32>
    %41 = vector.shape_cast %40 : vector<16x8xf32> to vector<2x8x8xf32>
    %42 = vector.extract_strided_slice %36 {offsets = [0, 32], sizes = [16, 8], strides = [1, 1]} : vector<16x96xf32> to vector<16x8xf32>
    %43 = vector.shape_cast %42 : vector<16x8xf32> to vector<2x8x8xf32>
    %44 = vector.extract_strided_slice %36 {offsets = [0, 64], sizes = [16, 8], strides = [1, 1]} : vector<16x96xf32> to vector<16x8xf32>
    %45 = vector.shape_cast %44 : vector<16x8xf32> to vector<2x8x8xf32>
    %46 = arith.truncf %41 : vector<2x8x8xf32> to vector<2x8x8xbf16>
    %47 = arith.truncf %43 : vector<2x8x8xf32> to vector<2x8x8xbf16>
    "tpu.trace_start"() <{level = 10 : i32, message = "bqd,bkd->bqk"}> : () -> ()
    %cst_23 = arith.constant dense<0.000000e+00> : vector<2x8x8xf32>
    %48 = tpu.matmul %46, %47, %cst_23 {dimension_numbers = #tpu.dot_dimension_numbers<[2], [2], [1], [1], [0, 0, 0, 1, 1, 1], [0], [0]>} : vector<2x8x8xbf16>, vector<2x8x8xbf16>, vector<2x8x8xf32> -> vector<2x8x8xf32>
    "tpu.trace_stop"() : () -> ()
    %cst_24 = arith.constant 0.353553385 : f32
    %49 = vector.broadcast %cst_24 : f32 to vector<2x8x8xf32>
    %50 = arith.mulf %48, %49 : vector<2x8x8xf32>
    %51 = vector.broadcast %0 : vector<2x1x8xf32> to vector<2x8x8xf32>
    %52 = arith.addf %50, %51 : vector<2x8x8xf32>
    %cst_25 = arith.constant dense<0xFF800000> : vector<2x8xf32>
    %53 = vector.multi_reduction <maximumf>, %52, %cst_25 [2] : vector<2x8x8xf32> to vector<2x8xf32>
    %54 = vector.shape_cast %53 : vector<2x8xf32> to vector<2x8x1xf32>
    %55 = vector.broadcast %54 : vector<2x8x1xf32> to vector<2x8x8xf32>
    %56 = arith.subf %52, %55 : vector<2x8x8xf32>
    %57 = math.exp %56 : vector<2x8x8xf32>
    %cst_26 = arith.constant dense<0.000000e+00> : vector<2x8xf32>
    %58 = vector.multi_reduction <add>, %57, %cst_26 [2] : vector<2x8x8xf32> to vector<2x8xf32>
    %59 = vector.shape_cast %58 : vector<2x8xf32> to vector<2x8x1xf32>
    %60 = tpu.reciprocal %59 {approx = true} : vector<2x8x1xf32> -> vector<2x8x1xf32>
    %61 = vector.broadcast %60 : vector<2x8x1xf32> to vector<2x8x8xf32>
    %62 = arith.mulf %57, %61 : vector<2x8x8xf32>
    %63 = arith.truncf %62 : vector<2x8x8xf32> to vector<2x8x8xbf16>
    %64 = arith.truncf %45 : vector<2x8x8xf32> to vector<2x8x8xbf16>
    "tpu.trace_start"() <{level = 10 : i32, message = "bqk,bkd->bqd"}> : () -> ()
    %cst_27 = arith.constant dense<0.000000e+00> : vector<2x8x8xf32>
    %65 = tpu.matmul %63, %64, %cst_27 {dimension_numbers = #tpu.dot_dimension_numbers<[2], [1], [1], [2], [0, 0, 0, 1, 1, 2], [0], [0]>} : vector<2x8x8xbf16>, vector<2x8x8xbf16>, vector<2x8x8xf32> -> vector<2x8x8xf32>
    "tpu.trace_stop"() : () -> ()
    %66 = vector.shape_cast %65 : vector<2x8x8xf32> to vector<16x8xf32>
    %67 = vector.extract_strided_slice %38 {offsets = [0, 0], sizes = [8, 32], strides = [1, 1]} : vector<32x32xf32> to vector<8x32xf32>
    %68 = arith.truncf %66 : vector<16x8xf32> to vector<16x8xbf16>
    %69 = arith.truncf %67 : vector<8x32xf32> to vector<8x32xbf16>
    %cst_28 = arith.constant dense<0.000000e+00> : vector<16x32xf32>
    %70 = tpu.matmul %68, %69, %cst_28 {dimension_numbers = #tpu.dot_dimension_numbers<[1], [0], [0], [1], [0, 0, 1, 1], [], []>} : vector<16x8xbf16>, vector<8x32xbf16>, vector<16x32xf32> -> vector<16x32xf32>
    %71 = arith.addf %39, %70 : vector<16x32xf32>
    %72 = vector.extract_strided_slice %36 {offsets = [0, 8], sizes = [16, 8], strides = [1, 1]} : vector<16x96xf32> to vector<16x8xf32>
    %73 = vector.shape_cast %72 : vector<16x8xf32> to vector<2x8x8xf32>
    %74 = vector.extract_strided_slice %36 {offsets = [0, 40], sizes = [16, 8], strides = [1, 1]} : vector<16x96xf32> to vector<16x8xf32>
    %75 = vector.shape_cast %74 : vector<16x8xf32> to vector<2x8x8xf32>
    %76 = vector.extract_strided_slice %36 {offsets = [0, 72], sizes = [16, 8], strides = [1, 1]} : vector<16x96xf32> to vector<16x8xf32>
    %77 = vector.shape_cast %76 : vector<16x8xf32> to vector<2x8x8xf32>
    %78 = arith.truncf %73 : vector<2x8x8xf32> to vector<2x8x8xbf16>
    %79 = arith.truncf %75 : vector<2x8x8xf32> to vector<2x8x8xbf16>
    "tpu.trace_start"() <{level = 10 : i32, message = "bqd,bkd->bqk"}> : () -> ()
    %cst_29 = arith.constant dense<0.000000e+00> : vector<2x8x8xf32>
    %80 = tpu.matmul %78, %79, %cst_29 {dimension_numbers = #tpu.dot_dimension_numbers<[2], [2], [1], [1], [0, 0, 0, 1, 1, 1], [0], [0]>} : vector<2x8x8xbf16>, vector<2x8x8xbf16>, vector<2x8x8xf32> -> vector<2x8x8xf32>
    "tpu.trace_stop"() : () -> ()
    %cst_30 = arith.constant 0.353553385 : f32
    %81 = vector.broadcast %cst_30 : f32 to vector<2x8x8xf32>
    %82 = arith.mulf %80, %81 : vector<2x8x8xf32>
    %83 = vector.broadcast %0 : vector<2x1x8xf32> to vector<2x8x8xf32>
    %84 = arith.addf %82, %83 : vector<2x8x8xf32>
    %cst_31 = arith.constant dense<0xFF800000> : vector<2x8xf32>
    %85 = vector.multi_reduction <maximumf>, %84, %cst_31 [2] : vector<2x8x8xf32> to vector<2x8xf32>
    %86 = vector.shape_cast %85 : vector<2x8xf32> to vector<2x8x1xf32>
    %87 = vector.broadcast %86 : vector<2x8x1xf32> to vector<2x8x8xf32>
    %88 = arith.subf %84, %87 : vector<2x8x8xf32>
    %89 = math.exp %88 : vector<2x8x8xf32>
    %cst_32 = arith.constant dense<0.000000e+00> : vector<2x8xf32>
    %90 = vector.multi_reduction <add>, %89, %cst_32 [2] : vector<2x8x8xf32> to vector<2x8xf32>
    %91 = vector.shape_cast %90 : vector<2x8xf32> to vector<2x8x1xf32>
    %92 = tpu.reciprocal %91 {approx = true} : vector<2x8x1xf32> -> vector<2x8x1xf32>
    %93 = vector.broadcast %92 : vector<2x8x1xf32> to vector<2x8x8xf32>
    %94 = arith.mulf %89, %93 : vector<2x8x8xf32>
    %95 = arith.truncf %94 : vector<2x8x8xf32> to vector<2x8x8xbf16>
    %96 = arith.truncf %77 : vector<2x8x8xf32> to vector<2x8x8xbf16>
    "tpu.trace_start"() <{level = 10 : i32, message = "bqk,bkd->bqd"}> : () -> ()
    %cst_33 = arith.constant dense<0.000000e+00> : vector<2x8x8xf32>
    %97 = tpu.matmul %95, %96, %cst_33 {dimension_numbers = #tpu.dot_dimension_numbers<[2], [1], [1], [2], [0, 0, 0, 1, 1, 2], [0], [0]>} : vector<2x8x8xbf16>, vector<2x8x8xbf16>, vector<2x8x8xf32> -> vector<2x8x8xf32>
    "tpu.trace_stop"() : () -> ()
    %98 = vector.shape_cast %97 : vector<2x8x8xf32> to vector<16x8xf32>
    %99 = vector.extract_strided_slice %38 {offsets = [8, 0], sizes = [8, 32], strides = [1, 1]} : vector<32x32xf32> to vector<8x32xf32>
    %100 = arith.truncf %98 : vector<16x8xf32> to vector<16x8xbf16>
    %101 = arith.truncf %99 : vector<8x32xf32> to vector<8x32xbf16>
    %cst_34 = arith.constant dense<0.000000e+00> : vector<16x32xf32>
    %102 = tpu.matmul %100, %101, %cst_34 {dimension_numbers = #tpu.dot_dimension_numbers<[1], [0], [0], [1], [0, 0, 1, 1], [], []>} : vector<16x8xbf16>, vector<8x32xbf16>, vector<16x32xf32> -> vector<16x32xf32>
    %103 = arith.addf %71, %102 : vector<16x32xf32>
    %104 = vector.extract_strided_slice %36 {offsets = [0, 16], sizes = [16, 8], strides = [1, 1]} : vector<16x96xf32> to vector<16x8xf32>
    %105 = vector.shape_cast %104 : vector<16x8xf32> to vector<2x8x8xf32>
    %106 = vector.extract_strided_slice %36 {offsets = [0, 48], sizes = [16, 8], strides = [1, 1]} : vector<16x96xf32> to vector<16x8xf32>
    %107 = vector.shape_cast %106 : vector<16x8xf32> to vector<2x8x8xf32>
    %108 = vector.extract_strided_slice %36 {offsets = [0, 80], sizes = [16, 8], strides = [1, 1]} : vector<16x96xf32> to vector<16x8xf32>
    %109 = vector.shape_cast %108 : vector<16x8xf32> to vector<2x8x8xf32>
    %110 = arith.truncf %105 : vector<2x8x8xf32> to vector<2x8x8xbf16>
    %111 = arith.truncf %107 : vector<2x8x8xf32> to vector<2x8x8xbf16>
    "tpu.trace_start"() <{level = 10 : i32, message = "bqd,bkd->bqk"}> : () -> ()
    %cst_35 = arith.constant dense<0.000000e+00> : vector<2x8x8xf32>
    %112 = tpu.matmul %110, %111, %cst_35 {dimension_numbers = #tpu.dot_dimension_numbers<[2], [2], [1], [1], [0, 0, 0, 1, 1, 1], [0], [0]>} : vector<2x8x8xbf16>, vector<2x8x8xbf16>, vector<2x8x8xf32> -> vector<2x8x8xf32>
    "tpu.trace_stop"() : () -> ()
    %cst_36 = arith.constant 0.353553385 : f32
    %113 = vector.broadcast %cst_36 : f32 to vector<2x8x8xf32>
    %114 = arith.mulf %112, %113 : vector<2x8x8xf32>
    %115 = vector.broadcast %0 : vector<2x1x8xf32> to vector<2x8x8xf32>
    %116 = arith.addf %114, %115 : vector<2x8x8xf32>
    %cst_37 = arith.constant dense<0xFF800000> : vector<2x8xf32>
    %117 = vector.multi_reduction <maximumf>, %116, %cst_37 [2] : vector<2x8x8xf32> to vector<2x8xf32>
    %118 = vector.shape_cast %117 : vector<2x8xf32> to vector<2x8x1xf32>
    %119 = vector.broadcast %118 : vector<2x8x1xf32> to vector<2x8x8xf32>
    %120 = arith.subf %116, %119 : vector<2x8x8xf32>
    %121 = math.exp %120 : vector<2x8x8xf32>
    %cst_38 = arith.constant dense<0.000000e+00> : vector<2x8xf32>
    %122 = vector.multi_reduction <add>, %121, %cst_38 [2] : vector<2x8x8xf32> to vector<2x8xf32>
    %123 = vector.shape_cast %122 : vector<2x8xf32> to vector<2x8x1xf32>
    %124 = tpu.reciprocal %123 {approx = true} : vector<2x8x1xf32> -> vector<2x8x1xf32>
    %125 = vector.broadcast %124 : vector<2x8x1xf32> to vector<2x8x8xf32>
    %126 = arith.mulf %121, %125 : vector<2x8x8xf32>
    %127 = arith.truncf %126 : vector<2x8x8xf32> to vector<2x8x8xbf16>
    %128 = arith.truncf %109 : vector<2x8x8xf32> to vector<2x8x8xbf16>
    "tpu.trace_start"() <{level = 10 : i32, message = "bqk,bkd->bqd"}> : () -> ()
    %cst_39 = arith.constant dense<0.000000e+00> : vector<2x8x8xf32>
    %129 = tpu.matmul %127, %128, %cst_39 {dimension_numbers = #tpu.dot_dimension_numbers<[2], [1], [1], [2], [0, 0, 0, 1, 1, 2], [0], [0]>} : vector<2x8x8xbf16>, vector<2x8x8xbf16>, vector<2x8x8xf32> -> vector<2x8x8xf32>
    "tpu.trace_stop"() : () -> ()
    %130 = vector.shape_cast %129 : vector<2x8x8xf32> to vector<16x8xf32>
    %131 = vector.extract_strided_slice %38 {offsets = [16, 0], sizes = [8, 32], strides = [1, 1]} : vector<32x32xf32> to vector<8x32xf32>
    %132 = arith.truncf %130 : vector<16x8xf32> to vector<16x8xbf16>
    %133 = arith.truncf %131 : vector<8x32xf32> to vector<8x32xbf16>
    %cst_40 = arith.constant dense<0.000000e+00> : vector<16x32xf32>
    %134 = tpu.matmul %132, %133, %cst_40 {dimension_numbers = #tpu.dot_dimension_numbers<[1], [0], [0], [1], [0, 0, 1, 1], [], []>} : vector<16x8xbf16>, vector<8x32xbf16>, vector<16x32xf32> -> vector<16x32xf32>
    %135 = arith.addf %103, %134 : vector<16x32xf32>
    %136 = vector.extract_strided_slice %36 {offsets = [0, 24], sizes = [16, 8], strides = [1, 1]} : vector<16x96xf32> to vector<16x8xf32>
    %137 = vector.shape_cast %136 : vector<16x8xf32> to vector<2x8x8xf32>
    %138 = vector.extract_strided_slice %36 {offsets = [0, 56], sizes = [16, 8], strides = [1, 1]} : vector<16x96xf32> to vector<16x8xf32>
    %139 = vector.shape_cast %138 : vector<16x8xf32> to vector<2x8x8xf32>
    %140 = vector.extract_strided_slice %36 {offsets = [0, 88], sizes = [16, 8], strides = [1, 1]} : vector<16x96xf32> to vector<16x8xf32>
    %141 = vector.shape_cast %140 : vector<16x8xf32> to vector<2x8x8xf32>
    %142 = arith.truncf %137 : vector<2x8x8xf32> to vector<2x8x8xbf16>
    %143 = arith.truncf %139 : vector<2x8x8xf32> to vector<2x8x8xbf16>
    "tpu.trace_start"() <{level = 10 : i32, message = "bqd,bkd->bqk"}> : () -> ()
    %cst_41 = arith.constant dense<0.000000e+00> : vector<2x8x8xf32>
    %144 = tpu.matmul %142, %143, %cst_41 {dimension_numbers = #tpu.dot_dimension_numbers<[2], [2], [1], [1], [0, 0, 0, 1, 1, 1], [0], [0]>} : vector<2x8x8xbf16>, vector<2x8x8xbf16>, vector<2x8x8xf32> -> vector<2x8x8xf32>
    "tpu.trace_stop"() : () -> ()
    %cst_42 = arith.constant 0.353553385 : f32
    %145 = vector.broadcast %cst_42 : f32 to vector<2x8x8xf32>
    %146 = arith.mulf %144, %145 : vector<2x8x8xf32>
    %147 = vector.broadcast %0 : vector<2x1x8xf32> to vector<2x8x8xf32>
    %148 = arith.addf %146, %147 : vector<2x8x8xf32>
    %cst_43 = arith.constant dense<0xFF800000> : vector<2x8xf32>
    %149 = vector.multi_reduction <maximumf>, %148, %cst_43 [2] : vector<2x8x8xf32> to vector<2x8xf32>
    %150 = vector.shape_cast %149 : vector<2x8xf32> to vector<2x8x1xf32>
    %151 = vector.broadcast %150 : vector<2x8x1xf32> to vector<2x8x8xf32>
    %152 = arith.subf %148, %151 : vector<2x8x8xf32>
    %153 = math.exp %152 : vector<2x8x8xf32>
    %cst_44 = arith.constant dense<0.000000e+00> : vector<2x8xf32>
    %154 = vector.multi_reduction <add>, %153, %cst_44 [2] : vector<2x8x8xf32> to vector<2x8xf32>
    %155 = vector.shape_cast %154 : vector<2x8xf32> to vector<2x8x1xf32>
    %156 = tpu.reciprocal %155 {approx = true} : vector<2x8x1xf32> -> vector<2x8x1xf32>
    %157 = vector.broadcast %156 : vector<2x8x1xf32> to vector<2x8x8xf32>
    %158 = arith.mulf %153, %157 : vector<2x8x8xf32>
    %159 = arith.truncf %158 : vector<2x8x8xf32> to vector<2x8x8xbf16>
    %160 = arith.truncf %141 : vector<2x8x8xf32> to vector<2x8x8xbf16>
    "tpu.trace_start"() <{level = 10 : i32, message = "bqk,bkd->bqd"}> : () -> ()
    %cst_45 = arith.constant dense<0.000000e+00> : vector<2x8x8xf32>
    %161 = tpu.matmul %159, %160, %cst_45 {dimension_numbers = #tpu.dot_dimension_numbers<[2], [1], [1], [2], [0, 0, 0, 1, 1, 2], [0], [0]>} : vector<2x8x8xbf16>, vector<2x8x8xbf16>, vector<2x8x8xf32> -> vector<2x8x8xf32>
    "tpu.trace_stop"() : () -> ()
    %162 = vector.shape_cast %161 : vector<2x8x8xf32> to vector<16x8xf32>
    %163 = vector.extract_strided_slice %38 {offsets = [24, 0], sizes = [8, 32], strides = [1, 1]} : vector<32x32xf32> to vector<8x32xf32>
    %164 = arith.truncf %162 : vector<16x8xf32> to vector<16x8xbf16>
    %165 = arith.truncf %163 : vector<8x32xf32> to vector<8x32xbf16>
    %cst_46 = arith.constant dense<0.000000e+00> : vector<16x32xf32>
    %166 = tpu.matmul %164, %165, %cst_46 {dimension_numbers = #tpu.dot_dimension_numbers<[1], [0], [0], [1], [0, 0, 1, 1], [], []>} : vector<16x8xbf16>, vector<8x32xbf16>, vector<16x32xf32> -> vector<16x32xf32>
    %167 = arith.addf %135, %166 : vector<16x32xf32>
    %c0_47 = arith.constant 0 : index
    %c0_48 = arith.constant 0 : index
    %c0_49 = arith.constant 0 : index
    %168 = vector.load %arg8[%c0_47, %c0_48, %c0_49] : memref<2x1x32xf32, #tpu.memory_space<vmem>>, vector<1x1x32xf32>
    %169 = vector.shape_cast %168 : vector<1x1x32xf32> to vector<1x32xf32>
    %170 = vector.broadcast %169 : vector<1x32xf32> to vector<16x32xf32>
    %171 = arith.addf %167, %170 : vector<16x32xf32>
    %172 = arith.addf %171, %27 : vector<16x32xf32>
    %c0_50 = arith.constant 0 : index
    %c0_51 = arith.constant 0 : index
    %c0_52 = arith.constant 0 : index
    %173 = vector.load %arg9[%c0_50, %c0_51, %c0_52] : memref<2x1x32xf32, #tpu.memory_space<vmem>>, vector<1x1x32xf32>
    %174 = vector.shape_cast %173 : vector<1x1x32xf32> to vector<1x32xf32>
    %c0_53 = arith.constant 0 : index
    %c0_54 = arith.constant 0 : index
    %c0_55 = arith.constant 0 : index
    %175 = vector.load %arg10[%c0_53, %c0_54, %c0_55] : memref<2x1x32xf32, #tpu.memory_space<vmem>>, vector<1x1x32xf32>
    %176 = vector.shape_cast %175 : vector<1x1x32xf32> to vector<1x32xf32>
    %cst_56 = arith.constant dense<0.000000e+00> : vector<16xf32>
    %177 = vector.multi_reduction <add>, %172, %cst_56 [1] : vector<16x32xf32> to vector<16xf32>
    %178 = vector.shape_cast %177 : vector<16xf32> to vector<16x1xf32>
    %cst_57 = arith.constant 3.200000e+01 : f32
    %179 = vector.broadcast %cst_57 : f32 to vector<16x1xf32>
    %180 = arith.divf %178, %179 : vector<16x1xf32>
    %181 = vector.broadcast %180 : vector<16x1xf32> to vector<16x32xf32>
    %182 = arith.subf %172, %181 : vector<16x32xf32>
    %183 = vector.broadcast %180 : vector<16x1xf32> to vector<16x32xf32>
    %184 = arith.subf %172, %183 : vector<16x32xf32>
    %185 = arith.mulf %182, %184 : vector<16x32xf32>
    %cst_58 = arith.constant dense<0.000000e+00> : vector<16xf32>
    %186 = vector.multi_reduction <add>, %185, %cst_58 [1] : vector<16x32xf32> to vector<16xf32>
    %187 = vector.shape_cast %186 : vector<16xf32> to vector<16x1xf32>
    %cst_59 = arith.constant 3.200000e+01 : f32
    %188 = vector.broadcast %cst_59 : f32 to vector<16x1xf32>
    %189 = arith.divf %187, %188 : vector<16x1xf32>
    %190 = vector.broadcast %180 : vector<16x1xf32> to vector<16x32xf32>
    %191 = arith.subf %172, %190 : vector<16x32xf32>
    %cst_60 = arith.constant 9.99999996E-13 : f32
    %192 = vector.broadcast %cst_60 : f32 to vector<16x1xf32>
    %193 = arith.addf %189, %192 : vector<16x1xf32>
    %194 = math.rsqrt %193 : vector<16x1xf32>
    %195 = vector.broadcast %194 : vector<16x1xf32> to vector<16x32xf32>
    %196 = arith.mulf %191, %195 : vector<16x32xf32>
    %197 = vector.broadcast %174 : vector<1x32xf32> to vector<16x32xf32>
    %198 = arith.mulf %196, %197 : vector<16x32xf32>
    %199 = vector.broadcast %176 : vector<1x32xf32> to vector<16x32xf32>
    %200 = arith.addf %198, %199 : vector<16x32xf32>
    %c0_61 = arith.constant 0 : index
    %c0_62 = arith.constant 0 : index
    %c0_63 = arith.constant 0 : index
    %201 = vector.load %arg11[%c0_61, %c0_62, %c0_63] : memref<2x32x64xf32, #tpu.memory_space<vmem>>, vector<1x32x64xf32>
    %202 = vector.shape_cast %201 : vector<1x32x64xf32> to vector<32x64xf32>
    %203 = arith.truncf %200 : vector<16x32xf32> to vector<16x32xbf16>
    %204 = arith.truncf %202 : vector<32x64xf32> to vector<32x64xbf16>
    %cst_64 = arith.constant dense<0.000000e+00> : vector<16x64xf32>
    %205 = tpu.matmul %203, %204, %cst_64 {dimension_numbers = #tpu.dot_dimension_numbers<[1], [0], [0], [1], [0, 0, 1, 1], [], []>} : vector<16x32xbf16>, vector<32x64xbf16>, vector<16x64xf32> -> vector<16x64xf32>
    %c0_65 = arith.constant 0 : index
    %c0_66 = arith.constant 0 : index
    %c0_67 = arith.constant 0 : index
    %206 = vector.load %arg12[%c0_65, %c0_66, %c0_67] : memref<2x1x64xf32, #tpu.memory_space<vmem>>, vector<1x1x64xf32>
    %207 = vector.shape_cast %206 : vector<1x1x64xf32> to vector<1x64xf32>
    %208 = vector.broadcast %207 : vector<1x64xf32> to vector<16x64xf32>
    %209 = arith.addf %205, %208 : vector<16x64xf32>
    %cst_68 = arith.constant 5.000000e-01 : f32
    %210 = vector.broadcast %cst_68 : f32 to vector<16x64xf32>
    %211 = arith.mulf %210, %209 : vector<16x64xf32>
    %cst_69 = arith.constant 4.471500e-02 : f32
    %212 = vector.broadcast %cst_69 : f32 to vector<16x64xf32>
    %213 = arith.mulf %212, %209 : vector<16x64xf32>
    %214 = arith.mulf %213, %209 : vector<16x64xf32>
    %215 = arith.mulf %214, %209 : vector<16x64xf32>
    %216 = arith.addf %209, %215 : vector<16x64xf32>
    %cst_70 = arith.constant 0.797884583 : f32
    %217 = vector.broadcast %cst_70 : f32 to vector<16x64xf32>
    %218 = arith.mulf %217, %216 : vector<16x64xf32>
    %219 = math.tanh %218 : vector<16x64xf32>
    %cst_71 = arith.constant 1.000000e+00 : f32
    %220 = vector.broadcast %cst_71 : f32 to vector<16x64xf32>
    %221 = arith.addf %220, %219 : vector<16x64xf32>
    %222 = arith.mulf %211, %221 : vector<16x64xf32>
    %c0_72 = arith.constant 0 : index
    %c0_73 = arith.constant 0 : index
    %c0_74 = arith.constant 0 : index
    %223 = vector.load %arg13[%c0_72, %c0_73, %c0_74] : memref<2x64x32xf32, #tpu.memory_space<vmem>>, vector<1x64x32xf32>
    %224 = vector.shape_cast %223 : vector<1x64x32xf32> to vector<64x32xf32>
    %225 = arith.truncf %222 : vector<16x64xf32> to vector<16x64xbf16>
    %226 = arith.truncf %224 : vector<64x32xf32> to vector<64x32xbf16>
    %cst_75 = arith.constant dense<0.000000e+00> : vector<16x32xf32>
    %227 = tpu.matmul %225, %226, %cst_75 {dimension_numbers = #tpu.dot_dimension_numbers<[1], [0], [0], [1], [0, 0, 1, 1], [], []>} : vector<16x64xbf16>, vector<64x32xbf16>, vector<16x32xf32> -> vector<16x32xf32>
    %c0_76 = arith.constant 0 : index
    %c0_77 = arith.constant 0 : index
    %c0_78 = arith.constant 0 : index
    %228 = vector.load %arg14[%c0_76, %c0_77, %c0_78] : memref<2x1x32xf32, #tpu.memory_space<vmem>>, vector<1x1x32xf32>
    %229 = vector.shape_cast %228 : vector<1x1x32xf32> to vector<1x32xf32>
    %230 = vector.broadcast %229 : vector<1x32xf32> to vector<16x32xf32>
    %231 = arith.addf %227, %230 : vector<16x32xf32>
    %232 = arith.addf %231, %200 : vector<16x32xf32>
    %c0_79 = arith.constant 0 : index
    %c0_80 = arith.constant 0 : index
    %c0_81 = arith.constant 0 : index
    %233 = vector.load %arg15[%c0_79, %c0_80, %c0_81] : memref<2x1x32xf32, #tpu.memory_space<vmem>>, vector<1x1x32xf32>
    %234 = vector.shape_cast %233 : vector<1x1x32xf32> to vector<1x32xf32>
    %c0_82 = arith.constant 0 : index
    %c0_83 = arith.constant 0 : index
    %c0_84 = arith.constant 0 : index
    %235 = vector.load %arg16[%c0_82, %c0_83, %c0_84] : memref<2x1x32xf32, #tpu.memory_space<vmem>>, vector<1x1x32xf32>
    %236 = vector.shape_cast %235 : vector<1x1x32xf32> to vector<1x32xf32>
    %cst_85 = arith.constant dense<0.000000e+00> : vector<16xf32>
    %237 = vector.multi_reduction <add>, %232, %cst_85 [1] : vector<16x32xf32> to vector<16xf32>
    %238 = vector.shape_cast %237 : vector<16xf32> to vector<16x1xf32>
    %cst_86 = arith.constant 3.200000e+01 : f32
    %239 = vector.broadcast %cst_86 : f32 to vector<16x1xf32>
    %240 = arith.divf %238, %239 : vector<16x1xf32>
    %241 = vector.broadcast %240 : vector<16x1xf32> to vector<16x32xf32>
    %242 = arith.subf %232, %241 : vector<16x32xf32>
    %243 = vector.broadcast %240 : vector<16x1xf32> to vector<16x32xf32>
    %244 = arith.subf %232, %243 : vector<16x32xf32>
    %245 = arith.mulf %242, %244 : vector<16x32xf32>
    %cst_87 = arith.constant dense<0.000000e+00> : vector<16xf32>
    %246 = vector.multi_reduction <add>, %245, %cst_87 [1] : vector<16x32xf32> to vector<16xf32>
    %247 = vector.shape_cast %246 : vector<16xf32> to vector<16x1xf32>
    %cst_88 = arith.constant 3.200000e+01 : f32
    %248 = vector.broadcast %cst_88 : f32 to vector<16x1xf32>
    %249 = arith.divf %247, %248 : vector<16x1xf32>
    %250 = vector.broadcast %240 : vector<16x1xf32> to vector<16x32xf32>
    %251 = arith.subf %232, %250 : vector<16x32xf32>
    %cst_89 = arith.constant 9.99999996E-13 : f32
    %252 = vector.broadcast %cst_89 : f32 to vector<16x1xf32>
    %253 = arith.addf %249, %252 : vector<16x1xf32>
    %254 = math.rsqrt %253 : vector<16x1xf32>
    %255 = vector.broadcast %254 : vector<16x1xf32> to vector<16x32xf32>
    %256 = arith.mulf %251, %255 : vector<16x32xf32>
    %257 = vector.broadcast %234 : vector<1x32xf32> to vector<16x32xf32>
    %258 = arith.mulf %256, %257 : vector<16x32xf32>
    %259 = vector.broadcast %236 : vector<1x32xf32> to vector<16x32xf32>
    %260 = arith.addf %258, %259 : vector<16x32xf32>
    %c1 = arith.constant 1 : index
    %c0_90 = arith.constant 0 : index
    %c0_91 = arith.constant 0 : index
    %261 = vector.load %arg5[%c1, %c0_90, %c0_91] : memref<2x32x96xf32, #tpu.memory_space<vmem>>, vector<1x32x96xf32>
    %262 = vector.shape_cast %261 : vector<1x32x96xf32> to vector<32x96xf32>
    %263 = arith.truncf %260 : vector<16x32xf32> to vector<16x32xbf16>
    %264 = arith.truncf %262 : vector<32x96xf32> to vector<32x96xbf16>
    %cst_92 = arith.constant dense<0.000000e+00> : vector<16x96xf32>
    %265 = tpu.matmul %263, %264, %cst_92 {dimension_numbers = #tpu.dot_dimension_numbers<[1], [0], [0], [1], [0, 0, 1, 1], [], []>} : vector<16x32xbf16>, vector<32x96xbf16>, vector<16x96xf32> -> vector<16x96xf32>
    %c1_93 = arith.constant 1 : index
    %c0_94 = arith.constant 0 : index
    %c0_95 = arith.constant 0 : index
    %266 = vector.load %arg6[%c1_93, %c0_94, %c0_95] : memref<2x1x96xf32, #tpu.memory_space<vmem>>, vector<1x1x96xf32>
    %267 = vector.shape_cast %266 : vector<1x1x96xf32> to vector<1x96xf32>
    %268 = vector.broadcast %267 : vector<1x96xf32> to vector<16x96xf32>
    %269 = arith.addf %265, %268 : vector<16x96xf32>
    %c1_96 = arith.constant 1 : index
    %c0_97 = arith.constant 0 : index
    %c0_98 = arith.constant 0 : index
    %270 = vector.load %arg7[%c1_96, %c0_97, %c0_98] : memref<2x32x32xf32, #tpu.memory_space<vmem>>, vector<1x32x32xf32>
    %271 = vector.shape_cast %270 : vector<1x32x32xf32> to vector<32x32xf32>
    %cst_99 = arith.constant 0.000000e+00 : f32
    %272 = vector.broadcast %cst_99 : f32 to vector<16x32xf32>
    %273 = vector.extract_strided_slice %269 {offsets = [0, 0], sizes = [16, 8], strides = [1, 1]} : vector<16x96xf32> to vector<16x8xf32>
    %274 = vector.shape_cast %273 : vector<16x8xf32> to vector<2x8x8xf32>
    %275 = vector.extract_strided_slice %269 {offsets = [0, 32], sizes = [16, 8], strides = [1, 1]} : vector<16x96xf32> to vector<16x8xf32>
    %276 = vector.shape_cast %275 : vector<16x8xf32> to vector<2x8x8xf32>
    %277 = vector.extract_strided_slice %269 {offsets = [0, 64], sizes = [16, 8], strides = [1, 1]} : vector<16x96xf32> to vector<16x8xf32>
    %278 = vector.shape_cast %277 : vector<16x8xf32> to vector<2x8x8xf32>
    %279 = arith.truncf %274 : vector<2x8x8xf32> to vector<2x8x8xbf16>
    %280 = arith.truncf %276 : vector<2x8x8xf32> to vector<2x8x8xbf16>
    "tpu.trace_start"() <{level = 10 : i32, message = "bqd,bkd->bqk"}> : () -> ()
    %cst_100 = arith.constant dense<0.000000e+00> : vector<2x8x8xf32>
    %281 = tpu.matmul %279, %280, %cst_100 {dimension_numbers = #tpu.dot_dimension_numbers<[2], [2], [1], [1], [0, 0, 0, 1, 1, 1], [0], [0]>} : vector<2x8x8xbf16>, vector<2x8x8xbf16>, vector<2x8x8xf32> -> vector<2x8x8xf32>
    "tpu.trace_stop"() : () -> ()
    %cst_101 = arith.constant 0.353553385 : f32
    %282 = vector.broadcast %cst_101 : f32 to vector<2x8x8xf32>
    %283 = arith.mulf %281, %282 : vector<2x8x8xf32>
    %284 = vector.broadcast %0 : vector<2x1x8xf32> to vector<2x8x8xf32>
    %285 = arith.addf %283, %284 : vector<2x8x8xf32>
    %cst_102 = arith.constant dense<0xFF800000> : vector<2x8xf32>
    %286 = vector.multi_reduction <maximumf>, %285, %cst_102 [2] : vector<2x8x8xf32> to vector<2x8xf32>
    %287 = vector.shape_cast %286 : vector<2x8xf32> to vector<2x8x1xf32>
    %288 = vector.broadcast %287 : vector<2x8x1xf32> to vector<2x8x8xf32>
    %289 = arith.subf %285, %288 : vector<2x8x8xf32>
    %290 = math.exp %289 : vector<2x8x8xf32>
    %cst_103 = arith.constant dense<0.000000e+00> : vector<2x8xf32>
    %291 = vector.multi_reduction <add>, %290, %cst_103 [2] : vector<2x8x8xf32> to vector<2x8xf32>
    %292 = vector.shape_cast %291 : vector<2x8xf32> to vector<2x8x1xf32>
    %293 = tpu.reciprocal %292 {approx = true} : vector<2x8x1xf32> -> vector<2x8x1xf32>
    %294 = vector.broadcast %293 : vector<2x8x1xf32> to vector<2x8x8xf32>
    %295 = arith.mulf %290, %294 : vector<2x8x8xf32>
    %296 = arith.truncf %295 : vector<2x8x8xf32> to vector<2x8x8xbf16>
    %297 = arith.truncf %278 : vector<2x8x8xf32> to vector<2x8x8xbf16>
    "tpu.trace_start"() <{level = 10 : i32, message = "bqk,bkd->bqd"}> : () -> ()
    %cst_104 = arith.constant dense<0.000000e+00> : vector<2x8x8xf32>
    %298 = tpu.matmul %296, %297, %cst_104 {dimension_numbers = #tpu.dot_dimension_numbers<[2], [1], [1], [2], [0, 0, 0, 1, 1, 2], [0], [0]>} : vector<2x8x8xbf16>, vector<2x8x8xbf16>, vector<2x8x8xf32> -> vector<2x8x8xf32>
    "tpu.trace_stop"() : () -> ()
    %299 = vector.shape_cast %298 : vector<2x8x8xf32> to vector<16x8xf32>
    %300 = vector.extract_strided_slice %271 {offsets = [0, 0], sizes = [8, 32], strides = [1, 1]} : vector<32x32xf32> to vector<8x32xf32>
    %301 = arith.truncf %299 : vector<16x8xf32> to vector<16x8xbf16>
    %302 = arith.truncf %300 : vector<8x32xf32> to vector<8x32xbf16>
    %cst_105 = arith.constant dense<0.000000e+00> : vector<16x32xf32>
    %303 = tpu.matmul %301, %302, %cst_105 {dimension_numbers = #tpu.dot_dimension_numbers<[1], [0], [0], [1], [0, 0, 1, 1], [], []>} : vector<16x8xbf16>, vector<8x32xbf16>, vector<16x32xf32> -> vector<16x32xf32>
    %304 = arith.addf %272, %303 : vector<16x32xf32>
    %305 = vector.extract_strided_slice %269 {offsets = [0, 8], sizes = [16, 8], strides = [1, 1]} : vector<16x96xf32> to vector<16x8xf32>
    %306 = vector.shape_cast %305 : vector<16x8xf32> to vector<2x8x8xf32>
    %307 = vector.extract_strided_slice %269 {offsets = [0, 40], sizes = [16, 8], strides = [1, 1]} : vector<16x96xf32> to vector<16x8xf32>
    %308 = vector.shape_cast %307 : vector<16x8xf32> to vector<2x8x8xf32>
    %309 = vector.extract_strided_slice %269 {offsets = [0, 72], sizes = [16, 8], strides = [1, 1]} : vector<16x96xf32> to vector<16x8xf32>
    %310 = vector.shape_cast %309 : vector<16x8xf32> to vector<2x8x8xf32>
    %311 = arith.truncf %306 : vector<2x8x8xf32> to vector<2x8x8xbf16>
    %312 = arith.truncf %308 : vector<2x8x8xf32> to vector<2x8x8xbf16>
    "tpu.trace_start"() <{level = 10 : i32, message = "bqd,bkd->bqk"}> : () -> ()
    %cst_106 = arith.constant dense<0.000000e+00> : vector<2x8x8xf32>
    %313 = tpu.matmul %311, %312, %cst_106 {dimension_numbers = #tpu.dot_dimension_numbers<[2], [2], [1], [1], [0, 0, 0, 1, 1, 1], [0], [0]>} : vector<2x8x8xbf16>, vector<2x8x8xbf16>, vector<2x8x8xf32> -> vector<2x8x8xf32>
    "tpu.trace_stop"() : () -> ()
    %cst_107 = arith.constant 0.353553385 : f32
    %314 = vector.broadcast %cst_107 : f32 to vector<2x8x8xf32>
    %315 = arith.mulf %313, %314 : vector<2x8x8xf32>
    %316 = vector.broadcast %0 : vector<2x1x8xf32> to vector<2x8x8xf32>
    %317 = arith.addf %315, %316 : vector<2x8x8xf32>
    %cst_108 = arith.constant dense<0xFF800000> : vector<2x8xf32>
    %318 = vector.multi_reduction <maximumf>, %317, %cst_108 [2] : vector<2x8x8xf32> to vector<2x8xf32>
    %319 = vector.shape_cast %318 : vector<2x8xf32> to vector<2x8x1xf32>
    %320 = vector.broadcast %319 : vector<2x8x1xf32> to vector<2x8x8xf32>
    %321 = arith.subf %317, %320 : vector<2x8x8xf32>
    %322 = math.exp %321 : vector<2x8x8xf32>
    %cst_109 = arith.constant dense<0.000000e+00> : vector<2x8xf32>
    %323 = vector.multi_reduction <add>, %322, %cst_109 [2] : vector<2x8x8xf32> to vector<2x8xf32>
    %324 = vector.shape_cast %323 : vector<2x8xf32> to vector<2x8x1xf32>
    %325 = tpu.reciprocal %324 {approx = true} : vector<2x8x1xf32> -> vector<2x8x1xf32>
    %326 = vector.broadcast %325 : vector<2x8x1xf32> to vector<2x8x8xf32>
    %327 = arith.mulf %322, %326 : vector<2x8x8xf32>
    %328 = arith.truncf %327 : vector<2x8x8xf32> to vector<2x8x8xbf16>
    %329 = arith.truncf %310 : vector<2x8x8xf32> to vector<2x8x8xbf16>
    "tpu.trace_start"() <{level = 10 : i32, message = "bqk,bkd->bqd"}> : () -> ()
    %cst_110 = arith.constant dense<0.000000e+00> : vector<2x8x8xf32>
    %330 = tpu.matmul %328, %329, %cst_110 {dimension_numbers = #tpu.dot_dimension_numbers<[2], [1], [1], [2], [0, 0, 0, 1, 1, 2], [0], [0]>} : vector<2x8x8xbf16>, vector<2x8x8xbf16>, vector<2x8x8xf32> -> vector<2x8x8xf32>
    "tpu.trace_stop"() : () -> ()
    %331 = vector.shape_cast %330 : vector<2x8x8xf32> to vector<16x8xf32>
    %332 = vector.extract_strided_slice %271 {offsets = [8, 0], sizes = [8, 32], strides = [1, 1]} : vector<32x32xf32> to vector<8x32xf32>
    %333 = arith.truncf %331 : vector<16x8xf32> to vector<16x8xbf16>
    %334 = arith.truncf %332 : vector<8x32xf32> to vector<8x32xbf16>
    %cst_111 = arith.constant dense<0.000000e+00> : vector<16x32xf32>
    %335 = tpu.matmul %333, %334, %cst_111 {dimension_numbers = #tpu.dot_dimension_numbers<[1], [0], [0], [1], [0, 0, 1, 1], [], []>} : vector<16x8xbf16>, vector<8x32xbf16>, vector<16x32xf32> -> vector<16x32xf32>
    %336 = arith.addf %304, %335 : vector<16x32xf32>
    %337 = vector.extract_strided_slice %269 {offsets = [0, 16], sizes = [16, 8], strides = [1, 1]} : vector<16x96xf32> to vector<16x8xf32>
    %338 = vector.shape_cast %337 : vector<16x8xf32> to vector<2x8x8xf32>
    %339 = vector.extract_strided_slice %269 {offsets = [0, 48], sizes = [16, 8], strides = [1, 1]} : vector<16x96xf32> to vector<16x8xf32>
    %340 = vector.shape_cast %339 : vector<16x8xf32> to vector<2x8x8xf32>
    %341 = vector.extract_strided_slice %269 {offsets = [0, 80], sizes = [16, 8], strides = [1, 1]} : vector<16x96xf32> to vector<16x8xf32>
    %342 = vector.shape_cast %341 : vector<16x8xf32> to vector<2x8x8xf32>
    %343 = arith.truncf %338 : vector<2x8x8xf32> to vector<2x8x8xbf16>
    %344 = arith.truncf %340 : vector<2x8x8xf32> to vector<2x8x8xbf16>
    "tpu.trace_start"() <{level = 10 : i32, message = "bqd,bkd->bqk"}> : () -> ()
    %cst_112 = arith.constant dense<0.000000e+00> : vector<2x8x8xf32>
    %345 = tpu.matmul %343, %344, %cst_112 {dimension_numbers = #tpu.dot_dimension_numbers<[2], [2], [1], [1], [0, 0, 0, 1, 1, 1], [0], [0]>} : vector<2x8x8xbf16>, vector<2x8x8xbf16>, vector<2x8x8xf32> -> vector<2x8x8xf32>
    "tpu.trace_stop"() : () -> ()
    %cst_113 = arith.constant 0.353553385 : f32
    %346 = vector.broadcast %cst_113 : f32 to vector<2x8x8xf32>
    %347 = arith.mulf %345, %346 : vector<2x8x8xf32>
    %348 = vector.broadcast %0 : vector<2x1x8xf32> to vector<2x8x8xf32>
    %349 = arith.addf %347, %348 : vector<2x8x8xf32>
    %cst_114 = arith.constant dense<0xFF800000> : vector<2x8xf32>
    %350 = vector.multi_reduction <maximumf>, %349, %cst_114 [2] : vector<2x8x8xf32> to vector<2x8xf32>
    %351 = vector.shape_cast %350 : vector<2x8xf32> to vector<2x8x1xf32>
    %352 = vector.broadcast %351 : vector<2x8x1xf32> to vector<2x8x8xf32>
    %353 = arith.subf %349, %352 : vector<2x8x8xf32>
    %354 = math.exp %353 : vector<2x8x8xf32>
    %cst_115 = arith.constant dense<0.000000e+00> : vector<2x8xf32>
    %355 = vector.multi_reduction <add>, %354, %cst_115 [2] : vector<2x8x8xf32> to vector<2x8xf32>
    %356 = vector.shape_cast %355 : vector<2x8xf32> to vector<2x8x1xf32>
    %357 = tpu.reciprocal %356 {approx = true} : vector<2x8x1xf32> -> vector<2x8x1xf32>
    %358 = vector.broadcast %357 : vector<2x8x1xf32> to vector<2x8x8xf32>
    %359 = arith.mulf %354, %358 : vector<2x8x8xf32>
    %360 = arith.truncf %359 : vector<2x8x8xf32> to vector<2x8x8xbf16>
    %361 = arith.truncf %342 : vector<2x8x8xf32> to vector<2x8x8xbf16>
    "tpu.trace_start"() <{level = 10 : i32, message = "bqk,bkd->bqd"}> : () -> ()
    %cst_116 = arith.constant dense<0.000000e+00> : vector<2x8x8xf32>
    %362 = tpu.matmul %360, %361, %cst_116 {dimension_numbers = #tpu.dot_dimension_numbers<[2], [1], [1], [2], [0, 0, 0, 1, 1, 2], [0], [0]>} : vector<2x8x8xbf16>, vector<2x8x8xbf16>, vector<2x8x8xf32> -> vector<2x8x8xf32>
    "tpu.trace_stop"() : () -> ()
    %363 = vector.shape_cast %362 : vector<2x8x8xf32> to vector<16x8xf32>
    %364 = vector.extract_strided_slice %271 {offsets = [16, 0], sizes = [8, 32], strides = [1, 1]} : vector<32x32xf32> to vector<8x32xf32>
    %365 = arith.truncf %363 : vector<16x8xf32> to vector<16x8xbf16>
    %366 = arith.truncf %364 : vector<8x32xf32> to vector<8x32xbf16>
    %cst_117 = arith.constant dense<0.000000e+00> : vector<16x32xf32>
    %367 = tpu.matmul %365, %366, %cst_117 {dimension_numbers = #tpu.dot_dimension_numbers<[1], [0], [0], [1], [0, 0, 1, 1], [], []>} : vector<16x8xbf16>, vector<8x32xbf16>, vector<16x32xf32> -> vector<16x32xf32>
    %368 = arith.addf %336, %367 : vector<16x32xf32>
    %369 = vector.extract_strided_slice %269 {offsets = [0, 24], sizes = [16, 8], strides = [1, 1]} : vector<16x96xf32> to vector<16x8xf32>
    %370 = vector.shape_cast %369 : vector<16x8xf32> to vector<2x8x8xf32>
    %371 = vector.extract_strided_slice %269 {offsets = [0, 56], sizes = [16, 8], strides = [1, 1]} : vector<16x96xf32> to vector<16x8xf32>
    %372 = vector.shape_cast %371 : vector<16x8xf32> to vector<2x8x8xf32>
    %373 = vector.extract_strided_slice %269 {offsets = [0, 88], sizes = [16, 8], strides = [1, 1]} : vector<16x96xf32> to vector<16x8xf32>
    %374 = vector.shape_cast %373 : vector<16x8xf32> to vector<2x8x8xf32>
    %375 = arith.truncf %370 : vector<2x8x8xf32> to vector<2x8x8xbf16>
    %376 = arith.truncf %372 : vector<2x8x8xf32> to vector<2x8x8xbf16>
    "tpu.trace_start"() <{level = 10 : i32, message = "bqd,bkd->bqk"}> : () -> ()
    %cst_118 = arith.constant dense<0.000000e+00> : vector<2x8x8xf32>
    %377 = tpu.matmul %375, %376, %cst_118 {dimension_numbers = #tpu.dot_dimension_numbers<[2], [2], [1], [1], [0, 0, 0, 1, 1, 1], [0], [0]>} : vector<2x8x8xbf16>, vector<2x8x8xbf16>, vector<2x8x8xf32> -> vector<2x8x8xf32>
    "tpu.trace_stop"() : () -> ()
    %cst_119 = arith.constant 0.353553385 : f32
    %378 = vector.broadcast %cst_119 : f32 to vector<2x8x8xf32>
    %379 = arith.mulf %377, %378 : vector<2x8x8xf32>
    %380 = vector.broadcast %0 : vector<2x1x8xf32> to vector<2x8x8xf32>
    %381 = arith.addf %379, %380 : vector<2x8x8xf32>
    %cst_120 = arith.constant dense<0xFF800000> : vector<2x8xf32>
    %382 = vector.multi_reduction <maximumf>, %381, %cst_120 [2] : vector<2x8x8xf32> to vector<2x8xf32>
    %383 = vector.shape_cast %382 : vector<2x8xf32> to vector<2x8x1xf32>
    %384 = vector.broadcast %383 : vector<2x8x1xf32> to vector<2x8x8xf32>
    %385 = arith.subf %381, %384 : vector<2x8x8xf32>
    %386 = math.exp %385 : vector<2x8x8xf32>
    %cst_121 = arith.constant dense<0.000000e+00> : vector<2x8xf32>
    %387 = vector.multi_reduction <add>, %386, %cst_121 [2] : vector<2x8x8xf32> to vector<2x8xf32>
    %388 = vector.shape_cast %387 : vector<2x8xf32> to vector<2x8x1xf32>
    %389 = tpu.reciprocal %388 {approx = true} : vector<2x8x1xf32> -> vector<2x8x1xf32>
    %390 = vector.broadcast %389 : vector<2x8x1xf32> to vector<2x8x8xf32>
    %391 = arith.mulf %386, %390 : vector<2x8x8xf32>
    %392 = arith.truncf %391 : vector<2x8x8xf32> to vector<2x8x8xbf16>
    %393 = arith.truncf %374 : vector<2x8x8xf32> to vector<2x8x8xbf16>
    "tpu.trace_start"() <{level = 10 : i32, message = "bqk,bkd->bqd"}> : () -> ()
    %cst_122 = arith.constant dense<0.000000e+00> : vector<2x8x8xf32>
    %394 = tpu.matmul %392, %393, %cst_122 {dimension_numbers = #tpu.dot_dimension_numbers<[2], [1], [1], [2], [0, 0, 0, 1, 1, 2], [0], [0]>} : vector<2x8x8xbf16>, vector<2x8x8xbf16>, vector<2x8x8xf32> -> vector<2x8x8xf32>
    "tpu.trace_stop"() : () -> ()
    %395 = vector.shape_cast %394 : vector<2x8x8xf32> to vector<16x8xf32>
    %396 = vector.extract_strided_slice %271 {offsets = [24, 0], sizes = [8, 32], strides = [1, 1]} : vector<32x32xf32> to vector<8x32xf32>
    %397 = arith.truncf %395 : vector<16x8xf32> to vector<16x8xbf16>
    %398 = arith.truncf %396 : vector<8x32xf32> to vector<8x32xbf16>
    %cst_123 = arith.constant dense<0.000000e+00> : vector<16x32xf32>
    %399 = tpu.matmul %397, %398, %cst_123 {dimension_numbers = #tpu.dot_dimension_numbers<[1], [0], [0], [1], [0, 0, 1, 1], [], []>} : vector<16x8xbf16>, vector<8x32xbf16>, vector<16x32xf32> -> vector<16x32xf32>
    %400 = arith.addf %368, %399 : vector<16x32xf32>
    %c1_124 = arith.constant 1 : index
    %c0_125 = arith.constant 0 : index
    %c0_126 = arith.constant 0 : index
    %401 = vector.load %arg8[%c1_124, %c0_125, %c0_126] : memref<2x1x32xf32, #tpu.memory_space<vmem>>, vector<1x1x32xf32>
    %402 = vector.shape_cast %401 : vector<1x1x32xf32> to vector<1x32xf32>
    %403 = vector.broadcast %402 : vector<1x32xf32> to vector<16x32xf32>
    %404 = arith.addf %400, %403 : vector<16x32xf32>
    %405 = arith.addf %404, %260 : vector<16x32xf32>
    %c1_127 = arith.constant 1 : index
    %c0_128 = arith.constant 0 : index
    %c0_129 = arith.constant 0 : index
    %406 = vector.load %arg9[%c1_127, %c0_128, %c0_129] : memref<2x1x32xf32, #tpu.memory_space<vmem>>, vector<1x1x32xf32>
    %407 = vector.shape_cast %406 : vector<1x1x32xf32> to vector<1x32xf32>
    %c1_130 = arith.constant 1 : index
    %c0_131 = arith.constant 0 : index
    %c0_132 = arith.constant 0 : index
    %408 = vector.load %arg10[%c1_130, %c0_131, %c0_132] : memref<2x1x32xf32, #tpu.memory_space<vmem>>, vector<1x1x32xf32>
    %409 = vector.shape_cast %408 : vector<1x1x32xf32> to vector<1x32xf32>
    %cst_133 = arith.constant dense<0.000000e+00> : vector<16xf32>
    %410 = vector.multi_reduction <add>, %405, %cst_133 [1] : vector<16x32xf32> to vector<16xf32>
    %411 = vector.shape_cast %410 : vector<16xf32> to vector<16x1xf32>
    %cst_134 = arith.constant 3.200000e+01 : f32
    %412 = vector.broadcast %cst_134 : f32 to vector<16x1xf32>
    %413 = arith.divf %411, %412 : vector<16x1xf32>
    %414 = vector.broadcast %413 : vector<16x1xf32> to vector<16x32xf32>
    %415 = arith.subf %405, %414 : vector<16x32xf32>
    %416 = vector.broadcast %413 : vector<16x1xf32> to vector<16x32xf32>
    %417 = arith.subf %405, %416 : vector<16x32xf32>
    %418 = arith.mulf %415, %417 : vector<16x32xf32>
    %cst_135 = arith.constant dense<0.000000e+00> : vector<16xf32>
    %419 = vector.multi_reduction <add>, %418, %cst_135 [1] : vector<16x32xf32> to vector<16xf32>
    %420 = vector.shape_cast %419 : vector<16xf32> to vector<16x1xf32>
    %cst_136 = arith.constant 3.200000e+01 : f32
    %421 = vector.broadcast %cst_136 : f32 to vector<16x1xf32>
    %422 = arith.divf %420, %421 : vector<16x1xf32>
    %423 = vector.broadcast %413 : vector<16x1xf32> to vector<16x32xf32>
    %424 = arith.subf %405, %423 : vector<16x32xf32>
    %cst_137 = arith.constant 9.99999996E-13 : f32
    %425 = vector.broadcast %cst_137 : f32 to vector<16x1xf32>
    %426 = arith.addf %422, %425 : vector<16x1xf32>
    %427 = math.rsqrt %426 : vector<16x1xf32>
    %428 = vector.broadcast %427 : vector<16x1xf32> to vector<16x32xf32>
    %429 = arith.mulf %424, %428 : vector<16x32xf32>
    %430 = vector.broadcast %407 : vector<1x32xf32> to vector<16x32xf32>
    %431 = arith.mulf %429, %430 : vector<16x32xf32>
    %432 = vector.broadcast %409 : vector<1x32xf32> to vector<16x32xf32>
    %433 = arith.addf %431, %432 : vector<16x32xf32>
    %c1_138 = arith.constant 1 : index
    %c0_139 = arith.constant 0 : index
    %c0_140 = arith.constant 0 : index
    %434 = vector.load %arg11[%c1_138, %c0_139, %c0_140] : memref<2x32x64xf32, #tpu.memory_space<vmem>>, vector<1x32x64xf32>
    %435 = vector.shape_cast %434 : vector<1x32x64xf32> to vector<32x64xf32>
    %436 = arith.truncf %433 : vector<16x32xf32> to vector<16x32xbf16>
    %437 = arith.truncf %435 : vector<32x64xf32> to vector<32x64xbf16>
    %cst_141 = arith.constant dense<0.000000e+00> : vector<16x64xf32>
    %438 = tpu.matmul %436, %437, %cst_141 {dimension_numbers = #tpu.dot_dimension_numbers<[1], [0], [0], [1], [0, 0, 1, 1], [], []>} : vector<16x32xbf16>, vector<32x64xbf16>, vector<16x64xf32> -> vector<16x64xf32>
    %c1_142 = arith.constant 1 : index
    %c0_143 = arith.constant 0 : index
    %c0_144 = arith.constant 0 : index
    %439 = vector.load %arg12[%c1_142, %c0_143, %c0_144] : memref<2x1x64xf32, #tpu.memory_space<vmem>>, vector<1x1x64xf32>
    %440 = vector.shape_cast %439 : vector<1x1x64xf32> to vector<1x64xf32>
    %441 = vector.broadcast %440 : vector<1x64xf32> to vector<16x64xf32>
    %442 = arith.addf %438, %441 : vector<16x64xf32>
    %cst_145 = arith.constant 5.000000e-01 : f32
    %443 = vector.broadcast %cst_145 : f32 to vector<16x64xf32>
    %444 = arith.mulf %443, %442 : vector<16x64xf32>
    %cst_146 = arith.constant 4.471500e-02 : f32
    %445 = vector.broadcast %cst_146 : f32 to vector<16x64xf32>
    %446 = arith.mulf %445, %442 : vector<16x64xf32>
    %447 = arith.mulf %446, %442 : vector<16x64xf32>
    %448 = arith.mulf %447, %442 : vector<16x64xf32>
    %449 = arith.addf %442, %448 : vector<16x64xf32>
    %cst_147 = arith.constant 0.797884583 : f32
    %450 = vector.broadcast %cst_147 : f32 to vector<16x64xf32>
    %451 = arith.mulf %450, %449 : vector<16x64xf32>
    %452 = math.tanh %451 : vector<16x64xf32>
    %cst_148 = arith.constant 1.000000e+00 : f32
    %453 = vector.broadcast %cst_148 : f32 to vector<16x64xf32>
    %454 = arith.addf %453, %452 : vector<16x64xf32>
    %455 = arith.mulf %444, %454 : vector<16x64xf32>
    %c1_149 = arith.constant 1 : index
    %c0_150 = arith.constant 0 : index
    %c0_151 = arith.constant 0 : index
    %456 = vector.load %arg13[%c1_149, %c0_150, %c0_151] : memref<2x64x32xf32, #tpu.memory_space<vmem>>, vector<1x64x32xf32>
    %457 = vector.shape_cast %456 : vector<1x64x32xf32> to vector<64x32xf32>
    %458 = arith.truncf %455 : vector<16x64xf32> to vector<16x64xbf16>
    %459 = arith.truncf %457 : vector<64x32xf32> to vector<64x32xbf16>
    %cst_152 = arith.constant dense<0.000000e+00> : vector<16x32xf32>
    %460 = tpu.matmul %458, %459, %cst_152 {dimension_numbers = #tpu.dot_dimension_numbers<[1], [0], [0], [1], [0, 0, 1, 1], [], []>} : vector<16x64xbf16>, vector<64x32xbf16>, vector<16x32xf32> -> vector<16x32xf32>
    %c1_153 = arith.constant 1 : index
    %c0_154 = arith.constant 0 : index
    %c0_155 = arith.constant 0 : index
    %461 = vector.load %arg14[%c1_153, %c0_154, %c0_155] : memref<2x1x32xf32, #tpu.memory_space<vmem>>, vector<1x1x32xf32>
    %462 = vector.shape_cast %461 : vector<1x1x32xf32> to vector<1x32xf32>
    %463 = vector.broadcast %462 : vector<1x32xf32> to vector<16x32xf32>
    %464 = arith.addf %460, %463 : vector<16x32xf32>
    %465 = arith.addf %464, %433 : vector<16x32xf32>
    %c1_156 = arith.constant 1 : index
    %c0_157 = arith.constant 0 : index
    %c0_158 = arith.constant 0 : index
    %466 = vector.load %arg15[%c1_156, %c0_157, %c0_158] : memref<2x1x32xf32, #tpu.memory_space<vmem>>, vector<1x1x32xf32>
    %467 = vector.shape_cast %466 : vector<1x1x32xf32> to vector<1x32xf32>
    %c1_159 = arith.constant 1 : index
    %c0_160 = arith.constant 0 : index
    %c0_161 = arith.constant 0 : index
    %468 = vector.load %arg16[%c1_159, %c0_160, %c0_161] : memref<2x1x32xf32, #tpu.memory_space<vmem>>, vector<1x1x32xf32>
    %469 = vector.shape_cast %468 : vector<1x1x32xf32> to vector<1x32xf32>
    %cst_162 = arith.constant dense<0.000000e+00> : vector<16xf32>
    %470 = vector.multi_reduction <add>, %465, %cst_162 [1] : vector<16x32xf32> to vector<16xf32>
    %471 = vector.shape_cast %470 : vector<16xf32> to vector<16x1xf32>
    %cst_163 = arith.constant 3.200000e+01 : f32
    %472 = vector.broadcast %cst_163 : f32 to vector<16x1xf32>
    %473 = arith.divf %471, %472 : vector<16x1xf32>
    %474 = vector.broadcast %473 : vector<16x1xf32> to vector<16x32xf32>
    %475 = arith.subf %465, %474 : vector<16x32xf32>
    %476 = vector.broadcast %473 : vector<16x1xf32> to vector<16x32xf32>
    %477 = arith.subf %465, %476 : vector<16x32xf32>
    %478 = arith.mulf %475, %477 : vector<16x32xf32>
    %cst_164 = arith.constant dense<0.000000e+00> : vector<16xf32>
    %479 = vector.multi_reduction <add>, %478, %cst_164 [1] : vector<16x32xf32> to vector<16xf32>
    %480 = vector.shape_cast %479 : vector<16xf32> to vector<16x1xf32>
    %cst_165 = arith.constant 3.200000e+01 : f32
    %481 = vector.broadcast %cst_165 : f32 to vector<16x1xf32>
    %482 = arith.divf %480, %481 : vector<16x1xf32>
    %483 = vector.broadcast %473 : vector<16x1xf32> to vector<16x32xf32>
    %484 = arith.subf %465, %483 : vector<16x32xf32>
    %cst_166 = arith.constant 9.99999996E-13 : f32
    %485 = vector.broadcast %cst_166 : f32 to vector<16x1xf32>
    %486 = arith.addf %482, %485 : vector<16x1xf32>
    %487 = math.rsqrt %486 : vector<16x1xf32>
    %488 = vector.broadcast %487 : vector<16x1xf32> to vector<16x32xf32>
    %489 = arith.mulf %484, %488 : vector<16x32xf32>
    %490 = vector.broadcast %467 : vector<1x32xf32> to vector<16x32xf32>
    %491 = arith.mulf %489, %490 : vector<16x32xf32>
    %492 = vector.broadcast %469 : vector<1x32xf32> to vector<16x32xf32>
    %493 = arith.addf %491, %492 : vector<16x32xf32>
    %c0_167 = arith.constant 0 : index
    %c0_168 = arith.constant 0 : index
    %494 = vector.load %arg17[%c0_167, %c0_168] : memref<32x128xf32, #tpu.memory_space<vmem>>, vector<32x128xf32>
    %495 = arith.truncf %493 : vector<16x32xf32> to vector<16x32xbf16>
    %496 = arith.truncf %494 : vector<32x128xf32> to vector<32x128xbf16>
    %cst_169 = arith.constant dense<0.000000e+00> : vector<16x128xf32>
    %497 = tpu.matmul %495, %496, %cst_169 {dimension_numbers = #tpu.dot_dimension_numbers<[1], [0], [0], [1], [0, 0, 1, 1], [], []>} : vector<16x32xbf16>, vector<32x128xbf16>, vector<16x128xf32> -> vector<16x128xf32>
    %c0_170 = arith.constant 0 : index
    %c0_171 = arith.constant 0 : index
    %498 = vector.load %arg18[%c0_170, %c0_171] : memref<1x128xf32, #tpu.memory_space<vmem>>, vector<1x128xf32>
    %499 = vector.broadcast %498 : vector<1x128xf32> to vector<16x128xf32>
    %500 = arith.addf %497, %499 : vector<16x128xf32>
    %c0_172 = arith.constant 0 : index
    %c0_173 = arith.constant 0 : index
    %501 = vector.load %arg19[%c0_172, %c0_173] : memref<16x128xf32, #tpu.memory_space<vmem>>, vector<16x128xf32>
    tpu.vector_store %arg19[%c0_172, %c0_173], %500 {strides = array<i32>} : memref<16x128xf32, #tpu.memory_space<vmem>>, vector<16x128xf32>,
    return
  }
  func.func @transform_0(%arg0: i32) -> (i32, i32) {
    %c0_i32 = arith.constant 0 : i32
    %c0_i32_0 = arith.constant 0 : i32
    %c0_i32_1 = arith.constant 0 : i32
    return %c0_i32, %c0_i32_0 : i32, i32
  }
  func.func @transform_1(%arg0: i32) -> (i32, i32, i32) {
    %c0_i32 = arith.constant 0 : i32
    %c0_i32_0 = arith.constant 0 : i32
    %c0_i32_1 = arith.constant 0 : i32
    %c0_i32_2 = arith.constant 0 : i32
    return %c0_i32, %c0_i32_0, %c0_i32_1 : i32, i32, i32
  }
  func.func @transform_2(%arg0: i32) -> (i32, i32) {
    %c0_i32 = arith.constant 0 : i32
    %c0_i32_0 = arith.constant 0 : i32
    %c0_i32_1 = arith.constant 0 : i32
    return %c0_i32, %c0_i32_0 : i32, i32
  }
  func.func @transform_3(%arg0: i32) -> (i32, i32) {
    %c0_i32 = arith.constant 0 : i32
    %c0_i32_0 = arith.constant 0 : i32
    %c0_i32_1 = arith.constant 0 : i32
    return %c0_i32, %c0_i32_0 : i32, i32
  }
  func.func @transform_4(%arg0: i32) -> (i32, i32, i32) {
    %c0_i32 = arith.constant 0 : i32
    %c0_i32_0 = arith.constant 0 : i32
    %c0_i32_1 = arith.constant 0 : i32
    %c0_i32_2 = arith.constant 0 : i32
    return %c0_i32, %c0_i32_0, %c0_i32_1 : i32, i32, i32
  }
  func.func @transform_5(%arg0: i32) -> (i32, i32, i32) {
    %c0_i32 = arith.constant 0 : i32
    %c0_i32_0 = arith.constant 0 : i32
    %c0_i32_1 = arith.constant 0 : i32
    %c0_i32_2 = arith.constant 0 : i32
    return %c0_i32, %c0_i32_0, %c0_i32_1 : i32, i32, i32
  }
  func.func @transform_6(%arg0: i32) -> (i32, i32, i32) {
    %c0_i32 = arith.constant 0 : i32
    %c0_i32_0 = arith.constant 0 : i32
    %c0_i32_1 = arith.constant 0 : i32
    %c0_i32_2 = arith.constant 0 : i32
    return %c0_i32, %c0_i32_0, %c0_i32_1 : i32, i32, i32
  }
  func.func @transform_7(%arg0: i32) -> (i32, i32, i32) {
    %c0_i32 = arith.constant 0 : i32
    %c0_i32_0 = arith.constant 0 : i32
    %c0_i32_1 = arith.constant 0 : i32
    %c0_i32_2 = arith.constant 0 : i32
    return %c0_i32, %c0_i32_0, %c0_i32_1 : i32, i32, i32
  }
  func.func @transform_8(%arg0: i32) -> (i32, i32, i32) {
    %c0_i32 = arith.constant 0 : i32
    %c0_i32_0 = arith.constant 0 : i32
    %c0_i32_1 = arith.constant 0 : i32
    %c0_i32_2 = arith.constant 0 : i32
    return %c0_i32, %c0_i32_0, %c0_i32_1 : i32, i32, i32
  }
  func.func @transform_9(%arg0: i32) -> (i32, i32, i32) {
    %c0_i32 = arith.constant 0 : i32
    %c0_i32_0 = arith.constant 0 : i32
    %c0_i32_1 = arith.constant 0 : i32
    %c0_i32_2 = arith.constant 0 : i32
    return %c0_i32, %c0_i32_0, %c0_i32_1 : i32, i32, i32
  }
  func.func @transform_10(%arg0: i32) -> (i32, i32, i32) {
    %c0_i32 = arith.constant 0 : i32
    %c0_i32_0 = arith.constant 0 : i32
    %c0_i32_1 = arith.constant 0 : i32
    %c0_i32_2 = arith.constant 0 : i32
    return %c0_i32, %c0_i32_0, %c0_i32_1 : i32, i32, i32
  }
  func.func @transform_11(%arg0: i32) -> (i32, i32, i32) {
    %c0_i32 = arith.constant 0 : i32
    %c0_i32_0 = arith.constant 0 : i32
    %c0_i32_1 = arith.constant 0 : i32
    %c0_i32_2 = arith.constant 0 : i32
    return %c0_i32, %c0_i32_0, %c0_i32_1 : i32, i32, i32
  }
  func.func @transform_12(%arg0: i32) -> (i32, i32, i32) {
    %c0_i32 = arith.constant 0 : i32
    %c0_i32_0 = arith.constant 0 : i32
    %c0_i32_1 = arith.constant 0 : i32
    %c0_i32_2 = arith.constant 0 : i32
    return %c0_i32, %c0_i32_0, %c0_i32_1 : i32, i32, i32
  }
  func.func @transform_13(%arg0: i32) -> (i32, i32, i32) {
    %c0_i32 = arith.constant 0 : i32
    %c0_i32_0 = arith.constant 0 : i32
    %c0_i32_1 = arith.constant 0 : i32
    %c0_i32_2 = arith.constant 0 : i32
    return %c0_i32, %c0_i32_0, %c0_i32_1 : i32, i32, i32
  }
  func.func @transform_14(%arg0: i32) -> (i32, i32, i32) {
    %c0_i32 = arith.constant 0 : i32
    %c0_i32_0 = arith.constant 0 : i32
    %c0_i32_1 = arith.constant 0 : i32
    %c0_i32_2 = arith.constant 0 : i32
    return %c0_i32, %c0_i32_0, %c0_i32_1 : i32, i32, i32
  }
  func.func @transform_15(%arg0: i32) -> (i32, i32, i32) {
    %c0_i32 = arith.constant 0 : i32
    %c0_i32_0 = arith.constant 0 : i32
    %c0_i32_1 = arith.constant 0 : i32
    %c0_i32_2 = arith.constant 0 : i32
    return %c0_i32, %c0_i32_0, %c0_i32_1 : i32, i32, i32
  }
  func.func @transform_16(%arg0: i32) -> (i32, i32) {
    %c0_i32 = arith.constant 0 : i32
    %c0_i32_0 = arith.constant 0 : i32
    %c0_i32_1 = arith.constant 0 : i32
    return %c0_i32, %c0_i32_0 : i32, i32
  }
  func.func @transform_17(%arg0: i32) -> (i32, i32) {
    %c0_i32 = arith.constant 0 : i32
    %c0_i32_0 = arith.constant 0 : i32
    %c0_i32_1 = arith.constant 0 : i32
    return %c0_i32, %c0_i32_0 : i32, i32
  }
  func.func @transform_18(%arg0: i32) -> (i32, i32) {
    %c0_i32 = arith.constant 0 : i32
    %c0_i32_0 = arith.constant 0 : i32
    %c0_i32_1 = arith.constant 0 : i32
    return %c0_i32, %c0_i32_0 : i32, i32
  }
}

</mosaic_0001>

<bundles_post_ra>
// kernel: headword_classifier_forward.1
= control target key start
LH: loop header
LB: loop body
LE: loop exit
PB: predicated region body
PF: predicated region fallthrough
CT: control target
= control target key end

     0   :  { %vm66_vm0 = vcmask 261120   ;;  %v3611_v17 = vmov 0.0   ;;  %vm3612_vm1 = vmmov 0   ;;  %vm177_vm2 = vcmask 64512   ;;  %s3614_s23 = smov 64   ;;  %s3615_s24 = smov 88   ;;  %s4410_s0 = inlined_call_operand.vmem [shape: f32[16,32], index: 0, kind: input, shape index: {}]   ;;  %s4411_s4 = inlined_call_operand.vmem [shape: f32[2,32,96], index: 4, kind: input, shape index: {}]   ;;  %s4412_s2 = inlined_call_operand.vmem [shape: f32[1,32], index: 2, kind: input, shape index: {}]   ;;  %s4413_s3 = inlined_call_operand.vmem [shape: f32[1,32], index: 3, kind: input, shape index: {}]   ;;  %s4414_s5 = inlined_call_operand.vmem [shape: f32[2,1,96], index: 5, kind: input, shape index: {}]   ;;  %s4415_s1 = inlined_call_operand.vmem [shape: f32[2,1,8], index: 1, kind: input, shape index: {}]   ;;  %s4416_s6 = inlined_call_operand.vmem [shape: f32[2,32,32], index: 6, kind: input, shape index: {}]   ;;  %s4417_s7 = inlined_call_operand.vmem [shape: f32[2,1,32], index: 7, kind: input, shape index: {}]   ;;  %s4418_s10 = inlined_call_operand.vmem [shape: f32[2,32,64], index: 10, kind: input, shape index: {}]   ;;  %s4419_s8 = inlined_call_operand.vmem [shape: f32[2,1,32], index: 8, kind: input, shape index: {}]   ;;  %s4420_s9 = inlined_call_operand.vmem [shape: f32[2,1,32], index: 9, kind: input, shape index: {}]   ;;  %s4421_s12 = inlined_call_operand.vmem [shape: f32[2,64,32], index: 12, kind: input, shape index: {}]   ;;  %s4422_s11 = inlined_call_operand.vmem [shape: f32[2,1,64], index: 11, kind: input, shape index: {}]   ;;  %s4423_s13 = inlined_call_operand.vmem [shape: f32[2,1,32], index: 13, kind: input, shape index: {}]   ;;  %s4424_s14 = inlined_call_operand.vmem [shape: f32[2,1,32], index: 14, kind: input, shape index: {}]   ;;  %s4425_s15 = inlined_call_operand.vmem [shape: f32[2,1,32], index: 15, kind: input, shape index: {}]   ;;  %s4426_s16 = inlined_call_operand.vmem [shape: f32[32,128], index: 16, kind: input, shape index: {}]   ;;  %s4427_s17 = inlined_call_operand.vmem [shape: f32[1,128], index: 17, kind: input, shape index: {}]   ;;  %s4428_s18 = inlined_call_operand.vmem [shape: f32[16,128], index: 18, kind: output, shape index: {}]  }
   0x1   :  { %4441 = sst [smem:[#allocation2_spill]] %s4410_s0  ;;  %3200 = vmatprep.subr.bf16.mxu0 %v3611_v17  ;;  %3208 = vmatprep.subr.bf16.mxu1 %v3611_v17  ;;  %v3000_v33 = vld [vmem:[%s4413_s3] ss:$0 sm:$0xff]  ;;  %s3613_s3 = smov 96   ;;  %v3795_v57 = vld [vmem:[%s4415_s1 + $0x1] ss:$0 sm:$0xff] }
   0x2   :  { %4442 = sst [smem:[#allocation3_spill]] %s4411_s4  ;;  %s4444_s29 = sld [smem:[#allocation2_spill]]  ;;  %3204 = vmatprep.mubr.msk.bf16.mxu0 %vm3612_vm1, %v3611_v17  ;;  %3210 = vmatprep.mubr.msk.bf16.mxu1 %vm3612_vm1, %v3611_v17  ;;  %v3001_v38 = vld [vmem:[%s4414_s5] ss:$0 sm:$0xff]  ;;  %vm318_vm3 = vcmask 1043456   ;;  %vm1433_vm4 = vcmask 523264  }
   0x3   :  { %4443 = sst [smem:[#allocation4_spill]] %s4412_s2  ;;  %s4445_s20 = sld [smem:[#allocation3_spill]]  ;;  %v3790_v52 = vld [vmem:[%s4415_s1] ss:$0 sm:$0xff] }
   0x4   :  { %s4446_s28 = sld [smem:[#allocation4_spill]]  ;;  %s3616_s25 = smov 120  }
   0x5   :  { %s3617_s26 = smov 56   ;;  %s3618_s27 = smov 80  }
   0x6   :  { %s4437_s4 = smov 48   ;;  %s4435_s21 = smov 72  }
   0x7   :  { %s4433_s22 = smov 104   ;;  %s4431_s30 = smov 40  }
   0x8   :  { %v62_v0 = vld [vmem:[%s4444_s29] sm:$0xff]  ;;  %v63_v1 = vld [vmem:[%s4444_s29 + $0x8] sm:$0xff]  ;;  %s4450_s0 = smov 104  }
   0x9   :  { %v67_v2 = vsel %vm66_vm0, %v62_v0, 0.0  ;;  %v70_v3 = vsel %vm66_vm0, %v63_v1, 0.0  ;;  %v110_v14 = vld [vmem:[%s4445_s20] sm:$0xff]  ;;  %v111_v15 = vld [vmem:[%s4445_s20 + $0x8] sm:$0xff]  ;;  %v112_v18 = vld [vmem:[%s4445_s20 + $0x10] sm:$0xff] }
   0xa   :  { %68 = vadd.xlane.f32.xlu0 %v67_v2  ;;  %v115_v16 = vpack.c.bf16 %v111_v15, %v110_v14  ;;  %v113_v19 = vld [vmem:[%s4445_s20 + $0x18] sm:$0xff]  ;;  %v2999_v29 = vld [vmem:[%s4446_s28] ss:$0 sm:$0xff]  ;;  %s4439_s28 = smov 112  }
   0xb   :  { %v116_v20 = vpack.c.bf16 %v113_v19, %v112_v18 }
   0xc   :  { %3201 = vmatpush3.bf16.msra.mxu0 %v115_v16 }
   0xd   :  { %3202 = vmatprep.subr.bf16.mxu0 %v3611_v17 }
   0xe   :  { %71 = vadd.xlane.f32.xlu0 %v70_v3 }
  0x10   :  { %3203 = vmatpush3.bf16.msra.mxu0 %v116_v20 }
  0x11   :  { %3214 = vmatprep.subr.bf16.mxu0 %v3611_v17 }
  0x97   :  { %v69_v4 = vpop.xlane.xlu0 %68 }
  0x98   :  { %v74_v5 = vmul.f32 0.03125, %v69_v4 }
  0x9a   :  { %v76_v6 = vsub.f32 %v62_v0, %v74_v5 }
  0x9b   :  { %v72_v7 = vpop.xlane.xlu0 %71 }
  0x9c   :  { %v75_v8 = vmul.f32 0.03125, %v72_v7  ;;  %v78_v9 = vmul.f32 %v76_v6, %v76_v6 }
  0x9e   :  { %v77_v10 = vsub.f32 %v63_v1, %v75_v8  ;;  %v80_v11 = vsel %vm66_vm0, %v78_v9, 0.0 }
  0x9f   :  { %81 = vadd.xlane.f32.xlu1 %v80_v11 }
  0xa0   :  { %v79_v12 = vmul.f32 %v77_v10, %v77_v10 }
  0xa2   :  { %v83_v13 = vsel %vm66_vm0, %v79_v12, 0.0 }
  0xa3   :  { %84 = vadd.xlane.f32.xlu1 %v83_v13 }
 0x12c   :  { %v82_v21 = vpop.xlane.xlu1 %81 }
 0x12d   :  { %v86_v22 = vmul.f32 0.03125, %v82_v21 }
 0x12f   :  { %v88_v23 = vadd.f32 1e-12, %v86_v22 }
 0x130   :  { %v85_v24 = vpop.xlane.xlu1 %84 }
 0x131   :  { %3517 = vrsqrt.f32 %v88_v23  ;;  %v87_v25 = vmul.f32 0.03125, %v85_v24 }
 0x133   :  { %v89_v26 = vadd.f32 1e-12, %v87_v25 }
 0x135   :  { %3519 = vrsqrt.f32 %v89_v26 }
 0x13b   :  { %v3518_v27 = vpop.eup %3517 }
 0x13c   :  { %v92_v28 = vmul.f32 %v3518_v27, %v76_v6 }
 0x13e   :  { %v100_v32 = vmul.f32 %v2999_v29, %v92_v28 }
 0x13f   :  { %v3520_v30 = vpop.eup %3519 }
 0x140   :  { %v93_v31 = vmul.f32 %v3520_v30, %v77_v10  ;;  %v3755_v35 = vadd.f32 %v3000_v33, %v100_v32 }
 0x142   :  { %v101_v34 = vmul.f32 %v2999_v29, %v93_v31 }
 0x144   :  { %v3757_v36 = vadd.f32 %v3000_v33, %v101_v34 }
 0x146   :  { %v114_v37 = vpack.c.bf16 %v3757_v36, %v3755_v35 }
 0x148   :  { %3205 = vmatmul.mubr.msk.bf16.vlgmr.msra.gmra.mrb[0].mxu0 %vm66_vm0, %v114_v37 }
 0x149   :  { %3216 = vmatprep.mubr.msk.bf16.mxu0 %vm3612_vm1, %v3611_v17 }
 0x21b   :  { %v161_v39 = vpop.f32.mrb[0].mxu0 }
 0x21c   :  { %v162_v40 = vadd.f32 %v3001_v38, %v161_v39  ;;  %v3206_v41 = vpop.f32.mrb[1].mxu0 }
 0x21d   :  { %v164_v42 = vpop.f32.mrb[2].mxu0 }
 0x21e   :  { %v3767_v43 = vpack.c.bf16 %v162_v40, %v162_v40  ;;  %v165_v44 = vadd.f32 %v3001_v38, %v164_v42  ;;  %v3207_v45 = vpop.f32.mrb[3].mxu0 }
 0x220   :  { %v3769_v46 = vpack.c.bf16 %v165_v44, %v165_v44  ;;  %175 = vrot.lane.b32.xlu0 %v3767_v43, %s3613_s3 }
 0x222   :  { %225 = vrot.lane.b32.xlu1 %v3769_v46, %s3613_s3 }
 0x292   :  { %v176_v47 = vpop.permute.xlu0 %175 }
 0x293   :  { %v182_v48 = vsel %vm177_vm2, %v176_v47, 0 }
 0x294   :  { %3209 = vmatpush3.bf16.xpose.msra.mxu1 %v182_v48  ;;  %v226_v49 = vpop.permute.xlu1 %225 }
 0x295   :  { %v231_v50 = vsel %vm177_vm2, %v226_v49, 0  ;;  %3220 = vmatprep.subr.bf16.mxu1 %v3611_v17 }
 0x296   :  { %3215 = vmatpush3.bf16.xpose.msra.mxu0 %v231_v50 }
 0x297   :  { %3226 = vmatprep.subr.bf16.mxu0 %v3611_v17 }
 0x29b   :  { %3211 = vmatmul.mubr.msk.bf16.vlgmr.msra.gmra.mrb[0].mxu1 %vm177_vm2, %v3767_v43 }
 0x29c   :  { %3222 = vmatprep.mubr.msk.bf16.mxu1 %vm3612_vm1, %v3611_v17 }
 0x29d   :  { %3217 = vmatmul.mubr.msk.bf16.vlgmr.msra.gmra.mrb[4].mxu0 %vm177_vm2, %v3769_v46 }
 0x29e   :  { %3228 = vmatprep.mubr.msk.bf16.mxu0 %vm3612_vm1, %v3611_v17 }
 0x36e   :  { %v218_v51 = vpop.f32.mrb[0].mxu1 }
 0x36f   :  { %v273_v53 = vmul.f32 0.35355338, %v218_v51  ;;  %v3212_v54 = vpop.f32.mrb[1].mxu1 }
 0x370   :  { %v221_v55 = vpop.f32.mrb[2].mxu1  ;;  %v267_v56 = vpop.f32.mrb[4].mxu0 }
 0x371   :  { %v274_v58 = vmul.f32 0.35355338, %v267_v56  ;;  %v3213_v59 = vpop.f32.mrb[3].mxu1  ;;  %v3218_v60 = vpop.f32.mrb[5].mxu0  ;;  %v287_v61 = vadd.f32 %v3790_v52, %v273_v53 }
 0x372   :  { %v270_v62 = vpop.f32.mrb[6].mxu0 }
 0x373   :  { %v3219_v63 = vpop.f32.mrb[7].mxu0  ;;  %v289_v0 = vsel %vm177_vm2, %v287_v61, -inf  ;;  %v288_v1 = vadd.f32 %v3795_v57, %v274_v58 }
 0x374   :  { %290 = vmax.xlane.f32.xlu1 %v289_v0 }
 0x375   :  { %v292_v2 = vsel %vm177_vm2, %v288_v1, -inf }
 0x376   :  { %293 = vmax.xlane.f32.xlu0 %v292_v2 }
 0x385   :  { %362 = vrot.lane.b32.xlu1 %v3769_v46, %s3614_s23 }
 0x389   :  { %414 = vrot.lane.b32.xlu1 %v3767_v43, %s3615_s24 }
 0x401   :  { %v291_v3 = vpop.xlane.xlu1 %290 }
 0x402   :  { %v295_v4 = vsub.f32 %v287_v61, %v291_v3 }
 0x403   :  { %v294_v5 = vpop.xlane.xlu0 %293 }
 0x404   :  { %v297_v6 = vmul.f32 1.442695, %v295_v4  ;;  %v296_v7 = vsub.f32 %v288_v1, %v294_v5 }
 0x405   :  { %v363_v8 = vpop.permute.xlu1 %362 }
 0x406   :  { %3521 = vpow2.f32 %v297_v6  ;;  %v299_v9 = vmul.f32 1.442695, %v296_v7  ;;  %v368_v10 = vsel %vm318_vm3, %v363_v8, 0 }
 0x407   :  { %3227 = vmatpush3.bf16.msra.mxu0 %v368_v10 }
 0x408   :  { %3523 = vpow2.f32 %v299_v9  ;;  %3238 = vmatprep.subr.bf16.mxu0 %v3611_v17 }
 0x409   :  { %v415_v15 = vpop.permute.xlu1 %414 }
 0x40a   :  { %v420_v27 = vsel %vm177_vm2, %v415_v15, 0 }
 0x410   :  { %v3522_v11 = vpop.eup %3521 }
 0x411   :  { %v301_v12 = vsel %vm177_vm2, %v3522_v11, 0.0 }
 0x412   :  { %v3524_v13 = vpop.eup %3523  ;;  %302 = vadd.xlane.f32.xlu0 %v301_v12 }
 0x413   :  { %v304_v14 = vsel %vm177_vm2, %v3524_v13, 0.0 }
 0x414   :  { %305 = vadd.xlane.f32.xlu1 %v304_v14 }
 0x425   :  { %464 = vrot.lane.b32.xlu1 %v3769_v46, %s3615_s24 }
 0x428   :  { %313 = vrot.lane.b32.xlu0 %v3767_v43, %s3614_s23 }
 0x429   :  { %462 = vrot.lane.b32.xlu1 %v3769_v46, %s3616_s25 }
 0x42c   :  { %412 = vrot.lane.b32.xlu0 %v3767_v43, %s3616_s25 }
 0x49f   :  { %v303_v16 = vpop.xlane.xlu0 %302 }
 0x4a0   :  { %3525 = vrcp.f32 %v303_v16  ;;  %v168_v16 = vld [vmem:[%s4416_s6] sm:$0xff] }
 0x4a1   :  { %v306_v18 = vpop.xlane.xlu1 %305 }
 0x4a2   :  { %3527 = vrcp.f32 %v306_v18 }
 0x4a3   :  { %v314_v19 = vpop.permute.xlu0 %313 }
 0x4a4   :  { %v320_v20 = vsel %vm318_vm3, %v314_v19, 0 }
 0x4a5   :  { %3221 = vmatpush3.bf16.msra.mxu1 %v320_v20  ;;  %v465_v26 = vpop.permute.xlu1 %464  ;;  %v411_v20 = vpack.c.bf16 %v168_v16, %v168_v16 }
 0x4a6   :  { %3232 = vmatprep.subr.bf16.mxu1 %v3611_v17  ;;  %v470_v29 = vsel %vm177_vm2, %v465_v26, 0 }
 0x4a7   :  { %v413_v30 = vpop.permute.xlu0 %412 }
 0x4a9   :  { %v463_v31 = vpop.permute.xlu1 %462 }
 0x4aa   :  { %v3526_v21 = vpop.eup %3525 }
 0x4ab   :  { %v309_v22 = vmul.f32 %v3526_v21, %v3522_v11  ;;  %v169_v11 = vld [vmem:[%s4416_s6 + $0x8] sm:$0xff] }
 0x4ac   :  { %v3528_v23 = vpop.eup %3527  ;;  %v637_v14 = vpack.c.bf16 %v169_v11, %v169_v11 }
 0x4ad   :  { %v310_v24 = vmul.f32 %v3528_v23, %v3524_v13  ;;  %v311_v25 = vpack.c.bf16 %v309_v22, %v309_v22 }
 0x4ae   :  { %v642_v21 = vsel %vm318_vm3, %v637_v14, 0 }
 0x4af   :  { %3223 = vmatmul.mubr.msk.bf16.vlgmr.msra.gmra.mrb[4].mxu1 %vm177_vm2, %v311_v25  ;;  %v312_v28 = vpack.c.bf16 %v310_v24, %v310_v24  ;;  %v689_v25 = vsel %vm318_vm3, %v411_v20, 0 }
 0x4b0   :  { %3233 = vmatpush3.bf16.xpose.msra.mxu1 %v420_v27  ;;  %3234 = vmatprep.mubr.msk.bf16.mxu1 %vm3612_vm1, %v3611_v17 }
 0x4b1   :  { %3229 = vmatmul.mubr.msk.bf16.vlgmr.msra.gmra.mrb[8].mxu0 %vm177_vm2, %v312_v28  ;;  %3244 = vmatprep.subr.bf16.mxu1 %v3611_v17 }
 0x4b2   :  { %3239 = vmatpush3.bf16.xpose.msra.mxu0 %v470_v29  ;;  %3240 = vmatprep.mubr.msk.bf16.mxu0 %vm3612_vm1, %v3611_v17 }
 0x4b3   :  { %3250 = vmatprep.subr.bf16.mxu0 %v3611_v17 }
 0x4b7   :  { %3235 = vmatmul.mubr.msk.bf16.vlgmr.msra.gmra.mrb[8].mxu1 %vm177_vm2, %v413_v30 }
 0x4b8   :  { %3246 = vmatprep.mubr.msk.bf16.mxu1 %vm3612_vm1, %v3611_v17 }
 0x4b9   :  { %3241 = vmatmul.mubr.msk.bf16.vlgmr.msra.gmra.mrb[12].mxu0 %vm177_vm2, %v463_v31 }
 0x4ba   :  { %3252 = vmatprep.mubr.msk.bf16.mxu0 %vm3612_vm1, %v3611_v17 }
 0x582   :  { %v3835_v32 = vpop.f32.mrb[4].mxu1 }
 0x583   :  { %v3224_v33 = vpop.f32.mrb[5].mxu1 }
 0x584   :  { %v359_v34 = vpop.f32.mrb[6].mxu1  ;;  %v3837_v37 = vpop.f32.mrb[8].mxu0 }
 0x585   :  { %v410_v38 = vpack.c.bf16 %v3837_v37, %v3835_v32  ;;  %v3225_v39 = vpop.f32.mrb[7].mxu1  ;;  %v3230_v40 = vpop.f32.mrb[9].mxu0 }
 0x586   :  { %v407_v41 = vpop.f32.mrb[10].mxu0 }
 0x587   :  { %v3231_v42 = vpop.f32.mrb[11].mxu0 }
 0x58a   :  { %v456_v44 = vpop.f32.mrb[8].mxu1 }
 0x58b   :  { %v512_v45 = vmul.f32 0.35355338, %v456_v44  ;;  %v3236_v47 = vpop.f32.mrb[9].mxu1 }
 0x58c   :  { %v459_v48 = vpop.f32.mrb[10].mxu1  ;;  %v506_v49 = vpop.f32.mrb[12].mxu0 }
 0x58d   :  { %v513_v50 = vmul.f32 0.35355338, %v506_v49  ;;  %v3237_v51 = vpop.f32.mrb[11].mxu1  ;;  %v3242_v53 = vpop.f32.mrb[13].mxu0  ;;  %v514_v54 = vadd.f32 %v3790_v52, %v512_v45 }
 0x58e   :  { %v509_v55 = vpop.f32.mrb[14].mxu0 }
 0x58f   :  { %v3243_v56 = vpop.f32.mrb[15].mxu0  ;;  %v516_v58 = vsel %vm177_vm2, %v514_v54, -inf  ;;  %v515_v59 = vadd.f32 %v3795_v57, %v513_v50 }
 0x590   :  { %517 = vmax.xlane.f32.xlu0 %v516_v58 }
 0x591   :  { %v519_v60 = vsel %vm177_vm2, %v515_v59, -inf }
 0x592   :  { %520 = vmax.xlane.f32.xlu1 %v519_v60 }
 0x5a3   :  { %588 = vrot.lane.b32.xlu1 %v3769_v46, %s3617_s26 }
 0x5a7   :  { %734 = vrot.lane.b32.xlu1 %v3767_v43, %s3618_s27 }
 0x5ab   :  { %784 = vrot.lane.b32.xlu1 %v3769_v46, %s3618_s27 }
 0x5af   :  { %782 = vrot.lane.b32.xlu1 %v3769_v46, %s4439_s28 }
 0x61d   :  { %v518_v61 = vpop.xlane.xlu0 %517 }
 0x61e   :  { %v522_v62 = vsub.f32 %v514_v54, %v518_v61 }
 0x61f   :  { %v521_v63 = vpop.xlane.xlu1 %520 }
 0x620   :  { %v524_v0 = vmul.f32 1.442695, %v522_v62  ;;  %v523_v1 = vsub.f32 %v515_v59, %v521_v63 }
 0x622   :  { %3529 = vpow2.f32 %v524_v0  ;;  %v526_v2 = vmul.f32 1.442695, %v523_v1 }
 0x623   :  { %v589_v3 = vpop.permute.xlu1 %588 }
 0x624   :  { %3531 = vpow2.f32 %v526_v2  ;;  %v594_v4 = vsel %vm318_vm3, %v589_v3, 0 }
 0x625   :  { %3251 = vmatpush3.bf16.msra.mxu0 %v594_v4 }
 0x626   :  { %3262 = vmatprep.subr.bf16.mxu0 %v3611_v17 }
 0x627   :  { %v735_v26 = vpop.permute.xlu1 %734 }
 0x628   :  { %v740_v40 = vsel %vm177_vm2, %v735_v26, 0 }
 0x62b   :  { %v785_v27 = vpop.permute.xlu1 %784 }
 0x62c   :  { %v3530_v5 = vpop.eup %3529  ;;  %v790_v28 = vsel %vm177_vm2, %v785_v27, 0 }
 0x62d   :  { %v528_v6 = vsel %vm177_vm2, %v3530_v5, 0.0 }
 0x62e   :  { %v3532_v7 = vpop.eup %3531  ;;  %529 = vadd.xlane.f32.xlu0 %v528_v6 }
 0x62f   :  { %v531_v8 = vsel %vm177_vm2, %v3532_v7, 0.0  ;;  %v783_v29 = vpop.permute.xlu1 %782 }
 0x632   :  { %532 = vadd.xlane.f32.xlu0 %v531_v8 }
 0x648   :  { %540 = vrot.lane.b32.xlu0 %v3767_v43, %s3617_s26 }
 0x64c   :  { %732 = vrot.lane.b32.xlu0 %v3767_v43, %s4439_s28 }
 0x6bb   :  { %v530_v9 = vpop.xlane.xlu0 %529 }
 0x6bc   :  { %3533 = vrcp.f32 %v530_v9 }
 0x6bf   :  { %v533_v10 = vpop.xlane.xlu0 %532 }
 0x6c0   :  { %3535 = vrcp.f32 %v533_v10 }
 0x6c3   :  { %v541_v12 = vpop.permute.xlu0 %540 }
 0x6c4   :  { %v546_v13 = vsel %vm318_vm3, %v541_v12, 0 }
 0x6c5   :  { %3245 = vmatpush3.bf16.msra.mxu1 %v546_v13 }
 0x6c6   :  { %v3534_v15 = vpop.eup %3533  ;;  %3256 = vmatprep.subr.bf16.mxu1 %v3611_v17 }
 0x6c7   :  { %v536_v18 = vmul.f32 %v3534_v15, %v3530_v5  ;;  %v733_v45 = vpop.permute.xlu0 %732 }
 0x6c9   :  { %v538_v19 = vpack.c.bf16 %v536_v18, %v536_v18 }
 0x6ca   :  { %v3536_v22 = vpop.eup %3535 }
 0x6cb   :  { %v537_v23 = vmul.f32 %v3536_v22, %v3532_v7  ;;  %3247 = vmatmul.mubr.msk.bf16.vlgmr.msra.gmra.mrb[12].mxu1 %vm177_vm2, %v538_v19 }
 0x6cc   :  { %3257 = vmatpush3.bf16.msra.mxu1 %v642_v21  ;;  %3258 = vmatprep.mubr.msk.bf16.mxu1 %vm3612_vm1, %v3611_v17 }
 0x6cd   :  { %v539_v24 = vpack.c.bf16 %v537_v23, %v537_v23  ;;  %3268 = vmatprep.subr.bf16.mxu1 %v3611_v17 }
 0x6cf   :  { %3253 = vmatmul.mubr.msk.bf16.vlgmr.msra.gmra.mrb[16].mxu0 %vm177_vm2, %v539_v24 }
 0x6d0   :  { %3263 = vmatpush3.bf16.msra.mxu0 %v689_v25  ;;  %3264 = vmatprep.mubr.msk.bf16.mxu0 %vm3612_vm1, %v3611_v17 }
 0x6d1   :  { %3274 = vmatprep.subr.bf16.mxu0 %v3611_v17 }
 0x6d7   :  { %3265 = vmatmul.mubr.msk.bf16.vlgmr.msra.gmra.mrb[20].mxu0 %vm177_vm2, %v410_v38 }
 0x6d8   :  { %3276 = vmatprep.mubr.msk.bf16.mxu0 %vm3612_vm1, %v3611_v17 }
 0x6d9   :  { %3275 = vmatpush3.bf16.xpose.msra.mxu0 %v790_v28 }
 0x6da   :  { %3286 = vmatprep.subr.bf16.mxu0 %v3611_v17 }
 0x6e0   :  { %3277 = vmatmul.mubr.msk.bf16.vlgmr.msra.gmra.mrb[24].mxu0 %vm177_vm2, %v783_v29 }
 0x6e1   :  { %3288 = vmatprep.mubr.msk.bf16.mxu0 %vm3612_vm1, %v3611_v17 }
 0x79e   :  { %v582_v30 = vpop.f32.mrb[12].mxu1 }
 0x79f   :  { %v3248_v31 = vpop.f32.mrb[13].mxu1 }
 0x7a0   :  { %v585_v33 = vpop.f32.mrb[14].mxu1 }
 0x7a1   :  { %v3249_v32 = vpop.f32.mrb[15].mxu1 }
 0x7a2   :  { %v630_v34 = vpop.f32.mrb[16].mxu0 }
 0x7a3   :  { %v636_v37 = vpack.c.bf16 %v630_v34, %v582_v30  ;;  %v3254_v38 = vpop.f32.mrb[17].mxu0 }
 0x7a4   :  { %v633_v39 = vpop.f32.mrb[18].mxu0 }
 0x7a5   :  { %v3255_v41 = vpop.f32.mrb[19].mxu0  ;;  %3259 = vmatmul.mubr.msk.bf16.vlgmr.msra.gmra.mrb[16].mxu1 %vm177_vm2, %v636_v37  ;;  %v170_v39 = vld [vmem:[%s4416_s6 + $0x10] sm:$0xff] }
 0x7a6   :  { %3269 = vmatpush3.bf16.xpose.msra.mxu1 %v740_v40  ;;  %3270 = vmatprep.mubr.msk.bf16.mxu1 %vm3612_vm1, %v3611_v17  ;;  %v957_v40 = vpack.c.bf16 %v170_v39, %v170_v39 }
 0x7a7   :  { %3280 = vmatprep.subr.bf16.mxu1 %v3611_v17 }
 0x7a8   :  { %v962_v41 = vsel %vm318_vm3, %v957_v40, 0 }
 0x7aa   :  { %v725_v42 = vpop.f32.mrb[20].mxu0 }
 0x7ab   :  { %v3266_v44 = vpop.f32.mrb[21].mxu0 }
 0x7ac   :  { %v728_v47 = vpop.f32.mrb[22].mxu0 }
 0x7ad   :  { %v3267_v48 = vpop.f32.mrb[23].mxu0  ;;  %3271 = vmatmul.mubr.msk.bf16.vlgmr.msra.gmra.mrb[20].mxu1 %vm177_vm2, %v733_v45 }
 0x7ae   :  { %3282 = vmatprep.mubr.msk.bf16.mxu1 %vm3612_vm1, %v3611_v17 }
 0x7b3   :  { %v826_v49 = vpop.f32.mrb[24].mxu0 }
 0x7b4   :  { %v833_v50 = vmul.f32 0.35355338, %v826_v49  ;;  %v3278_v51 = vpop.f32.mrb[25].mxu0 }
 0x7b5   :  { %v829_v53 = vpop.f32.mrb[26].mxu0 }
 0x7b6   :  { %v3279_v54 = vpop.f32.mrb[27].mxu0  ;;  %v835_v55 = vadd.f32 %v3795_v57, %v833_v50 }
 0x7b8   :  { %v839_v56 = vsel %vm177_vm2, %v835_v55, -inf }
 0x7b9   :  { %840 = vmax.xlane.f32.xlu1 %v839_v56 }
 0x7ca   :  { %908 = vrot.lane.b32.xlu1 %v3769_v46, %s4437_s4 }
 0x7ce   :  { %1009 = vrot.lane.b32.xlu1 %v3767_v43, %s4435_s21 }
 0x7d2   :  { %1059 = vrot.lane.b32.xlu1 %v3769_v46, %s4435_s21  ;;  %s4449_s21 = smov 72  }
 0x7d6   :  { %1057 = vrot.lane.b32.xlu1 %v3769_v46, %s4433_s22 }
 0x846   :  { %v841_v58 = vpop.xlane.xlu1 %840 }
 0x847   :  { %v843_v61 = vsub.f32 %v835_v55, %v841_v58 }
 0x849   :  { %v846_v62 = vmul.f32 1.442695, %v843_v61 }
 0x84a   :  { %v909_v59 = vpop.permute.xlu1 %908 }
 0x84b   :  { %v914_v60 = vsel %vm318_vm3, %v909_v59, 0  ;;  %3537 = vpow2.f32 %v846_v62 }
 0x84c   :  { %3287 = vmatpush3.bf16.msra.mxu0 %v914_v60 }
 0x84d   :  { %3298 = vmatprep.subr.bf16.mxu0 %v3611_v17 }
 0x84e   :  { %v1010_v23 = vpop.permute.xlu1 %1009 }
 0x84f   :  { %v1015_v25 = vsel %vm177_vm2, %v1010_v23, 0 }
 0x852   :  { %v1060_v51 = vpop.permute.xlu1 %1059 }
 0x853   :  { %v1065_v58 = vsel %vm177_vm2, %v1060_v51, 0 }
 0x855   :  { %v3538_v12 = vpop.eup %3537 }
 0x856   :  { %v851_v13 = vsel %vm177_vm2, %v3538_v12, 0.0 }
 0x878   :  { %v678_v63 = vpop.f32.mrb[16].mxu1 }
 0x879   :  { %v3910_v0 = vadd.f32 %v725_v42, %v678_v63  ;;  %v3260_v1 = vpop.f32.mrb[17].mxu1 }
 0x87a   :  { %v681_v2 = vpop.f32.mrb[18].mxu1 }
 0x87b   :  { %v3912_v3 = vadd.f32 %v728_v47, %v681_v2  ;;  %v3261_v4 = vpop.f32.mrb[19].mxu1 }
 0x880   :  { %v776_v5 = vpop.f32.mrb[20].mxu1 }
 0x881   :  { %v832_v6 = vmul.f32 0.35355338, %v776_v5  ;;  %v3272_v7 = vpop.f32.mrb[21].mxu1 }
 0x882   :  { %v779_v8 = vpop.f32.mrb[22].mxu1 }
 0x883   :  { %v3273_v9 = vpop.f32.mrb[23].mxu1  ;;  %v834_v10 = vadd.f32 %v3790_v52, %v832_v6 }
 0x885   :  { %v836_v11 = vsel %vm177_vm2, %v834_v10, -inf }
 0x886   :  { %837 = vmax.xlane.f32.xlu0 %v836_v11 }
 0x88a   :  { %852 = vadd.xlane.f32.xlu0 %v851_v13 }
 0x913   :  { %v838_v14 = vpop.xlane.xlu0 %837 }
 0x914   :  { %v842_v15 = vsub.f32 %v834_v10, %v838_v14 }
 0x916   :  { %v844_v16 = vmul.f32 1.442695, %v842_v15 }
 0x917   :  { %v853_v18 = vpop.xlane.xlu0 %852 }
 0x918   :  { %3539 = vpow2.f32 %v844_v16 }
 0x919   :  { %3541 = vrcp.f32 %v853_v18 }
 0x922   :  { %v3540_v19 = vpop.eup %3539 }
 0x923   :  { %v3542_v20 = vpop.eup %3541  ;;  %v848_v21 = vsel %vm177_vm2, %v3540_v19, 0.0 }
 0x924   :  { %v857_v22 = vmul.f32 %v3542_v20, %v3538_v12  ;;  %849 = vadd.xlane.f32.xlu0 %v848_v21 }
 0x926   :  { %v859_v24 = vpack.c.bf16 %v857_v22, %v857_v22 }
 0x928   :  { %3289 = vmatmul.mubr.msk.bf16.vlgmr.msra.gmra.mrb[28].mxu0 %vm177_vm2, %v859_v24 }
 0x929   :  { %3299 = vmatpush3.bf16.xpose.msra.mxu0 %v1015_v25  ;;  %3300 = vmatprep.mubr.msk.bf16.mxu0 %vm3612_vm1, %v3611_v17 }
 0x92a   :  { %3310 = vmatprep.subr.bf16.mxu0 %v3611_v17 }
 0x93a   :  { %860 = vrot.lane.b32.xlu0 %v3767_v43, %s4437_s4 }
 0x93e   :  { %1007 = vrot.lane.b32.xlu0 %v3767_v43, %s4433_s22 }
 0x9b1   :  { %v850_v26 = vpop.xlane.xlu0 %849 }
 0x9b2   :  { %3543 = vrcp.f32 %v850_v26 }
 0x9b5   :  { %v861_v27 = vpop.permute.xlu0 %860 }
 0x9b6   :  { %v866_v28 = vsel %vm318_vm3, %v861_v27, 0 }
 0x9b7   :  { %3281 = vmatpush3.bf16.msra.mxu1 %v866_v28 }
 0x9b8   :  { %3292 = vmatprep.subr.bf16.mxu1 %v3611_v17 }
 0x9b9   :  { %v1008_v29 = vpop.permute.xlu0 %1007 }
 0x9ba   :  { %3301 = vmatmul.mubr.msk.bf16.vlgmr.msra.gmra.mrb[32].mxu0 %vm177_vm2, %v1008_v29  ;;  %v171_v29 = vld [vmem:[%s4416_s6 + $0x18] sm:$0xff] }
 0x9bb   :  { %3312 = vmatprep.mubr.msk.bf16.mxu0 %vm3612_vm1, %v3611_v17 }
 0x9bc   :  { %v3544_v30 = vpop.eup %3543 }
 0x9bd   :  { %v856_v31 = vmul.f32 %v3544_v30, %v3540_v19  ;;  %v1232_v30 = vpack.c.bf16 %v171_v29, %v171_v29 }
 0x9bf   :  { %v858_v33 = vpack.c.bf16 %v856_v31, %v856_v31  ;;  %v1237_v31 = vsel %vm318_vm3, %v1232_v30, 0  ;;  %v1417_v30 = vld [vmem:[%s4421_s12 + $0x20] sm:$0xff] }
 0x9c1   :  { %3283 = vmatmul.mubr.msk.bf16.vlgmr.msra.gmra.mrb[24].mxu1 %vm177_vm2, %v858_v33 }
 0x9c2   :  { %3294 = vmatprep.mubr.msk.bf16.mxu1 %vm3612_vm1, %v3611_v17  ;;  %3293 = vmatpush3.bf16.msra.mxu1 %v962_v41 }
 0x9c3   :  { %3304 = vmatprep.subr.bf16.mxu1 %v3611_v17 }
 0x9fb   :  { %v950_v32 = vpop.f32.mrb[28].mxu0 }
 0x9fc   :  { %v3290_v34 = vpop.f32.mrb[29].mxu0 }
 0x9fd   :  { %v953_v37 = vpop.f32.mrb[30].mxu0 }
 0x9fe   :  { %v3291_v38 = vpop.f32.mrb[31].mxu0 }
 0xa8d   :  { %v1051_v42 = vpop.f32.mrb[32].mxu0 }
 0xa8e   :  { %v1107_v44 = vmul.f32 0.35355338, %v1051_v42  ;;  %v3302_v45 = vpop.f32.mrb[33].mxu0 }
 0xa8f   :  { %v1054_v47 = vpop.f32.mrb[34].mxu0  ;;  %v3025_v45 = vld [vmem:[%s4417_s7] ss:$0 sm:$0xff] }
 0xa90   :  { %v3303_v48 = vpop.f32.mrb[35].mxu0  ;;  %v1109_v49 = vadd.f32 %v3790_v52, %v1107_v44  ;;  %v1058_v52 = vpop.permute.xlu1 %1057 }
 0xa92   :  { %v1111_v50 = vsel %vm177_vm2, %v1109_v49, -inf }
 0xa93   :  { %1112 = vmax.xlane.f32.xlu0 %v1111_v50 }
 0xa94   :  { %v902_v53 = vpop.f32.mrb[24].mxu1 }
 0xa95   :  { %v956_v54 = vpack.c.bf16 %v950_v32, %v902_v53  ;;  %v3284_v55 = vpop.f32.mrb[25].mxu1 }
 0xa96   :  { %v905_v56 = vpop.f32.mrb[26].mxu1 }
 0xa97   :  { %v3285_v59 = vpop.f32.mrb[27].mxu1  ;;  %3295 = vmatmul.mubr.msk.bf16.vlgmr.msra.gmra.mrb[28].mxu1 %vm177_vm2, %v956_v54 }
 0xa98   :  { %3305 = vmatpush3.bf16.xpose.msra.mxu1 %v1065_v58  ;;  %3306 = vmatprep.mubr.msk.bf16.mxu1 %vm3612_vm1, %v3611_v17 }
 0xa99   :  { %3316 = vmatprep.subr.bf16.mxu1 %v3611_v17 }
 0xa9f   :  { %3307 = vmatmul.mubr.msk.bf16.vlgmr.msra.gmra.mrb[32].mxu1 %vm177_vm2, %v1058_v52 }
 0xaa0   :  { %3318 = vmatprep.mubr.msk.bf16.mxu1 %vm3612_vm1, %v3611_v17 }
 0xb20   :  { %v1113_v60 = vpop.xlane.xlu0 %1112 }
 0xb21   :  { %v1117_v61 = vsub.f32 %v1109_v49, %v1113_v60 }
 0xb23   :  { %v1119_v62 = vmul.f32 1.442695, %v1117_v61 }
 0xb25   :  { %3545 = vpow2.f32 %v1119_v62 }
 0xb2f   :  { %v3546_v63 = vpop.eup %3545 }
 0xb30   :  { %v1123_v1 = vsel %vm177_vm2, %v3546_v63, 0.0 }
 0xb31   :  { %1124 = vadd.xlane.f32.xlu0 %v1123_v1 }
 0xb6a   :  { %v998_v2 = vpop.f32.mrb[28].mxu1 }
 0xb6b   :  { %v3952_v4 = vadd.f32 %v998_v2, %v3910_v0  ;;  %v3296_v5 = vpop.f32.mrb[29].mxu1 }
 0xb6c   :  { %v1001_v6 = vpop.f32.mrb[30].mxu1 }
 0xb6d   :  { %v3955_v7 = vadd.f32 %v1001_v6, %v3912_v3  ;;  %v3297_v8 = vpop.f32.mrb[31].mxu1  ;;  %v1338_v6 = vld [vmem:[%s4418_s10 + $0x8] sm:$0xff] }
 0xb6e   :  { %v1339_v8 = vld [vmem:[%s4418_s10 + $0x10] sm:$0xff] }
 0xb72   :  { %v1101_v9 = vpop.f32.mrb[32].mxu1 }
 0xb73   :  { %v1108_v10 = vmul.f32 0.35355338, %v1101_v9  ;;  %v3308_v11 = vpop.f32.mrb[33].mxu1  ;;  %v1340_v9 = vld [vmem:[%s4418_s10 + $0x18] sm:$0xff] }
 0xb74   :  { %v1104_v12 = vpop.f32.mrb[34].mxu1 }
 0xb75   :  { %v3309_v13 = vpop.f32.mrb[35].mxu1  ;;  %v1110_v14 = vadd.f32 %v3795_v57, %v1108_v10  ;;  %v1343_v10 = vpack.c.bf16 %v1340_v9, %v1339_v8 }
 0xb77   :  { %v1114_v15 = vsel %vm177_vm2, %v1110_v14, -inf }
 0xb78   :  { %1115 = vmax.xlane.f32.xlu1 %v1114_v15 }
 0xb89   :  { %1183 = vrot.lane.b32.xlu1 %v3769_v46, %s4431_s30 }
 0xbbe   :  { %v1125_v21 = vpop.xlane.xlu0 %1124 }
 0xc05   :  { %v1116_v0 = vpop.xlane.xlu1 %1115 }
 0xc06   :  { %v1118_v16 = vsub.f32 %v1110_v14, %v1116_v0 }
 0xc08   :  { %v1121_v18 = vmul.f32 1.442695, %v1118_v16 }
 0xc09   :  { %v1184_v3 = vpop.permute.xlu1 %1183 }
 0xc0a   :  { %3547 = vpow2.f32 %v1121_v18  ;;  %v1189_v19 = vsel %vm318_vm3, %v1184_v3, 0  ;;  %v3026_v18 = vld [vmem:[%s4419_s8] ss:$0 sm:$0xff] }
 0xc0b   :  { %3317 = vmatpush3.bf16.msra.mxu1 %v1189_v19  ;;  %3549 = vrcp.f32 %v1125_v21  ;;  %v3027_v21 = vld [vmem:[%s4420_s9] ss:$0 sm:$0xff] }
 0xc0c   :  { %3328 = vmatprep.subr.bf16.mxu1 %v3611_v17 }
 0xc14   :  { %v3548_v20 = vpop.eup %3547 }
 0xc15   :  { %v1126_v57 = vsel %vm177_vm2, %v3548_v20, 0.0  ;;  %v3550_v46 = vpop.eup %3549 }
 0xc16   :  { %1127 = vadd.xlane.f32.xlu0 %v1126_v57  ;;  %v1131_v23 = vmul.f32 %v3550_v46, %v3546_v63 }
 0xc18   :  { %v1133_v26 = vpack.c.bf16 %v1131_v23, %v1131_v23 }
 0xc2c   :  { %1135 = vrot.lane.b32.xlu0 %v3767_v43, %s4431_s30 }
 0xca3   :  { %v1128_v22 = vpop.xlane.xlu0 %1127 }
 0xca4   :  { %3551 = vrcp.f32 %v1128_v22 }
 0xca7   :  { %v1136_v24 = vpop.permute.xlu0 %1135 }
 0xca8   :  { %v1141_v25 = vsel %vm318_vm3, %v1136_v24, 0 }
 0xca9   :  { %3311 = vmatpush3.bf16.msra.mxu0 %v1141_v25  ;;  %v1413_v25 = vld [vmem:[%s4421_s12] sm:$0xff] }
 0xcaa   :  { %3322 = vmatprep.subr.bf16.mxu0 %v3611_v17 }
 0xcac   :  { %3313 = vmatmul.mubr.msk.bf16.vlgmr.msra.gmra.mrb[36].mxu0 %vm177_vm2, %v1133_v26  ;;  %v1414_v26 = vld [vmem:[%s4421_s12 + $0x8] sm:$0xff] }
 0xcad   :  { %3324 = vmatprep.mubr.msk.bf16.mxu0 %vm3612_vm1, %v3611_v17  ;;  %3323 = vmatpush3.bf16.msra.mxu0 %v1237_v31  ;;  %v1418_v31 = vld [vmem:[%s4421_s12 + $0x28] sm:$0xff] }
 0xcae   :  { %v3552_v27 = vpop.eup %3551  ;;  %3336 = vmatprep.subr.bf16.mxu0 %v3611_v17 }
 0xcaf   :  { %v1132_v43 = vmul.f32 %v3552_v27, %v3548_v20  ;;  %v1415_v27 = vld [vmem:[%s4421_s12 + $0x10] sm:$0xff] }
 0xcb1   :  { %v1134_v28 = vpack.c.bf16 %v1132_v43, %v1132_v43  ;;  %v1422_v43 = vpack.c.bf16 %v1414_v26, %v1413_v25  ;;  %v3037_v25 = vld [vmem:[%s4445_s20 + $0x38] sm:$0xff] }
 0xcb3   :  { %3319 = vmatmul.mubr.msk.bf16.vlgmr.msra.gmra.mrb[36].mxu1 %vm177_vm2, %v1134_v28  ;;  %v1416_v28 = vld [vmem:[%s4421_s12 + $0x18] sm:$0xff] }
 0xcb4   :  { %3332 = vmatprep.mubr.msk.bf16.mxu1 %vm3612_vm1, %v3611_v17  ;;  %v1423_v29 = vpack.c.bf16 %v1416_v28, %v1415_v27 }
 0xd7f   :  { %v1177_v33 = vpop.f32.mrb[36].mxu0 }
 0xd80   :  { %v3314_v32 = vpop.f32.mrb[37].mxu0 }
 0xd81   :  { %v1180_v34 = vpop.f32.mrb[38].mxu0  ;;  %v1419_v32 = vld [vmem:[%s4421_s12 + $0x30] sm:$0xff] }
 0xd82   :  { %v3315_v37 = vpop.f32.mrb[39].mxu0  ;;  %v1420_v34 = vld [vmem:[%s4421_s12 + $0x38] sm:$0xff] }
 0xd83   :  { %v1425_v37 = vpack.c.bf16 %v1420_v34, %v1419_v32  ;;  %v3032_v32 = vld [vmem:[%s4424_s14] ss:$0 sm:$0xff] }
 0xd86   :  { %v1225_v38 = vpop.f32.mrb[36].mxu1 }
 0xd87   :  { %v1231_v39 = vpack.c.bf16 %v1225_v38, %v1177_v33  ;;  %v3320_v40 = vpop.f32.mrb[37].mxu1  ;;  %v1424_v33 = vpack.c.bf16 %v1418_v31, %v1417_v30  ;;  %v3028_v38 = vld [vmem:[%s4422_s11] ss:$0 sm:$0xff] }
 0xd88   :  { %v1228_v41 = vpop.f32.mrb[38].mxu1 }
 0xd89   :  { %v3321_v42 = vpop.f32.mrb[39].mxu1  ;;  %3325 = vmatmul.mubr.msk.bf16.vlgmr.msra.gmra.mrb[40].mxu0 %vm177_vm2, %v1231_v39 }
 0xd8a   :  { %3344 = vmatprep.mubr.msk.bf16.mxu0 %vm3612_vm1, %v3611_v17  ;;  %3337 = vmatpush3.bf16.msra.mxu0 %v1422_v43 }
 0xd8b   :  { %3338 = vmatprep.subr.bf16.mxu0 %v3611_v17 }
 0xd8e   :  { %3339 = vmatpush3.bf16.msra.mxu0 %v1423_v29 }
 0xd8f   :  { %3340 = vmatprep.subr.bf16.mxu0 %v3611_v17 }
 0xd92   :  { %3341 = vmatpush3.bf16.msra.mxu0 %v1424_v33 }
 0xd93   :  { %3342 = vmatprep.subr.bf16.mxu0 %v3611_v17 }
 0xd96   :  { %3343 = vmatpush3.bf16.msra.mxu0 %v1425_v37 }
 0xd97   :  { %3362 = vmatprep.subr.bf16.mxu0 %v3611_v17 }
 0xe5c   :  { %v1273_v44 = vpop.f32.mrb[40].mxu0 }
 0xe5d   :  { %v1280_v47 = vadd.f32 %v1273_v44, %v3952_v4  ;;  %v3326_v48 = vpop.f32.mrb[41].mxu0 }
 0xe5e   :  { %v1276_v49 = vpop.f32.mrb[42].mxu0 }
 0xe5f   :  { %v1289_v50 = vadd.f32 %v3025_v45, %v1280_v47  ;;  %v1281_v51 = vadd.f32 %v1276_v49, %v3955_v7  ;;  %v3327_v53 = vpop.f32.mrb[43].mxu0 }
 0xe61   :  { %v1290_v54 = vadd.f32 %v3025_v45, %v1281_v51  ;;  %v1291_v55 = vadd.f32 %v1289_v50, %v3755_v35 }
 0xe63   :  { %v1295_v56 = vsel %vm66_vm0, %v1291_v55, 0.0  ;;  %v1292_v58 = vadd.f32 %v1290_v54, %v3757_v36  ;;  %v1337_v36 = vld [vmem:[%s4418_s10] sm:$0xff] }
 0xe64   :  { %1296 = vadd.xlane.f32.xlu1 %v1295_v56  ;;  %v1342_v7 = vpack.c.bf16 %v1338_v6, %v1337_v36 }
 0xe65   :  { %v1298_v59 = vsel %vm66_vm0, %v1292_v58, 0.0 }
 0xe66   :  { %1299 = vadd.xlane.f32.xlu0 %v1298_v59  ;;  %3329 = vmatpush3.bf16.msra.mxu1 %v1342_v7 }
 0xe67   :  { %3330 = vmatprep.subr.bf16.mxu1 %v3611_v17 }
 0xe6a   :  { %3331 = vmatpush3.bf16.msra.mxu1 %v1343_v10 }
 0xe6b   :  { %3348 = vmatprep.subr.bf16.mxu1 %v3611_v17 }
 0xef1   :  { %v1297_v52 = vpop.xlane.xlu1 %1296 }
 0xef2   :  { %v1301_v60 = vmul.f32 0.03125, %v1297_v52 }
 0xef3   :  { %v1300_v61 = vpop.xlane.xlu0 %1299 }
 0xef4   :  { %v1303_v62 = vsub.f32 %v1291_v55, %v1301_v60  ;;  %v1302_v63 = vmul.f32 0.03125, %v1300_v61 }
 0xef6   :  { %v1304_v1 = vsub.f32 %v1292_v58, %v1302_v63  ;;  %v1305_v2 = vmul.f32 %v1303_v62, %v1303_v62 }
 0xef8   :  { %v1307_v4 = vsel %vm66_vm0, %v1305_v2, 0.0  ;;  %v1306_v5 = vmul.f32 %v1304_v1, %v1304_v1 }
 0xef9   :  { %1308 = vadd.xlane.f32.xlu0 %v1307_v4 }
 0xefa   :  { %v1310_v35 = vsel %vm66_vm0, %v1306_v5, 0.0  ;;  %v3030_v5 = vld [vmem:[%s4423_s13] ss:$0 sm:$0xff] }
 0xefb   :  { %1311 = vadd.xlane.f32.xlu1 %v1310_v35 }
 0xf86   :  { %v1309_v11 = vpop.xlane.xlu0 %1308 }
 0xf87   :  { %v1313_v12 = vmul.f32 0.03125, %v1309_v11 }
 0xf88   :  { %v1312_v13 = vpop.xlane.xlu1 %1311 }
 0xf89   :  { %v1315_v14 = vadd.f32 1e-12, %v1313_v12  ;;  %v1314_v15 = vmul.f32 0.03125, %v1312_v13 }
 0xf8b   :  { %3553 = vrsqrt.f32 %v1315_v14  ;;  %v1316_v0 = vadd.f32 1e-12, %v1314_v15 }
 0xf8d   :  { %3555 = vrsqrt.f32 %v1316_v0 }
 0xf95   :  { %v3554_v16 = vpop.eup %3553 }
 0xf96   :  { %v1319_v3 = vmul.f32 %v3554_v16, %v1303_v62 }
 0xf97   :  { %v3556_v19 = vpop.eup %3555 }
 0xf98   :  { %v1327_v20 = vmul.f32 %v3026_v18, %v1319_v3  ;;  %v1320_v57 = vmul.f32 %v3556_v19, %v1304_v1 }
 0xf9a   :  { %v1328_v46 = vmul.f32 %v3026_v18, %v1320_v57  ;;  %v4013_v22 = vadd.f32 %v3027_v21, %v1327_v20 }
 0xf9c   :  { %v4015_v23 = vadd.f32 %v3027_v21, %v1328_v46  ;;  %v3034_v46 = vld [vmem:[%s4445_s20 + $0x20] sm:$0xff] }
 0xf9e   :  { %v1341_v24 = vpack.c.bf16 %v4015_v23, %v4013_v22 }
 0xfa0   :  { %3333 = vmatmul.mubr.msk.bf16.vlgmr.msra.gmra.mrb[40].mxu1 %vm66_vm0, %v1341_v24  ;;  %v3036_v24 = vld [vmem:[%s4445_s20 + $0x30] sm:$0xff] }
 0xfa1   :  { %3352 = vmatprep.mubr.msk.bf16.mxu1 %vm3612_vm1, %v3611_v17  ;;  %v1531_v26 = vpack.c.bf16 %v3037_v25, %v3036_v24 }
0x1073   :  { %v1388_v39 = vpop.f32.mrb[40].mxu1 }
0x1074   :  { %v1389_v40 = vadd.f32 %v3028_v38, %v1388_v39  ;;  %v3334_v41 = vpop.f32.mrb[41].mxu1 }
0x1075   :  { %v1391_v42 = vpop.f32.mrb[42].mxu1 }
0x1076   :  { %v1397_v44 = vmul.f32 0.044715, %v1389_v40  ;;  %v1392_v45 = vadd.f32 %v3028_v38, %v1391_v42  ;;  %v3335_v47 = vpop.f32.mrb[43].mxu1  ;;  %v1395_v61 = vmul.f32 0.5, %v1389_v40 }
0x1077   :  { %v3039_v47 = vld [vmem:[%s4414_s5 + $0x1] ss:$0 sm:$0xff] }
0x1078   :  { %v1399_v48 = vmul.f32 %v1397_v44, %v1389_v40  ;;  %v1398_v49 = vmul.f32 0.044715, %v1392_v45  ;;  %v1396_v62 = vmul.f32 0.5, %v1392_v45 }
0x107a   :  { %v1401_v50 = vmul.f32 %v1399_v48, %v1389_v40  ;;  %v1400_v51 = vmul.f32 %v1398_v49, %v1392_v45 }
0x107c   :  { %v1403_v53 = vadd.f32 %v1401_v50, %v1389_v40  ;;  %v1402_v54 = vmul.f32 %v1400_v51, %v1392_v45  ;;  %v3033_v40 = vld [vmem:[%s4425_s15] ss:$0 sm:$0xff] }
0x107e   :  { %v1405_v55 = vmul.f32 0.7978846, %v1403_v53  ;;  %v1404_v56 = vadd.f32 %v1402_v54, %v1392_v45 }
0x1080   :  { %3557 = vtanh.f32 %v1405_v55  ;;  %v1406_v58 = vmul.f32 0.7978846, %v1404_v56 }
0x1082   :  { %3559 = vtanh.f32 %v1406_v58 }
0x108a   :  { %v3558_v59 = vpop.eup %3557 }
0x108b   :  { %v1409_v52 = vadd.f32 1.0, %v3558_v59 }
0x108c   :  { %v3560_v60 = vpop.eup %3559 }
0x108d   :  { %v1410_v63 = vadd.f32 1.0, %v3560_v60  ;;  %v1411_v1 = vmul.f32 %v1409_v52, %v1395_v61 }
0x108f   :  { %v1412_v2 = vmul.f32 %v1410_v63, %v1396_v62 }
0x1091   :  { %v1421_v4 = vpack.c.bf16 %v1412_v2, %v1411_v1 }
0x1093   :  { %3345 = vmatmul.mubr.msk.bf16.vlgmr.msra.gmra.mrb[44].mxu0 %vm1433_vm4, %v1421_v4 }
0x1094   :  { %3364 = vmatprep.mubr.msk.bf16.mxu0 %vm3612_vm1, %v3611_v17 }
0x1166   :  { %v1471_v35 = vpop.f32.mrb[44].mxu0 }
0x1167   :  { %v1472_v36 = vadd.f32 %v3030_v5, %v1471_v35  ;;  %v3346_v6 = vpop.f32.mrb[45].mxu0 }
0x1168   :  { %v1474_v7 = vpop.f32.mrb[46].mxu0 }
0x1169   :  { %v1475_v8 = vadd.f32 %v3030_v5, %v1474_v7  ;;  %v3347_v9 = vpop.f32.mrb[47].mxu0  ;;  %v1478_v10 = vadd.f32 %v1472_v36, %v4013_v22  ;;  %v3035_v22 = vld [vmem:[%s4445_s20 + $0x28] sm:$0xff]  ;;  %v4120_v36 = vld [vmem:[%s4415_s1] ss:$0 sm:$0xff]  ;;  %s4451_s20 = smov 40  }
0x116b   :  { %v1482_v11 = vsel %vm66_vm0, %v1478_v10, 0.0  ;;  %v1479_v12 = vadd.f32 %v1475_v8, %v4015_v23  ;;  %v1530_v23 = vpack.c.bf16 %v3035_v22, %v3034_v46 }
0x116c   :  { %1483 = vadd.xlane.f32.xlu0 %v1482_v11 }
0x116d   :  { %v1485_v13 = vsel %vm66_vm0, %v1479_v12, 0.0  ;;  %3349 = vmatpush3.bf16.msra.mxu1 %v1530_v23 }
0x116e   :  { %1486 = vadd.xlane.f32.xlu1 %v1485_v13  ;;  %3350 = vmatprep.subr.bf16.mxu1 %v3611_v17 }
0x1171   :  { %3351 = vmatpush3.bf16.msra.mxu1 %v1531_v26 }
0x1172   :  { %3356 = vmatprep.subr.bf16.mxu1 %v3611_v17 }
0x11f9   :  { %v1484_v14 = vpop.xlane.xlu0 %1483 }
0x11fa   :  { %v1488_v15 = vmul.f32 0.03125, %v1484_v14 }
0x11fb   :  { %v1487_v0 = vpop.xlane.xlu1 %1486 }
0x11fc   :  { %v1490_v16 = vsub.f32 %v1478_v10, %v1488_v15  ;;  %v1489_v18 = vmul.f32 0.03125, %v1487_v0  ;;  %v4127_v10 = vld [vmem:[%s4415_s1 + $0x1] ss:$0 sm:$0xff]  ;;  %s4447_s1 = smov 112  }
0x11fe   :  { %v1491_v3 = vsub.f32 %v1479_v12, %v1489_v18  ;;  %v1492_v19 = vmul.f32 %v1490_v16, %v1490_v16 }
0x1200   :  { %v1494_v20 = vsel %vm66_vm0, %v1492_v19, 0.0  ;;  %v1493_v57 = vmul.f32 %v1491_v3, %v1491_v3 }
0x1201   :  { %1495 = vadd.xlane.f32.xlu0 %v1494_v20 }
0x1202   :  { %v1497_v21 = vsel %vm66_vm0, %v1493_v57, 0.0 }
0x1203   :  { %1498 = vadd.xlane.f32.xlu1 %v1497_v21 }
0x128e   :  { %v1496_v27 = vpop.xlane.xlu0 %1495 }
0x128f   :  { %v1500_v43 = vmul.f32 0.03125, %v1496_v27 }
0x1290   :  { %v1499_v28 = vpop.xlane.xlu1 %1498 }
0x1291   :  { %v1502_v29 = vadd.f32 1e-12, %v1500_v43  ;;  %v1501_v30 = vmul.f32 0.03125, %v1499_v28 }
0x1293   :  { %3561 = vrsqrt.f32 %v1502_v29  ;;  %v1503_v31 = vadd.f32 1e-12, %v1501_v30 }
0x1295   :  { %3563 = vrsqrt.f32 %v1503_v31 }
0x129d   :  { %v3562_v33 = vpop.eup %3561 }
0x129e   :  { %v1506_v34 = vmul.f32 %v3562_v33, %v1490_v16 }
0x129f   :  { %v3564_v37 = vpop.eup %3563 }
0x12a0   :  { %v1514_v38 = vmul.f32 %v3032_v32, %v1506_v34  ;;  %v1507_v39 = vmul.f32 %v3564_v37, %v1491_v3 }
0x12a2   :  { %v1515_v41 = vmul.f32 %v3032_v32, %v1507_v39  ;;  %v4085_v42 = vadd.f32 %v3033_v40, %v1514_v38 }
0x12a4   :  { %v4087_v44 = vadd.f32 %v3033_v40, %v1515_v41 }
0x12a6   :  { %v1529_v45 = vpack.c.bf16 %v4087_v44, %v4085_v42 }
0x12a8   :  { %3353 = vmatmul.mubr.msk.bf16.vlgmr.msra.gmra.mrb[44].mxu1 %vm66_vm0, %v1529_v45 }
0x12a9   :  { %3358 = vmatprep.mubr.msk.bf16.mxu1 %vm3612_vm1, %v3611_v17 }
0x137b   :  { %v1577_v48 = vpop.f32.mrb[44].mxu1 }
0x137c   :  { %v1578_v49 = vadd.f32 %v3039_v47, %v1577_v48  ;;  %v3354_v50 = vpop.f32.mrb[45].mxu1 }
0x137d   :  { %v1580_v51 = vpop.f32.mrb[46].mxu1 }
0x137e   :  { %v4097_v53 = vpack.c.bf16 %v1578_v49, %v1578_v49  ;;  %v1581_v54 = vadd.f32 %v3039_v47, %v1580_v51  ;;  %v3355_v55 = vpop.f32.mrb[47].mxu1 }
0x1380   :  { %v4099_v56 = vpack.c.bf16 %v1581_v54, %v1581_v54  ;;  %1592 = vrot.lane.b32.xlu0 %v4097_v53, %s3613_s3 }
0x1382   :  { %1641 = vrot.lane.b32.xlu1 %v4099_v56, %s3613_s3 }
0x13f2   :  { %v1593_v58 = vpop.permute.xlu0 %1592 }
0x13f3   :  { %v1598_v59 = vsel %vm177_vm2, %v1593_v58, 0 }
0x13f4   :  { %3357 = vmatpush3.bf16.xpose.msra.mxu1 %v1598_v59  ;;  %v1642_v52 = vpop.permute.xlu1 %1641 }
0x13f5   :  { %v1647_v60 = vsel %vm177_vm2, %v1642_v52, 0  ;;  %3368 = vmatprep.subr.bf16.mxu1 %v3611_v17 }
0x13f6   :  { %3363 = vmatpush3.bf16.xpose.msra.mxu0 %v1647_v60 }
0x13f7   :  { %3374 = vmatprep.subr.bf16.mxu0 %v3611_v17 }
0x13fb   :  { %3359 = vmatmul.mubr.msk.bf16.vlgmr.msra.gmra.mrb[48].mxu1 %vm177_vm2, %v4097_v53 }
0x13fc   :  { %3370 = vmatprep.mubr.msk.bf16.mxu1 %vm3612_vm1, %v3611_v17 }
0x13fd   :  { %3365 = vmatmul.mubr.msk.bf16.vlgmr.msra.gmra.mrb[48].mxu0 %vm177_vm2, %v4099_v56 }
0x13fe   :  { %3376 = vmatprep.mubr.msk.bf16.mxu0 %vm3612_vm1, %v3611_v17 }
0x14ce   :  { %v1634_v61 = vpop.f32.mrb[48].mxu1 }
0x14cf   :  { %v1689_v62 = vmul.f32 0.35355338, %v1634_v61  ;;  %v3360_v63 = vpop.f32.mrb[49].mxu1 }
0x14d0   :  { %v1637_v1 = vpop.f32.mrb[50].mxu1  ;;  %v1683_v2 = vpop.f32.mrb[48].mxu0 }
0x14d1   :  { %v1690_v4 = vmul.f32 0.35355338, %v1683_v2  ;;  %v3361_v5 = vpop.f32.mrb[51].mxu1  ;;  %v3366_v35 = vpop.f32.mrb[49].mxu0  ;;  %v1691_v6 = vadd.f32 %v4120_v36, %v1689_v62 }
0x14d2   :  { %v1686_v7 = vpop.f32.mrb[50].mxu0 }
0x14d3   :  { %v3367_v8 = vpop.f32.mrb[51].mxu0  ;;  %v1693_v9 = vsel %vm177_vm2, %v1691_v6, -inf  ;;  %v1692_v11 = vadd.f32 %v4127_v10, %v1690_v4 }
0x14d4   :  { %1694 = vmax.xlane.f32.xlu1 %v1693_v9 }
0x14d5   :  { %v1696_v12 = vsel %vm177_vm2, %v1692_v11, -inf }
0x14d6   :  { %1697 = vmax.xlane.f32.xlu0 %v1696_v12 }
0x14e5   :  { %1765 = vrot.lane.b32.xlu1 %v4099_v56, %s3614_s23 }
0x14e9   :  { %1817 = vrot.lane.b32.xlu1 %v4097_v53, %s3615_s24 }
0x1561   :  { %v1695_v13 = vpop.xlane.xlu1 %1694 }
0x1562   :  { %v1699_v14 = vsub.f32 %v1691_v6, %v1695_v13 }
0x1563   :  { %v1698_v15 = vpop.xlane.xlu0 %1697 }
0x1564   :  { %v1701_v0 = vmul.f32 1.442695, %v1699_v14  ;;  %v1700_v16 = vsub.f32 %v1692_v11, %v1698_v15 }
0x1565   :  { %v1766_v18 = vpop.permute.xlu1 %1765 }
0x1566   :  { %3565 = vpow2.f32 %v1701_v0  ;;  %v1703_v3 = vmul.f32 1.442695, %v1700_v16  ;;  %v1771_v19 = vsel %vm318_vm3, %v1766_v18, 0 }
0x1567   :  { %3375 = vmatpush3.bf16.msra.mxu0 %v1771_v19 }
0x1568   :  { %3567 = vpow2.f32 %v1703_v3  ;;  %3386 = vmatprep.subr.bf16.mxu0 %v3611_v17 }
0x1569   :  { %v1818_v22 = vpop.permute.xlu1 %1817 }
0x156a   :  { %v1823_v33 = vsel %vm177_vm2, %v1818_v22, 0 }
0x1570   :  { %v3566_v20 = vpop.eup %3565 }
0x1571   :  { %v1705_v57 = vsel %vm177_vm2, %v3566_v20, 0.0 }
0x1572   :  { %v3568_v21 = vpop.eup %3567  ;;  %1706 = vadd.xlane.f32.xlu0 %v1705_v57 }
0x1573   :  { %v1708_v46 = vsel %vm177_vm2, %v3568_v21, 0.0 }
0x1574   :  { %1709 = vadd.xlane.f32.xlu1 %v1708_v46 }
0x1585   :  { %1867 = vrot.lane.b32.xlu1 %v4099_v56, %s3615_s24 }
0x1588   :  { %1717 = vrot.lane.b32.xlu0 %v4097_v53, %s3614_s23 }
0x1589   :  { %1865 = vrot.lane.b32.xlu1 %v4099_v56, %s3616_s25 }
0x158c   :  { %1815 = vrot.lane.b32.xlu0 %v4097_v53, %s3616_s25 }
0x15ff   :  { %v1707_v23 = vpop.xlane.xlu0 %1706 }
0x1600   :  { %3569 = vrcp.f32 %v1707_v23  ;;  %v3041_v23 = vld [vmem:[%s4416_s6 + $0x20] sm:$0xff] }
0x1601   :  { %v1710_v24 = vpop.xlane.xlu1 %1709 }
0x1602   :  { %3571 = vrcp.f32 %v1710_v24 }
0x1603   :  { %v1718_v25 = vpop.permute.xlu0 %1717 }
0x1604   :  { %v1723_v26 = vsel %vm318_vm3, %v1718_v25, 0 }
0x1605   :  { %3369 = vmatpush3.bf16.msra.mxu1 %v1723_v26  ;;  %v1868_v31 = vpop.permute.xlu1 %1867  ;;  %v1814_v26 = vpack.c.bf16 %v3041_v23, %v3041_v23 }
0x1606   :  { %3380 = vmatprep.subr.bf16.mxu1 %v3611_v17  ;;  %v1873_v34 = vsel %vm177_vm2, %v1868_v31, 0 }
0x1607   :  { %v1816_v37 = vpop.permute.xlu0 %1815 }
0x1609   :  { %v1866_v38 = vpop.permute.xlu1 %1865 }
0x160a   :  { %v3570_v27 = vpop.eup %3569 }
0x160b   :  { %v1713_v43 = vmul.f32 %v3570_v27, %v3566_v20  ;;  %v3042_v20 = vld [vmem:[%s4416_s6 + $0x28] sm:$0xff] }
0x160c   :  { %v3572_v28 = vpop.eup %3571  ;;  %v2040_v46 = vpack.c.bf16 %v3042_v20, %v3042_v20 }
0x160d   :  { %v1714_v29 = vmul.f32 %v3572_v28, %v3568_v21  ;;  %v1715_v30 = vpack.c.bf16 %v1713_v43, %v1713_v43 }
0x160e   :  { %v2045_v27 = vsel %vm318_vm3, %v2040_v46, 0 }
0x160f   :  { %3371 = vmatmul.mubr.msk.bf16.vlgmr.msra.gmra.mrb[52].mxu1 %vm177_vm2, %v1715_v30  ;;  %v1716_v32 = vpack.c.bf16 %v1714_v29, %v1714_v29  ;;  %v2092_v30 = vsel %vm318_vm3, %v1814_v26, 0 }
0x1610   :  { %3381 = vmatpush3.bf16.xpose.msra.mxu1 %v1823_v33  ;;  %3382 = vmatprep.mubr.msk.bf16.mxu1 %vm3612_vm1, %v3611_v17 }
0x1611   :  { %3377 = vmatmul.mubr.msk.bf16.vlgmr.msra.gmra.mrb[52].mxu0 %vm177_vm2, %v1716_v32  ;;  %3392 = vmatprep.subr.bf16.mxu1 %v3611_v17 }
0x1612   :  { %3387 = vmatpush3.bf16.xpose.msra.mxu0 %v1873_v34  ;;  %3388 = vmatprep.mubr.msk.bf16.mxu0 %vm3612_vm1, %v3611_v17 }
0x1613   :  { %3398 = vmatprep.subr.bf16.mxu0 %v3611_v17 }
0x1617   :  { %3383 = vmatmul.mubr.msk.bf16.vlgmr.msra.gmra.mrb[56].mxu1 %vm177_vm2, %v1816_v37 }
0x1618   :  { %3394 = vmatprep.mubr.msk.bf16.mxu1 %vm3612_vm1, %v3611_v17 }
0x1619   :  { %3389 = vmatmul.mubr.msk.bf16.vlgmr.msra.gmra.mrb[56].mxu0 %vm177_vm2, %v1866_v38 }
0x161a   :  { %3400 = vmatprep.mubr.msk.bf16.mxu0 %vm3612_vm1, %v3611_v17 }
0x16e2   :  { %v4165_v39 = vpop.f32.mrb[52].mxu1 }
0x16e3   :  { %v3372_v40 = vpop.f32.mrb[53].mxu1 }
0x16e4   :  { %v1762_v41 = vpop.f32.mrb[54].mxu1  ;;  %v4167_v45 = vpop.f32.mrb[52].mxu0 }
0x16e5   :  { %v1813_v47 = vpack.c.bf16 %v4167_v45, %v4165_v39  ;;  %v3373_v48 = vpop.f32.mrb[55].mxu1  ;;  %v3378_v49 = vpop.f32.mrb[53].mxu0 }
0x16e6   :  { %v1810_v50 = vpop.f32.mrb[54].mxu0 }
0x16e7   :  { %v3379_v51 = vpop.f32.mrb[55].mxu0 }
0x16ea   :  { %v1859_v54 = vpop.f32.mrb[56].mxu1 }
0x16eb   :  { %v1915_v55 = vmul.f32 0.35355338, %v1859_v54  ;;  %v3384_v58 = vpop.f32.mrb[57].mxu1 }
0x16ec   :  { %v1862_v59 = vpop.f32.mrb[58].mxu1  ;;  %v1909_v52 = vpop.f32.mrb[56].mxu0 }
0x16ed   :  { %v1916_v60 = vmul.f32 0.35355338, %v1909_v52  ;;  %v3385_v61 = vpop.f32.mrb[59].mxu1  ;;  %v3390_v62 = vpop.f32.mrb[57].mxu0  ;;  %v1917_v63 = vadd.f32 %v4120_v36, %v1915_v55 }
0x16ee   :  { %v1912_v1 = vpop.f32.mrb[58].mxu0 }
0x16ef   :  { %v3391_v2 = vpop.f32.mrb[59].mxu0  ;;  %v1919_v4 = vsel %vm177_vm2, %v1917_v63, -inf  ;;  %v1918_v5 = vadd.f32 %v4127_v10, %v1916_v60 }
0x16f0   :  { %1920 = vmax.xlane.f32.xlu0 %v1919_v4 }
0x16f1   :  { %v1922_v35 = vsel %vm177_vm2, %v1918_v5, -inf }
0x16f2   :  { %1923 = vmax.xlane.f32.xlu1 %v1922_v35 }
0x1703   :  { %1991 = vrot.lane.b32.xlu1 %v4099_v56, %s3617_s26 }
0x1707   :  { %2137 = vrot.lane.b32.xlu1 %v4097_v53, %s3618_s27 }
0x170b   :  { %2187 = vrot.lane.b32.xlu1 %v4099_v56, %s3618_s27 }
0x170f   :  { %2185 = vrot.lane.b32.xlu1 %v4099_v56, %s4447_s1 }
0x177d   :  { %v1921_v6 = vpop.xlane.xlu0 %1920 }
0x177e   :  { %v1925_v7 = vsub.f32 %v1917_v63, %v1921_v6 }
0x177f   :  { %v1924_v8 = vpop.xlane.xlu1 %1923 }
0x1780   :  { %v1927_v9 = vmul.f32 1.442695, %v1925_v7  ;;  %v1926_v11 = vsub.f32 %v1918_v5, %v1924_v8 }
0x1782   :  { %3573 = vpow2.f32 %v1927_v9  ;;  %v1929_v12 = vmul.f32 1.442695, %v1926_v11 }
0x1783   :  { %v1992_v13 = vpop.permute.xlu1 %1991 }
0x1784   :  { %3575 = vpow2.f32 %v1929_v12  ;;  %v1997_v14 = vsel %vm318_vm3, %v1992_v13, 0 }
0x1785   :  { %3399 = vmatpush3.bf16.msra.mxu0 %v1997_v14 }
0x1786   :  { %3410 = vmatprep.subr.bf16.mxu0 %v3611_v17 }
0x1787   :  { %v2138_v31 = vpop.permute.xlu1 %2137 }
0x1788   :  { %v2143_v49 = vsel %vm177_vm2, %v2138_v31, 0 }
0x178b   :  { %v2188_v33 = vpop.permute.xlu1 %2187 }
0x178c   :  { %v3574_v15 = vpop.eup %3573  ;;  %v2193_v32 = vsel %vm177_vm2, %v2188_v33, 0 }
0x178d   :  { %v1931_v0 = vsel %vm177_vm2, %v3574_v15, 0.0 }
0x178e   :  { %v3576_v16 = vpop.eup %3575  ;;  %1932 = vadd.xlane.f32.xlu0 %v1931_v0 }
0x178f   :  { %v1934_v18 = vsel %vm177_vm2, %v3576_v16, 0.0  ;;  %v2186_v34 = vpop.permute.xlu1 %2185 }
0x1792   :  { %1935 = vadd.xlane.f32.xlu0 %v1934_v18 }
0x17a8   :  { %1943 = vrot.lane.b32.xlu0 %v4097_v53, %s3617_s26  ;;  %s4448_s26 = smov 48  }
0x17ac   :  { %2135 = vrot.lane.b32.xlu0 %v4097_v53, %s4447_s1 }
0x181b   :  { %v1933_v3 = vpop.xlane.xlu0 %1932 }
0x181c   :  { %3577 = vrcp.f32 %v1933_v3 }
0x181f   :  { %v1936_v19 = vpop.xlane.xlu0 %1935 }
0x1820   :  { %3579 = vrcp.f32 %v1936_v19 }
0x1823   :  { %v1944_v57 = vpop.permute.xlu0 %1943 }
0x1824   :  { %v1949_v21 = vsel %vm318_vm3, %v1944_v57, 0 }
0x1825   :  { %3393 = vmatpush3.bf16.msra.mxu1 %v1949_v21 }
0x1826   :  { %v3578_v22 = vpop.eup %3577  ;;  %3404 = vmatprep.subr.bf16.mxu1 %v3611_v17 }
0x1827   :  { %v1939_v24 = vmul.f32 %v3578_v22, %v3574_v15  ;;  %v2136_v55 = vpop.permute.xlu0 %2135 }
0x1829   :  { %v1941_v25 = vpack.c.bf16 %v1939_v24, %v1939_v24 }
0x182a   :  { %v3580_v43 = vpop.eup %3579 }
0x182b   :  { %v1940_v28 = vmul.f32 %v3580_v43, %v3576_v16  ;;  %3395 = vmatmul.mubr.msk.bf16.vlgmr.msra.gmra.mrb[60].mxu1 %vm177_vm2, %v1941_v25 }
0x182c   :  { %3405 = vmatpush3.bf16.msra.mxu1 %v2045_v27  ;;  %3406 = vmatprep.mubr.msk.bf16.mxu1 %vm3612_vm1, %v3611_v17 }
0x182d   :  { %v1942_v29 = vpack.c.bf16 %v1940_v28, %v1940_v28  ;;  %3416 = vmatprep.subr.bf16.mxu1 %v3611_v17 }
0x182f   :  { %3401 = vmatmul.mubr.msk.bf16.vlgmr.msra.gmra.mrb[60].mxu0 %vm177_vm2, %v1942_v29 }
0x1830   :  { %3411 = vmatpush3.bf16.msra.mxu0 %v2092_v30  ;;  %3412 = vmatprep.mubr.msk.bf16.mxu0 %vm3612_vm1, %v3611_v17 }
0x1831   :  { %3422 = vmatprep.subr.bf16.mxu0 %v3611_v17 }
0x1837   :  { %3413 = vmatmul.mubr.msk.bf16.vlgmr.msra.gmra.mrb[64].mxu0 %vm177_vm2, %v1813_v47 }
0x1838   :  { %3424 = vmatprep.mubr.msk.bf16.mxu0 %vm3612_vm1, %v3611_v17 }
0x1839   :  { %3423 = vmatpush3.bf16.xpose.msra.mxu0 %v2193_v32 }
0x183a   :  { %3434 = vmatprep.subr.bf16.mxu0 %v3611_v17 }
0x1840   :  { %3425 = vmatmul.mubr.msk.bf16.vlgmr.msra.gmra.mrb[68].mxu0 %vm177_vm2, %v2186_v34 }
0x1841   :  { %3436 = vmatprep.mubr.msk.bf16.mxu0 %vm3612_vm1, %v3611_v17 }
0x18fe   :  { %v1985_v37 = vpop.f32.mrb[60].mxu1 }
0x18ff   :  { %v3396_v38 = vpop.f32.mrb[61].mxu1 }
0x1900   :  { %v1988_v40 = vpop.f32.mrb[62].mxu1 }
0x1901   :  { %v3397_v39 = vpop.f32.mrb[63].mxu1 }
0x1902   :  { %v2033_v41 = vpop.f32.mrb[60].mxu0 }
0x1903   :  { %v2039_v45 = vpack.c.bf16 %v2033_v41, %v1985_v37  ;;  %v3402_v47 = vpop.f32.mrb[61].mxu0 }
0x1904   :  { %v2036_v48 = vpop.f32.mrb[62].mxu0 }
0x1905   :  { %v3403_v50 = vpop.f32.mrb[63].mxu0  ;;  %3407 = vmatmul.mubr.msk.bf16.vlgmr.msra.gmra.mrb[64].mxu1 %vm177_vm2, %v2039_v45  ;;  %v3043_v48 = vld [vmem:[%s4416_s6 + $0x30] sm:$0xff] }
0x1906   :  { %3417 = vmatpush3.bf16.xpose.msra.mxu1 %v2143_v49  ;;  %3418 = vmatprep.mubr.msk.bf16.mxu1 %vm3612_vm1, %v3611_v17  ;;  %v2360_v49 = vpack.c.bf16 %v3043_v48, %v3043_v48 }
0x1907   :  { %3428 = vmatprep.subr.bf16.mxu1 %v3611_v17 }
0x1908   :  { %v2365_v50 = vsel %vm318_vm3, %v2360_v49, 0 }
0x190a   :  { %v2128_v51 = vpop.f32.mrb[64].mxu0 }
0x190b   :  { %v3414_v54 = vpop.f32.mrb[65].mxu0 }
0x190c   :  { %v2131_v58 = vpop.f32.mrb[66].mxu0 }
0x190d   :  { %v3415_v59 = vpop.f32.mrb[67].mxu0  ;;  %3419 = vmatmul.mubr.msk.bf16.vlgmr.msra.gmra.mrb[68].mxu1 %vm177_vm2, %v2136_v55 }
0x190e   :  { %3430 = vmatprep.mubr.msk.bf16.mxu1 %vm3612_vm1, %v3611_v17 }
0x1913   :  { %v2229_v52 = vpop.f32.mrb[68].mxu0 }
0x1914   :  { %v2236_v60 = vmul.f32 0.35355338, %v2229_v52  ;;  %v3426_v61 = vpop.f32.mrb[69].mxu0 }
0x1915   :  { %v2232_v62 = vpop.f32.mrb[70].mxu0 }
0x1916   :  { %v3427_v63 = vpop.f32.mrb[71].mxu0  ;;  %v2238_v1 = vadd.f32 %v4127_v10, %v2236_v60 }
0x1918   :  { %v2242_v2 = vsel %vm177_vm2, %v2238_v1, -inf }
0x1919   :  { %2243 = vmax.xlane.f32.xlu1 %v2242_v2 }
0x192a   :  { %2311 = vrot.lane.b32.xlu1 %v4099_v56, %s4448_s26 }
0x192e   :  { %2412 = vrot.lane.b32.xlu1 %v4097_v53, %s4449_s21 }
0x1932   :  { %2462 = vrot.lane.b32.xlu1 %v4099_v56, %s4449_s21 }
0x1936   :  { %2460 = vrot.lane.b32.xlu1 %v4099_v56, %s4450_s0 }
0x19a6   :  { %v2244_v4 = vpop.xlane.xlu1 %2243 }
0x19a7   :  { %v2246_v6 = vsub.f32 %v2238_v1, %v2244_v4 }
0x19a9   :  { %v2249_v7 = vmul.f32 1.442695, %v2246_v6 }
0x19aa   :  { %v2312_v5 = vpop.permute.xlu1 %2311 }
0x19ab   :  { %v2317_v35 = vsel %vm318_vm3, %v2312_v5, 0  ;;  %3581 = vpow2.f32 %v2249_v7 }
0x19ac   :  { %3435 = vmatpush3.bf16.msra.mxu0 %v2317_v35 }
0x19ad   :  { %3446 = vmatprep.subr.bf16.mxu0 %v3611_v17 }
0x19ae   :  { %v2413_v28 = vpop.permute.xlu1 %2412 }
0x19af   :  { %v2418_v30 = vsel %vm177_vm2, %v2413_v28, 0 }
0x19b2   :  { %v2463_v61 = vpop.permute.xlu1 %2462 }
0x19b3   :  { %v2468_v4 = vsel %vm177_vm2, %v2463_v61, 0 }
0x19b5   :  { %v3582_v57 = vpop.eup %3581 }
0x19b6   :  { %v2254_v21 = vsel %vm177_vm2, %v3582_v57, 0.0 }
0x19d8   :  { %v2081_v8 = vpop.f32.mrb[64].mxu1 }
0x19d9   :  { %v4240_v9 = vadd.f32 %v2128_v51, %v2081_v8  ;;  %v3408_v11 = vpop.f32.mrb[65].mxu1 }
0x19da   :  { %v2084_v12 = vpop.f32.mrb[66].mxu1 }
0x19db   :  { %v4242_v13 = vadd.f32 %v2131_v58, %v2084_v12  ;;  %v3409_v14 = vpop.f32.mrb[67].mxu1 }
0x19e0   :  { %v2179_v15 = vpop.f32.mrb[68].mxu1 }
0x19e1   :  { %v2235_v0 = vmul.f32 0.35355338, %v2179_v15  ;;  %v3420_v16 = vpop.f32.mrb[69].mxu1 }
0x19e2   :  { %v2182_v18 = vpop.f32.mrb[70].mxu1 }
0x19e3   :  { %v3421_v3 = vpop.f32.mrb[71].mxu1  ;;  %v2237_v19 = vadd.f32 %v4120_v36, %v2235_v0 }
0x19e5   :  { %v2239_v20 = vsel %vm177_vm2, %v2237_v19, -inf }
0x19e6   :  { %2240 = vmax.xlane.f32.xlu0 %v2239_v20 }
0x19ea   :  { %2255 = vadd.xlane.f32.xlu0 %v2254_v21 }
0x1a73   :  { %v2241_v46 = vpop.xlane.xlu0 %2240 }
0x1a74   :  { %v2245_v22 = vsub.f32 %v2237_v19, %v2241_v46 }
0x1a76   :  { %v2247_v23 = vmul.f32 1.442695, %v2245_v22 }
0x1a77   :  { %v2256_v24 = vpop.xlane.xlu0 %2255 }
0x1a78   :  { %3583 = vpow2.f32 %v2247_v23 }
0x1a79   :  { %3585 = vrcp.f32 %v2256_v24 }
0x1a82   :  { %v3584_v25 = vpop.eup %3583 }
0x1a83   :  { %v3586_v26 = vpop.eup %3585  ;;  %v2251_v27 = vsel %vm177_vm2, %v3584_v25, 0.0 }
0x1a84   :  { %v2260_v43 = vmul.f32 %v3586_v26, %v3582_v57  ;;  %2252 = vadd.xlane.f32.xlu0 %v2251_v27 }
0x1a86   :  { %v2262_v29 = vpack.c.bf16 %v2260_v43, %v2260_v43 }
0x1a88   :  { %3437 = vmatmul.mubr.msk.bf16.vlgmr.msra.gmra.mrb[72].mxu0 %vm177_vm2, %v2262_v29 }
0x1a89   :  { %3447 = vmatpush3.bf16.xpose.msra.mxu0 %v2418_v30  ;;  %3448 = vmatprep.mubr.msk.bf16.mxu0 %vm3612_vm1, %v3611_v17 }
0x1a8a   :  { %3458 = vmatprep.subr.bf16.mxu0 %v3611_v17 }
0x1a9a   :  { %2263 = vrot.lane.b32.xlu0 %v4097_v53, %s4448_s26 }
0x1a9e   :  { %2410 = vrot.lane.b32.xlu0 %v4097_v53, %s4450_s0 }
0x1b11   :  { %v2253_v31 = vpop.xlane.xlu0 %2252 }
0x1b12   :  { %3587 = vrcp.f32 %v2253_v31 }
0x1b15   :  { %v2264_v33 = vpop.permute.xlu0 %2263 }
0x1b16   :  { %v2269_v32 = vsel %vm318_vm3, %v2264_v33, 0 }
0x1b17   :  { %3429 = vmatpush3.bf16.msra.mxu1 %v2269_v32 }
0x1b18   :  { %3440 = vmatprep.subr.bf16.mxu1 %v3611_v17 }
0x1b19   :  { %v2411_v34 = vpop.permute.xlu0 %2410 }
0x1b1a   :  { %3449 = vmatmul.mubr.msk.bf16.vlgmr.msra.gmra.mrb[76].mxu0 %vm177_vm2, %v2411_v34  ;;  %v3044_v34 = vld [vmem:[%s4416_s6 + $0x38] sm:$0xff] }
0x1b1b   :  { %3460 = vmatprep.mubr.msk.bf16.mxu0 %vm3612_vm1, %v3611_v17 }
0x1b1c   :  { %v3588_v37 = vpop.eup %3587 }
0x1b1d   :  { %v2259_v38 = vmul.f32 %v3588_v37, %v3584_v25  ;;  %v2635_v37 = vpack.c.bf16 %v3044_v34, %v3044_v34 }
0x1b1f   :  { %v2261_v40 = vpack.c.bf16 %v2259_v38, %v2259_v38  ;;  %v2640_v38 = vsel %vm318_vm3, %v2635_v37, 0  ;;  %v3082_v37 = vld [vmem:[%s4421_s12 + $0x60] sm:$0xff] }
0x1b21   :  { %3431 = vmatmul.mubr.msk.bf16.vlgmr.msra.gmra.mrb[72].mxu1 %vm177_vm2, %v2261_v40 }
0x1b22   :  { %3442 = vmatprep.mubr.msk.bf16.mxu1 %vm3612_vm1, %v3611_v17  ;;  %3441 = vmatpush3.bf16.msra.mxu1 %v2365_v50 }
0x1b23   :  { %3452 = vmatprep.subr.bf16.mxu1 %v3611_v17 }
0x1b5b   :  { %v2353_v39 = vpop.f32.mrb[72].mxu0 }
0x1b5c   :  { %v3438_v41 = vpop.f32.mrb[73].mxu0 }
0x1b5d   :  { %v2356_v45 = vpop.f32.mrb[74].mxu0 }
0x1b5e   :  { %v3439_v47 = vpop.f32.mrb[75].mxu0 }
0x1bed   :  { %v2454_v51 = vpop.f32.mrb[76].mxu0 }
0x1bee   :  { %v2510_v54 = vmul.f32 0.35355338, %v2454_v51  ;;  %v3450_v55 = vpop.f32.mrb[77].mxu0 }
0x1bef   :  { %v2457_v58 = vpop.f32.mrb[78].mxu0  ;;  %v3066_v55 = vld [vmem:[%s4417_s7 + $0x1] ss:$0 sm:$0xff] }
0x1bf0   :  { %v3451_v59 = vpop.f32.mrb[79].mxu0  ;;  %v2512_v52 = vadd.f32 %v4120_v36, %v2510_v54  ;;  %v2461_v36 = vpop.permute.xlu1 %2460 }
0x1bf2   :  { %v2514_v60 = vsel %vm177_vm2, %v2512_v52, -inf }
0x1bf3   :  { %2515 = vmax.xlane.f32.xlu0 %v2514_v60 }
0x1bf4   :  { %v2305_v62 = vpop.f32.mrb[72].mxu1 }
0x1bf5   :  { %v2359_v63 = vpack.c.bf16 %v2353_v39, %v2305_v62  ;;  %v3432_v1 = vpop.f32.mrb[73].mxu1 }
0x1bf6   :  { %v2308_v2 = vpop.f32.mrb[74].mxu1 }
0x1bf7   :  { %v3433_v5 = vpop.f32.mrb[75].mxu1  ;;  %3443 = vmatmul.mubr.msk.bf16.vlgmr.msra.gmra.mrb[76].mxu1 %vm177_vm2, %v2359_v63 }
0x1bf8   :  { %3453 = vmatpush3.bf16.xpose.msra.mxu1 %v2468_v4  ;;  %3454 = vmatprep.mubr.msk.bf16.mxu1 %vm3612_vm1, %v3611_v17 }
0x1bf9   :  { %3464 = vmatprep.subr.bf16.mxu1 %v3611_v17 }
0x1bff   :  { %3455 = vmatmul.mubr.msk.bf16.vlgmr.msra.gmra.mrb[80].mxu1 %vm177_vm2, %v2461_v36 }
0x1c00   :  { %3466 = vmatprep.mubr.msk.bf16.mxu1 %vm3612_vm1, %v3611_v17 }
0x1c80   :  { %v2516_v35 = vpop.xlane.xlu0 %2515 }
0x1c81   :  { %v2520_v6 = vsub.f32 %v2512_v52, %v2516_v35 }
0x1c83   :  { %v2522_v7 = vmul.f32 1.442695, %v2520_v6 }
0x1c85   :  { %3589 = vpow2.f32 %v2522_v7 }
0x1c8f   :  { %v3590_v8 = vpop.eup %3589 }
0x1c90   :  { %v2526_v11 = vsel %vm177_vm2, %v3590_v8, 0.0 }
0x1c91   :  { %2527 = vadd.xlane.f32.xlu0 %v2526_v11 }
0x1cca   :  { %v2401_v12 = vpop.f32.mrb[76].mxu1 }
0x1ccb   :  { %v2408_v14 = vadd.f32 %v2401_v12, %v4240_v9  ;;  %v3444_v15 = vpop.f32.mrb[77].mxu1 }
0x1ccc   :  { %v2404_v0 = vpop.f32.mrb[78].mxu1 }
0x1ccd   :  { %v4283_v16 = vadd.f32 %v2404_v0, %v4242_v13  ;;  %v3445_v18 = vpop.f32.mrb[79].mxu1  ;;  %v3072_v0 = vld [vmem:[%s4418_s10 + $0x28] sm:$0xff] }
0x1cce   :  { %v3073_v18 = vld [vmem:[%s4418_s10 + $0x30] sm:$0xff] }
0x1cd2   :  { %v2504_v3 = vpop.f32.mrb[80].mxu1 }
0x1cd3   :  { %v2511_v19 = vmul.f32 0.35355338, %v2504_v3  ;;  %v3456_v20 = vpop.f32.mrb[81].mxu1  ;;  %v3074_v3 = vld [vmem:[%s4418_s10 + $0x38] sm:$0xff] }
0x1cd4   :  { %v2507_v57 = vpop.f32.mrb[82].mxu1 }
0x1cd5   :  { %v3457_v21 = vpop.f32.mrb[83].mxu1  ;;  %v2513_v46 = vadd.f32 %v4127_v10, %v2511_v19  ;;  %v2750_v19 = vpack.c.bf16 %v3074_v3, %v3073_v18 }
0x1cd7   :  { %v2517_v22 = vsel %vm177_vm2, %v2513_v46, -inf }
0x1cd8   :  { %2518 = vmax.xlane.f32.xlu1 %v2517_v22 }
0x1ce9   :  { %2586 = vrot.lane.b32.xlu1 %v4099_v56, %s4451_s20 }
0x1d1e   :  { %v2528_v10 = vpop.xlane.xlu0 %2527 }
0x1d65   :  { %v2519_v9 = vpop.xlane.xlu1 %2518 }
0x1d66   :  { %v2521_v23 = vsub.f32 %v2513_v46, %v2519_v9 }
0x1d68   :  { %v2524_v24 = vmul.f32 1.442695, %v2521_v23 }
0x1d69   :  { %v2587_v25 = vpop.permute.xlu1 %2586 }
0x1d6a   :  { %3591 = vpow2.f32 %v2524_v24  ;;  %v2592_v13 = vsel %vm318_vm3, %v2587_v25, 0  ;;  %v3069_v24 = vld [vmem:[%s4419_s8 + $0x1] ss:$0 sm:$0xff] }
0x1d6b   :  { %3465 = vmatpush3.bf16.msra.mxu1 %v2592_v13  ;;  %3593 = vrcp.f32 %v2528_v10  ;;  %v3070_v10 = vld [vmem:[%s4420_s9 + $0x1] ss:$0 sm:$0xff] }
0x1d6c   :  { %3476 = vmatprep.subr.bf16.mxu1 %v3611_v17 }
0x1d74   :  { %v3592_v26 = vpop.eup %3591 }
0x1d75   :  { %v2529_v27 = vsel %vm177_vm2, %v3592_v26, 0.0  ;;  %v3594_v56 = vpop.eup %3593 }
0x1d76   :  { %2530 = vadd.xlane.f32.xlu0 %v2529_v27  ;;  %v2534_v28 = vmul.f32 %v3594_v56, %v3590_v8 }
0x1d78   :  { %v2536_v31 = vpack.c.bf16 %v2534_v28, %v2534_v28 }
0x1d8c   :  { %2538 = vrot.lane.b32.xlu0 %v4097_v53, %s4451_s20 }
0x1e03   :  { %v2531_v43 = vpop.xlane.xlu0 %2530 }
0x1e04   :  { %3595 = vrcp.f32 %v2531_v43 }
0x1e07   :  { %v2539_v29 = vpop.permute.xlu0 %2538 }
0x1e08   :  { %v2544_v30 = vsel %vm318_vm3, %v2539_v29, 0 }
0x1e09   :  { %3459 = vmatpush3.bf16.msra.mxu0 %v2544_v30  ;;  %v3078_v30 = vld [vmem:[%s4421_s12 + $0x40] sm:$0xff] }
0x1e0a   :  { %3470 = vmatprep.subr.bf16.mxu0 %v3611_v17 }
0x1e0c   :  { %3461 = vmatmul.mubr.msk.bf16.vlgmr.msra.gmra.mrb[80].mxu0 %vm177_vm2, %v2536_v31  ;;  %v3079_v31 = vld [vmem:[%s4421_s12 + $0x48] sm:$0xff] }
0x1e0d   :  { %3472 = vmatprep.mubr.msk.bf16.mxu0 %vm3612_vm1, %v3611_v17  ;;  %3471 = vmatpush3.bf16.msra.mxu0 %v2640_v38  ;;  %v3083_v38 = vld [vmem:[%s4421_s12 + $0x68] sm:$0xff] }
0x1e0e   :  { %v3596_v33 = vpop.eup %3595  ;;  %3484 = vmatprep.subr.bf16.mxu0 %v3611_v17 }
0x1e0f   :  { %v2535_v53 = vmul.f32 %v3596_v33, %v3592_v26  ;;  %v3080_v33 = vld [vmem:[%s4421_s12 + $0x50] sm:$0xff] }
0x1e11   :  { %v2537_v32 = vpack.c.bf16 %v2535_v53, %v2535_v53  ;;  %v2831_v53 = vpack.c.bf16 %v3079_v31, %v3078_v30  ;;  %v2938_v30 = vld [vmem:[%s4426_s16 + $0x18] sm:$0xff] }
0x1e13   :  { %3467 = vmatmul.mubr.msk.bf16.vlgmr.msra.gmra.mrb[84].mxu1 %vm177_vm2, %v2537_v32  ;;  %v3081_v32 = vld [vmem:[%s4421_s12 + $0x58] sm:$0xff] }
0x1e14   :  { %3480 = vmatprep.mubr.msk.bf16.mxu1 %vm3612_vm1, %v3611_v17  ;;  %v2832_v34 = vpack.c.bf16 %v3081_v32, %v3080_v33 }
0x1edf   :  { %v2580_v40 = vpop.f32.mrb[80].mxu0 }
0x1ee0   :  { %v3462_v39 = vpop.f32.mrb[81].mxu0 }
0x1ee1   :  { %v2583_v41 = vpop.f32.mrb[82].mxu0  ;;  %v3084_v39 = vld [vmem:[%s4421_s12 + $0x70] sm:$0xff] }
0x1ee2   :  { %v3463_v45 = vpop.f32.mrb[83].mxu0  ;;  %v3085_v41 = vld [vmem:[%s4421_s12 + $0x78] sm:$0xff] }
0x1ee3   :  { %v2834_v45 = vpack.c.bf16 %v3085_v41, %v3084_v39  ;;  %v3091_v39 = vld [vmem:[%s4424_s14 + $0x1] ss:$0 sm:$0xff] }
0x1ee6   :  { %v2628_v47 = vpop.f32.mrb[84].mxu1 }
0x1ee7   :  { %v2634_v48 = vpack.c.bf16 %v2628_v47, %v2580_v40  ;;  %v3468_v49 = vpop.f32.mrb[85].mxu1  ;;  %v2833_v40 = vpack.c.bf16 %v3083_v38, %v3082_v37  ;;  %v3076_v47 = vld [vmem:[%s4422_s11 + $0x1] ss:$0 sm:$0xff] }
0x1ee8   :  { %v2631_v50 = vpop.f32.mrb[86].mxu1 }
0x1ee9   :  { %v3469_v51 = vpop.f32.mrb[87].mxu1  ;;  %3473 = vmatmul.mubr.msk.bf16.vlgmr.msra.gmra.mrb[84].mxu0 %vm177_vm2, %v2634_v48 }
0x1eea   :  { %3492 = vmatprep.mubr.msk.bf16.mxu0 %vm3612_vm1, %v3611_v17  ;;  %3485 = vmatpush3.bf16.msra.mxu0 %v2831_v53 }
0x1eeb   :  { %3486 = vmatprep.subr.bf16.mxu0 %v3611_v17 }
0x1eee   :  { %3487 = vmatpush3.bf16.msra.mxu0 %v2832_v34 }
0x1eef   :  { %3488 = vmatprep.subr.bf16.mxu0 %v3611_v17 }
0x1ef2   :  { %3489 = vmatpush3.bf16.msra.mxu0 %v2833_v40 }
0x1ef3   :  { %3490 = vmatprep.subr.bf16.mxu0 %v3611_v17 }
0x1ef6   :  { %3491 = vmatpush3.bf16.msra.mxu0 %v2834_v45 }
0x1fbc   :  { %v2676_v54 = vpop.f32.mrb[84].mxu0 }
0x1fbd   :  { %v2683_v58 = vadd.f32 %v2676_v54, %v2408_v14  ;;  %v3474_v59 = vpop.f32.mrb[85].mxu0 }
0x1fbe   :  { %v2679_v52 = vpop.f32.mrb[86].mxu0 }
0x1fbf   :  { %v2693_v60 = vadd.f32 %v3066_v55, %v2683_v58  ;;  %v2684_v61 = vadd.f32 %v2679_v52, %v4283_v16  ;;  %v3475_v62 = vpop.f32.mrb[87].mxu0 }
0x1fc1   :  { %v2694_v63 = vadd.f32 %v3066_v55, %v2684_v61  ;;  %v2695_v1 = vadd.f32 %v2693_v60, %v4085_v42 }
0x1fc3   :  { %v2701_v2 = vsel %vm66_vm0, %v2695_v1, 0.0  ;;  %v2696_v4 = vadd.f32 %v2694_v63, %v4087_v44  ;;  %v3071_v44 = vld [vmem:[%s4418_s10 + $0x20] sm:$0xff] }
0x1fc4   :  { %2702 = vadd.xlane.f32.xlu1 %v2701_v2  ;;  %v2749_v16 = vpack.c.bf16 %v3072_v0, %v3071_v44 }
0x1fc5   :  { %v2704_v5 = vsel %vm66_vm0, %v2696_v4, 0.0 }
0x1fc6   :  { %2705 = vadd.xlane.f32.xlu0 %v2704_v5  ;;  %3477 = vmatpush3.bf16.msra.mxu1 %v2749_v16 }
0x1fc7   :  { %3478 = vmatprep.subr.bf16.mxu1 %v3611_v17 }
0x1fca   :  { %3479 = vmatpush3.bf16.msra.mxu1 %v2750_v19 }
0x1fcb   :  { %3496 = vmatprep.subr.bf16.mxu1 %v3611_v17 }
0x2051   :  { %v2703_v36 = vpop.xlane.xlu1 %2702 }
0x2052   :  { %v2707_v35 = vmul.f32 0.03125, %v2703_v36 }
0x2053   :  { %v2706_v6 = vpop.xlane.xlu0 %2705 }
0x2054   :  { %v2709_v7 = vsub.f32 %v2695_v1, %v2707_v35  ;;  %v2708_v8 = vmul.f32 0.03125, %v2706_v6 }
0x2056   :  { %v2710_v11 = vsub.f32 %v2696_v4, %v2708_v8  ;;  %v2711_v12 = vmul.f32 %v2709_v7, %v2709_v7 }
0x2058   :  { %v2713_v14 = vsel %vm66_vm0, %v2711_v12, 0.0  ;;  %v2712_v15 = vmul.f32 %v2710_v11, %v2710_v11 }
0x2059   :  { %2714 = vadd.xlane.f32.xlu0 %v2713_v14 }
0x205a   :  { %v2716_v42 = vsel %vm66_vm0, %v2712_v15, 0.0  ;;  %v3087_v15 = vld [vmem:[%s4423_s13 + $0x1] ss:$0 sm:$0xff] }
0x205b   :  { %2717 = vadd.xlane.f32.xlu1 %v2716_v42 }
0x20e6   :  { %v2715_v20 = vpop.xlane.xlu0 %2714 }
0x20e7   :  { %v2719_v57 = vmul.f32 0.03125, %v2715_v20 }
0x20e8   :  { %v2718_v21 = vpop.xlane.xlu1 %2717 }
0x20e9   :  { %v2721_v46 = vadd.f32 1e-12, %v2719_v57  ;;  %v2720_v22 = vmul.f32 0.03125, %v2718_v21 }
0x20eb   :  { %3597 = vrsqrt.f32 %v2721_v46  ;;  %v2722_v9 = vadd.f32 1e-12, %v2720_v22 }
0x20ed   :  { %3599 = vrsqrt.f32 %v2722_v9 }
0x20f5   :  { %v3598_v23 = vpop.eup %3597 }
0x20f6   :  { %v2725_v25 = vmul.f32 %v3598_v23, %v2709_v7 }
0x20f7   :  { %v3600_v13 = vpop.eup %3599 }
0x20f8   :  { %v2733_v26 = vmul.f32 %v3069_v24, %v2725_v25  ;;  %v2726_v27 = vmul.f32 %v3600_v13, %v2710_v11 }
0x20fa   :  { %v2734_v56 = vmul.f32 %v3069_v24, %v2726_v27  ;;  %v2741_v43 = vadd.f32 %v3070_v10, %v2733_v26 }
0x20fc   :  { %v2742_v28 = vadd.f32 %v3070_v10, %v2734_v56  ;;  %v2935_v56 = vld [vmem:[%s4426_s16] sm:$0xff] }
0x20fe   :  { %v2748_v29 = vpack.c.bf16 %v2742_v28, %v2741_v43 }
0x2100   :  { %3481 = vmatmul.mubr.msk.bf16.vlgmr.msra.gmra.mrb[88].mxu1 %vm66_vm0, %v2748_v29  ;;  %v2937_v29 = vld [vmem:[%s4426_s16 + $0x10] sm:$0xff] }
0x2101   :  { %3500 = vmatprep.mubr.msk.bf16.mxu1 %vm3612_vm1, %v3611_v17  ;;  %v2941_v31 = vpack.c.bf16 %v2938_v30, %v2937_v29 }
0x21d3   :  { %v2796_v48 = vpop.f32.mrb[88].mxu1 }
0x21d4   :  { %v2797_v49 = vadd.f32 %v3076_v47, %v2796_v48  ;;  %v3482_v50 = vpop.f32.mrb[89].mxu1 }
0x21d5   :  { %v2799_v51 = vpop.f32.mrb[90].mxu1 }
0x21d6   :  { %v2805_v54 = vmul.f32 0.044715, %v2797_v49  ;;  %v2800_v55 = vadd.f32 %v3076_v47, %v2799_v51  ;;  %v3483_v58 = vpop.f32.mrb[91].mxu1  ;;  %v2803_v6 = vmul.f32 0.5, %v2797_v49 }
0x21d8   :  { %v2807_v59 = vmul.f32 %v2805_v54, %v2797_v49  ;;  %v2806_v52 = vmul.f32 0.044715, %v2800_v55  ;;  %v2804_v7 = vmul.f32 0.5, %v2800_v55 }
0x21da   :  { %v2809_v60 = vmul.f32 %v2807_v59, %v2797_v49  ;;  %v2808_v61 = vmul.f32 %v2806_v52, %v2800_v55 }
0x21dc   :  { %v2811_v62 = vadd.f32 %v2809_v60, %v2797_v49  ;;  %v2810_v63 = vmul.f32 %v2808_v61, %v2800_v55 }
0x21de   :  { %v2813_v1 = vmul.f32 0.7978846, %v2811_v62  ;;  %v2812_v2 = vadd.f32 %v2810_v63, %v2800_v55  ;;  %v3093_v55 = vld [vmem:[%s4427_s17] ss:$0 sm:$0xff] }
0x21e0   :  { %3601 = vtanh.f32 %v2813_v1  ;;  %v2814_v4 = vmul.f32 0.7978846, %v2812_v2 }
0x21e2   :  { %3603 = vtanh.f32 %v2814_v4 }
0x21ea   :  { %v3602_v5 = vpop.eup %3601 }
0x21eb   :  { %v2817_v36 = vadd.f32 1.0, %v3602_v5 }
0x21ec   :  { %v3604_v35 = vpop.eup %3603 }
0x21ed   :  { %v2818_v8 = vadd.f32 1.0, %v3604_v35  ;;  %v2819_v11 = vmul.f32 %v2817_v36, %v2803_v6 }
0x21ef   :  { %v2820_v12 = vmul.f32 %v2818_v8, %v2804_v7 }
0x21f1   :  { %v2830_v14 = vpack.c.bf16 %v2820_v12, %v2819_v11 }
0x21f3   :  { %3493 = vmatmul.mubr.msk.bf16.vlgmr.msra.gmra.mrb[88].mxu0 %vm1433_vm4, %v2830_v14 }
0x22c6   :  { %v2880_v42 = vpop.f32.mrb[88].mxu0 }
0x22c7   :  { %v2881_v44 = vadd.f32 %v3087_v15, %v2880_v42  ;;  %v3494_v0 = vpop.f32.mrb[89].mxu0 }
0x22c8   :  { %v2883_v16 = vpop.f32.mrb[90].mxu0 }
0x22c9   :  { %v2884_v18 = vadd.f32 %v3087_v15, %v2883_v16  ;;  %v3495_v3 = vpop.f32.mrb[91].mxu0  ;;  %v2887_v19 = vadd.f32 %v2881_v44, %v2741_v43  ;;  %v2936_v43 = vld [vmem:[%s4426_s16 + $0x8] sm:$0xff] }
0x22cb   :  { %v2893_v20 = vsel %vm66_vm0, %v2887_v19, 0.0  ;;  %v2888_v57 = vadd.f32 %v2884_v18, %v2742_v28  ;;  %v2940_v28 = vpack.c.bf16 %v2936_v43, %v2935_v56 }
0x22cc   :  { %2894 = vadd.xlane.f32.xlu0 %v2893_v20 }
0x22cd   :  { %v2896_v21 = vsel %vm66_vm0, %v2888_v57, 0.0  ;;  %3497 = vmatpush3.bf16.msra.mxu1 %v2940_v28 }
0x22ce   :  { %2897 = vadd.xlane.f32.xlu1 %v2896_v21  ;;  %3498 = vmatprep.subr.bf16.mxu1 %v3611_v17  ;;  %v3092_v17 = vld [vmem:[%s4425_s15 + $0x1] ss:$0 sm:$0xff] }
0x22d1   :  { %3499 = vmatpush3.bf16.msra.mxu1 %v2941_v31 }
0x2359   :  { %v2895_v46 = vpop.xlane.xlu0 %2894 }
0x235a   :  { %v2899_v22 = vmul.f32 0.03125, %v2895_v46 }
0x235b   :  { %v2898_v9 = vpop.xlane.xlu1 %2897 }
0x235c   :  { %v2901_v23 = vsub.f32 %v2887_v19, %v2899_v22  ;;  %v2900_v24 = vmul.f32 0.03125, %v2898_v9 }
0x235e   :  { %v2902_v25 = vsub.f32 %v2888_v57, %v2900_v24  ;;  %v2903_v13 = vmul.f32 %v2901_v23, %v2901_v23 }
0x2360   :  { %v2905_v26 = vsel %vm66_vm0, %v2903_v13, 0.0  ;;  %v2904_v27 = vmul.f32 %v2902_v25, %v2902_v25 }
0x2361   :  { %2906 = vadd.xlane.f32.xlu0 %v2905_v26 }
0x2362   :  { %v2908_v10 = vsel %vm66_vm0, %v2904_v27, 0.0 }
0x2363   :  { %2909 = vadd.xlane.f32.xlu1 %v2908_v10 }
0x23ee   :  { %v2907_v33 = vpop.xlane.xlu0 %2906 }
0x23ef   :  { %v2911_v53 = vmul.f32 0.03125, %v2907_v33 }
0x23f0   :  { %v2910_v32 = vpop.xlane.xlu1 %2909 }
0x23f1   :  { %v2913_v34 = vadd.f32 1e-12, %v2911_v53  ;;  %v2912_v37 = vmul.f32 0.03125, %v2910_v32 }
0x23f3   :  { %3605 = vrsqrt.f32 %v2913_v34  ;;  %v2914_v38 = vadd.f32 1e-12, %v2912_v37 }
0x23f5   :  { %3607 = vrsqrt.f32 %v2914_v38 }
0x23fd   :  { %v3606_v40 = vpop.eup %3605 }
0x23fe   :  { %v2917_v41 = vmul.f32 %v3606_v40, %v2901_v23 }
0x23ff   :  { %v3608_v45 = vpop.eup %3607 }
0x2400   :  { %v2925_v47 = vmul.f32 %v3091_v39, %v2917_v41  ;;  %v2918_v48 = vmul.f32 %v3608_v45, %v2902_v25 }
0x2402   :  { %v2926_v49 = vmul.f32 %v3091_v39, %v2918_v48  ;;  %v2933_v50 = vadd.f32 %v3092_v17, %v2925_v47 }
0x2404   :  { %v2934_v51 = vadd.f32 %v3092_v17, %v2926_v49 }
0x2406   :  { %v2939_v54 = vpack.c.bf16 %v2934_v51, %v2933_v50 }
0x2408   :  { %3501 = vmatmul.mubr.msk.bf16.vlgmr.msra.gmra.mrb[92].mxu1 %vm66_vm0, %v2939_v54 }
0x24db   :  { %v2986_v58 = vpop.f32.mrb[92].mxu1 }
0x24dc   :  { %v2987_v59 = vadd.f32 %v3093_v55, %v2986_v58  ;;  %v3502_v52 = vpop.f32.mrb[93].mxu1 }
0x24dd   :  { %v2989_v60 = vpop.f32.mrb[94].mxu1 }
0x24de   :  { %2993 = vst [vmem:[%s4428_s18] sm:$0xff] %v2987_v59  ;;  %v2990_v61 = vadd.f32 %v3093_v55, %v2989_v60  ;;  %v3503_v62 = vpop.f32.mrb[95].mxu1 }
0x24e0   :  { %2994 = vst [vmem:[%s4428_s18 + $0x8] sm:$0xff] %v2990_v61 }

</bundles_post_ra>
